<compile_context>
chip_gen: v7x
topology: tpu7x:2x2x1
jax: 0.10.0
libtpu: 0.0.40
codegen_flags: <defaults>
</compile_context>

<pallas_src>
import functools

import jax
import jax.numpy as jnp
from jax.experimental import pallas as pl
from jax.experimental.pallas import tpu as pltpu


# ----------------------------- Pallas kernels ------------------------------ #

def _make_conv_kernel(H, W, dil, with_residual):
    """Fused 3x3x3 conv (stride 1, dilation=dil) + folded-BN (+residual) + ReLU.

    Per grid step (one (n, d) output plane):
      x{0,1,2}_ref : (1, 1, Hp, Wp, Cin) padded depth slices d, d+dil, d+2*dil (bf16)
      w_ref        : (27, Cin, Cout)     BN-scale-folded weights (bf16, VMEM-resident)
      b_ref        : (1, Cout)           folded BN bias (f32)
      res_ref      : (1, 1, H, W, Cout)  residual (f32, conv2 only)
      o_ref        : (1, 1, H, W, Cout)  output plane
    """

    def kernel(*refs):
        if with_residual:
            x0_ref, x1_ref, x2_ref, w_ref, b_ref, res_ref, o_ref = refs
        else:
            x0_ref, x1_ref, x2_ref, w_ref, b_ref, o_ref = refs
            res_ref = None
        cout = o_ref.shape[-1]

        # Seed the f32 accumulator with the folded-BN bias.
        acc = jnp.broadcast_to(b_ref[...], (H * W, cout)).astype(jnp.float32)

        # Keep activations in bf16 all the way to the MXU: the 9 shifted
        # spatial windows per depth slice are sliced straight off the loaded
        # bf16 plane (the reshape is the only data movement).
        x_planes = (x0_ref[0, 0], x1_ref[0, 0], x2_ref[0, 0])   # (Hp, Wp, Cin)
        for kd in range(3):
            xd = x_planes[kd]
            for kh in range(3):
                for kw in range(3):
                    tap = kd * 9 + kh * 3 + kw
                    patch = xd[kh * dil:kh * dil + H,
                               kw * dil:kw * dil + W, :]
                    patch = patch.reshape(H * W, -1)
                    acc = acc + jnp.dot(patch, w_ref[tap],
                                        preferred_element_type=jnp.float32)

        y = acc
        if with_residual:
            y = y + res_ref[0, 0].reshape(H * W, cout).astype(jnp.float32)
        y = jnp.maximum(y, 0.0)
        o_ref[...] = y.reshape(1, 1, H, W, cout).astype(o_ref.dtype)

    return kernel


def _conv3d_bn_act(xp, w_taps, bias, spatial, dil, residual, out_dtype):
    """Pallas driver: grid over (N, D) output planes, taps via shifted specs."""
    N = xp.shape[0]
    Hp, Wp, cin = xp.shape[2], xp.shape[3], xp.shape[4]
    D, H, W = spatial
    cout = w_taps.shape[-1]
    bias2d = bias.reshape(1, cout).astype(jnp.float32)

    def tap_spec(kd):
        # Shifted index_map: padded depth slice d + kd*dil feeds output depth d.
        return pl.BlockSpec((1, 1, Hp, Wp, cin),
                            lambda n, d, kd=kd: (n, d + kd * dil, 0, 0, 0))

    in_specs = [
        tap_spec(0), tap_spec(1), tap_spec(2),
        # Constant index_maps: weight stack / bias are DMA'd once and stay
        # resident in VMEM across the whole grid.
        pl.BlockSpec((27, cin, cout), lambda n, d: (0, 0, 0)),
        pl.BlockSpec((1, cout), lambda n, d: (0, 0)),
    ]
    args = [xp, xp, xp, w_taps, bias2d]
    res_bytes = 0
    if residual is not None:
        in_specs.append(
            pl.BlockSpec((1, 1, H, W, cout), lambda n, d: (n, d, 0, 0, 0)))
        args.append(residual)
        res_bytes = residual.size * residual.dtype.itemsize

    kernel = _make_conv_kernel(H, W, dil, residual is not None)

    out_itemsize = jnp.dtype(out_dtype).itemsize
    cost = pl.CostEstimate(
        flops=2 * 27 * N * D * H * W * cin * cout,
        transcendentals=0,
        bytes_accessed=(3 * xp.size * xp.dtype.itemsize
                        + w_taps.size * w_taps.dtype.itemsize
                        + N * D * H * W * cout * out_itemsize
                        + res_bytes),
    )

    return pl.pallas_call(
        kernel,
        out_shape=jax.ShapeDtypeStruct((N, D, H, W, cout), out_dtype),
        grid_spec=pltpu.PrefetchScalarGridSpec(
            num_scalar_prefetch=0,
            grid=(N, D),
            in_specs=in_specs,
            out_specs=pl.BlockSpec((1, 1, H, W, cout),
                                   lambda n, d: (n, d, 0, 0, 0)),
        ),
        compiler_params=pltpu.CompilerParams(
            dimension_semantics=("parallel", "parallel"),
            vmem_limit_bytes=48 * 1024 * 1024),
        cost_estimate=cost,
    )(*args)


# ------------------------------- JAX glue ----------------------------------- #

def _fold_bn(gamma, beta, mean, var, eps=1e-5):
    scale = gamma / jnp.sqrt(var + eps)
    return scale, beta - mean * scale


def _prep_weight(w_oidhw, scale):
    """(Cout, Cin, 3, 3, 3) -> (27, Cin, Cout) with BN scale folded in, bf16."""
    cout = w_oidhw.shape[0]
    w = w_oidhw * scale.reshape(cout, 1, 1, 1, 1)
    w = jnp.transpose(w, (2, 3, 4, 1, 0)).reshape(27, -1, cout)
    return w.astype(jnp.bfloat16)


def basic_block_forward(x_ncdhw, params, dilation=1):
    """BasicBlock forward. x: (N, C, D, H, W); stride=1, downsample=None."""
    N, C, D, H, W = x_ncdhw.shape
    planes = params["w1"].shape[0]
    if planes != C or params["w1"].shape[1] != C:
        raise ValueError("identity residual requires inplanes == planes "
                         "(stride=1, downsample=None)")
    p = dilation

    scale1, bias1 = _fold_bn(*params["bn1"])
    scale2, bias2 = _fold_bn(*params["bn2"])
    w1 = _prep_weight(params["w1"], scale1)
    w2 = _prep_weight(params["w2"], scale2)

    # Channels-last once at the API boundary (module keeps NCDHW outside).
    x = jnp.transpose(x_ncdhw, (0, 2, 3, 4, 1))                # NDHWC, f32
    xp = jnp.pad(x.astype(jnp.bfloat16),
                 ((0, 0), (p, p), (p, p), (p, p), (0, 0)))

    # conv1 + bn1 + relu   (out1 kept in bf16 for the inter-conv roundtrip)
    out1 = _conv3d_bn_act(xp, w1, bias1, (D, H, W), dilation,
                          residual=None, out_dtype=jnp.bfloat16)

    # conv2 + bn2 + residual add + relu
    out1p = jnp.pad(out1, ((0, 0), (p, p), (p, p), (p, p), (0, 0)))
    out2 = _conv3d_bn_act(out1p, w2, bias2, (D, H, W), dilation,
                          residual=x, out_dtype=jnp.float32)

    return jnp.transpose(out2, (0, 4, 1, 2, 3))                # back to NCDHW


# ------------------------------ references ---------------------------------- #

def _reference_forward(x, params, dilation=1, eps=1e-5):
    """Pure-f32 module semantics."""
    def conv(inp, w):
        return jax.lax.conv_general_dilated(
            inp, w, window_strides=(1, 1, 1),
            padding=[(dilation, dilation)] * 3,
            rhs_dilation=(dilation,) * 3,
            dimension_numbers=("NCDHW", "OIDHW", "NCDHW"))

    def bn(y, stats):
        g, b, m, v = (s.reshape(1, -1, 1, 1, 1) for s in stats)
        return (y - m) / jnp.sqrt(v + eps) * g + b

    out = jnp.maximum(bn(conv(x, params["w1"]), params["bn1"]), 0.0)
    out = bn(conv(out, params["w2"]), params["bn2"]) + x
    return jnp.maximum(out, 0.0)


def _matched_reference(x, params, dilation=1):
    """Same arithmetic as the Pallas path (bf16 operands, f32 accumulation,
    bf16 inter-conv activation) via XLA convs -- tight numerical check."""
    def conv(inp, w):
        return jax.lax.conv_general_dilated(
            inp.astype(jnp.float32), w.astype(jnp.float32),
            window_strides=(1, 1, 1),
            padding=[(dilation, dilation)] * 3,
            rhs_dilation=(dilation,) * 3,
            dimension_numbers=("NCDHW", "OIDHW", "NCDHW"))

    s1, b1 = _fold_bn(*params["bn1"])
    s2, b2 = _fold_bn(*params["bn2"])
    w1 = (params["w1"] * s1.reshape(-1, 1, 1, 1, 1)).astype(jnp.bfloat16)
    w2 = (params["w2"] * s2.reshape(-1, 1, 1, 1, 1)).astype(jnp.bfloat16)
    xb = x.astype(jnp.bfloat16)
    out1 = jnp.maximum(conv(xb, w1) + b1.reshape(1, -1, 1, 1, 1), 0.0)
    out1 = out1.astype(jnp.bfloat16)
    out2 = conv(out1, w2) + b2.reshape(1, -1, 1, 1, 1) + x
    return jnp.maximum(out2, 0.0)


# --------------------------------- main -------------------------------------- #

if __name__ == "__main__":
    key = jax.random.PRNGKey(0)
    inplanes = planes = 4
    N, D, H, W = 2, 4, 8, 8
    dilation = 1

    ks = jax.random.split(key, 10)
    x = jax.random.normal(ks[0], (N, inplanes, D, H, W), jnp.float32)

    params = {
        "w1": 0.1 * jax.random.normal(ks[1], (planes, inplanes, 3, 3, 3),
                                      jnp.float32),
        "w2": 0.1 * jax.random.normal(ks[2], (planes, planes, 3, 3, 3),
                                      jnp.float32),
        "bn1": (1.0 + 0.1 * jax.random.normal(ks[3], (planes,), jnp.float32),
                0.1 * jax.random.normal(ks[4], (planes,), jnp.float32),
                0.1 * jax.random.normal(ks[5], (planes,), jnp.float32),
                1.0 + 0.1 * jax.random.uniform(ks[6], (planes,), jnp.float32)),
        "bn2": (1.0 + 0.1 * jax.random.normal(ks[7], (planes,), jnp.float32),
                0.1 * jax.random.normal(ks[8], (planes,), jnp.float32),
                0.1 * jax.random.normal(ks[9], (planes,), jnp.float32),
                jnp.ones((planes,), jnp.float32)),
    }

    fwd = jax.jit(functools.partial(basic_block_forward, dilation=dilation))
    out = fwd(x, params)
    jax.block_until_ready(out)
    assert out.shape == (N, planes, D, H, W)

    # Tight check against a reference that mirrors the kernel's bf16/f32 mix.
    ref_m = _matched_reference(x, params, dilation=dilation)
    err_m = jnp.max(jnp.abs(out - ref_m))
    assert jnp.allclose(out, ref_m, atol=2e-2, rtol=2e-2), \
        f"max abs err vs matched-precision ref: {err_m}"

    # Loose sanity check against pure-f32 module semantics (bf16 matmuls).
    ref_f = _reference_forward(x, params, dilation=dilation)
    err_f = jnp.max(jnp.abs(out - ref_f))
    assert jnp.allclose(out, ref_f, atol=2.5e-1, rtol=2.5e-1), \
        f"max abs err vs f32 ref: {err_f}"

    print("KERNEL_OK")
</pallas_src>

<mosaic_0001>
module attributes {stable_mosaic.version = 11 : i64} {
  func.func @kernel(%arg0: i32, %arg1: i32, %arg2: memref<1x1x10x10x4xbf16, #tpu.memory_space<vmem>>, %arg3: memref<1x1x10x10x4xbf16, #tpu.memory_space<vmem>>, %arg4: memref<1x1x10x10x4xbf16, #tpu.memory_space<vmem>>, %arg5: memref<27x4x4xbf16, #tpu.memory_space<vmem>>, %arg6: memref<1x4xf32, #tpu.memory_space<vmem>>, %arg7: memref<1x1x8x8x4xbf16, #tpu.memory_space<vmem>>) attributes {dimension_semantics = [#tpu.dimension_semantics<parallel>, #tpu.dimension_semantics<parallel>], iteration_bounds = array<i64: 2, 4>, scalar_prefetch = 0 : i64, scratch_operands = 0 : i64, tpu.core_type = #tpu.core_type<tc>, window_params = [{transform_indices = @transform_0, window_bounds = array<i64: 1, 1, 10, 10, 4>}, {transform_indices = @transform_1, window_bounds = array<i64: 1, 1, 10, 10, 4>}, {transform_indices = @transform_2, window_bounds = array<i64: 1, 1, 10, 10, 4>}, {pipeline_mode = #tpu.pipeline_mode<synchronous>, transform_indices = @transform_3, window_bounds = array<i64: 27, 4, 4>}, {pipeline_mode = #tpu.pipeline_mode<synchronous>, transform_indices = @transform_4, window_bounds = array<i64: 1, 4>}, {transform_indices = @transform_5, window_bounds = array<i64: 1, 1, 8, 8, 4>}]} {
    %c0 = arith.constant 0 : index
    %c0_0 = arith.constant 0 : index
    %0 = vector.load %arg6[%c0, %c0_0] : memref<1x4xf32, #tpu.memory_space<vmem>>, vector<1x4xf32>
    %1 = vector.shape_cast %0 : vector<1x4xf32> to vector<1x4xf32>
    %2 = vector.broadcast %1 : vector<1x4xf32> to vector<64x4xf32>
    %c0_1 = arith.constant 0 : index
    %c0_2 = arith.constant 0 : index
    %c0_3 = arith.constant 0 : index
    %c0_4 = arith.constant 0 : index
    %c0_5 = arith.constant 0 : index
    %3 = vector.load %arg2[%c0_1, %c0_2, %c0_3, %c0_4, %c0_5] : memref<1x1x10x10x4xbf16, #tpu.memory_space<vmem>>, vector<1x1x10x10x4xbf16>
    %4 = vector.shape_cast %3 : vector<1x1x10x10x4xbf16> to vector<10x10x4xbf16>
    %c0_6 = arith.constant 0 : index
    %c0_7 = arith.constant 0 : index
    %c0_8 = arith.constant 0 : index
    %c0_9 = arith.constant 0 : index
    %c0_10 = arith.constant 0 : index
    %5 = vector.load %arg3[%c0_6, %c0_7, %c0_8, %c0_9, %c0_10] : memref<1x1x10x10x4xbf16, #tpu.memory_space<vmem>>, vector<1x1x10x10x4xbf16>
    %6 = vector.shape_cast %5 : vector<1x1x10x10x4xbf16> to vector<10x10x4xbf16>
    %c0_11 = arith.constant 0 : index
    %c0_12 = arith.constant 0 : index
    %c0_13 = arith.constant 0 : index
    %c0_14 = arith.constant 0 : index
    %c0_15 = arith.constant 0 : index
    %7 = vector.load %arg4[%c0_11, %c0_12, %c0_13, %c0_14, %c0_15] : memref<1x1x10x10x4xbf16, #tpu.memory_space<vmem>>, vector<1x1x10x10x4xbf16>
    %8 = vector.shape_cast %7 : vector<1x1x10x10x4xbf16> to vector<10x10x4xbf16>
    %9 = vector.extract_strided_slice %4 {offsets = [0, 0, 0], sizes = [8, 8, 4], strides = [1, 1, 1]} : vector<10x10x4xbf16> to vector<8x8x4xbf16>
    %10 = vector.shape_cast %9 : vector<8x8x4xbf16> to vector<64x4xbf16>
    %c0_16 = arith.constant 0 : index
    %c0_17 = arith.constant 0 : index
    %c0_18 = arith.constant 0 : index
    %11 = vector.load %arg5[%c0_16, %c0_17, %c0_18] : memref<27x4x4xbf16, #tpu.memory_space<vmem>>, vector<1x4x4xbf16>
    %12 = vector.shape_cast %11 : vector<1x4x4xbf16> to vector<4x4xbf16>
    %cst = arith.constant dense<0.000000e+00> : vector<64x4xf32>
    %13 = tpu.matmul %10, %12, %cst {dimension_numbers = #tpu.dot_dimension_numbers<[1], [0], [0], [1], [0, 0, 1, 1], [], []>} : vector<64x4xbf16>, vector<4x4xbf16>, vector<64x4xf32> -> vector<64x4xf32>
    %14 = arith.addf %2, %13 : vector<64x4xf32>
    %15 = vector.extract_strided_slice %4 {offsets = [0, 1, 0], sizes = [8, 8, 4], strides = [1, 1, 1]} : vector<10x10x4xbf16> to vector<8x8x4xbf16>
    %16 = vector.shape_cast %15 : vector<8x8x4xbf16> to vector<64x4xbf16>
    %c1 = arith.constant 1 : index
    %c0_19 = arith.constant 0 : index
    %c0_20 = arith.constant 0 : index
    %17 = vector.load %arg5[%c1, %c0_19, %c0_20] : memref<27x4x4xbf16, #tpu.memory_space<vmem>>, vector<1x4x4xbf16>
    %18 = vector.shape_cast %17 : vector<1x4x4xbf16> to vector<4x4xbf16>
    %cst_21 = arith.constant dense<0.000000e+00> : vector<64x4xf32>
    %19 = tpu.matmul %16, %18, %cst_21 {dimension_numbers = #tpu.dot_dimension_numbers<[1], [0], [0], [1], [0, 0, 1, 1], [], []>} : vector<64x4xbf16>, vector<4x4xbf16>, vector<64x4xf32> -> vector<64x4xf32>
    %20 = arith.addf %14, %19 : vector<64x4xf32>
    %21 = vector.extract_strided_slice %4 {offsets = [0, 2, 0], sizes = [8, 8, 4], strides = [1, 1, 1]} : vector<10x10x4xbf16> to vector<8x8x4xbf16>
    %22 = vector.shape_cast %21 : vector<8x8x4xbf16> to vector<64x4xbf16>
    %c2 = arith.constant 2 : index
    %c0_22 = arith.constant 0 : index
    %c0_23 = arith.constant 0 : index
    %23 = vector.load %arg5[%c2, %c0_22, %c0_23] : memref<27x4x4xbf16, #tpu.memory_space<vmem>>, vector<1x4x4xbf16>
    %24 = vector.shape_cast %23 : vector<1x4x4xbf16> to vector<4x4xbf16>
    %cst_24 = arith.constant dense<0.000000e+00> : vector<64x4xf32>
    %25 = tpu.matmul %22, %24, %cst_24 {dimension_numbers = #tpu.dot_dimension_numbers<[1], [0], [0], [1], [0, 0, 1, 1], [], []>} : vector<64x4xbf16>, vector<4x4xbf16>, vector<64x4xf32> -> vector<64x4xf32>
    %26 = arith.addf %20, %25 : vector<64x4xf32>
    %27 = vector.extract_strided_slice %4 {offsets = [1, 0, 0], sizes = [8, 8, 4], strides = [1, 1, 1]} : vector<10x10x4xbf16> to vector<8x8x4xbf16>
    %28 = vector.shape_cast %27 : vector<8x8x4xbf16> to vector<64x4xbf16>
    %c3 = arith.constant 3 : index
    %c0_25 = arith.constant 0 : index
    %c0_26 = arith.constant 0 : index
    %29 = vector.load %arg5[%c3, %c0_25, %c0_26] : memref<27x4x4xbf16, #tpu.memory_space<vmem>>, vector<1x4x4xbf16>
    %30 = vector.shape_cast %29 : vector<1x4x4xbf16> to vector<4x4xbf16>
    %cst_27 = arith.constant dense<0.000000e+00> : vector<64x4xf32>
    %31 = tpu.matmul %28, %30, %cst_27 {dimension_numbers = #tpu.dot_dimension_numbers<[1], [0], [0], [1], [0, 0, 1, 1], [], []>} : vector<64x4xbf16>, vector<4x4xbf16>, vector<64x4xf32> -> vector<64x4xf32>
    %32 = arith.addf %26, %31 : vector<64x4xf32>
    %33 = vector.extract_strided_slice %4 {offsets = [1, 1, 0], sizes = [8, 8, 4], strides = [1, 1, 1]} : vector<10x10x4xbf16> to vector<8x8x4xbf16>
    %34 = vector.shape_cast %33 : vector<8x8x4xbf16> to vector<64x4xbf16>
    %c4 = arith.constant 4 : index
    %c0_28 = arith.constant 0 : index
    %c0_29 = arith.constant 0 : index
    %35 = vector.load %arg5[%c4, %c0_28, %c0_29] : memref<27x4x4xbf16, #tpu.memory_space<vmem>>, vector<1x4x4xbf16>
    %36 = vector.shape_cast %35 : vector<1x4x4xbf16> to vector<4x4xbf16>
    %cst_30 = arith.constant dense<0.000000e+00> : vector<64x4xf32>
    %37 = tpu.matmul %34, %36, %cst_30 {dimension_numbers = #tpu.dot_dimension_numbers<[1], [0], [0], [1], [0, 0, 1, 1], [], []>} : vector<64x4xbf16>, vector<4x4xbf16>, vector<64x4xf32> -> vector<64x4xf32>
    %38 = arith.addf %32, %37 : vector<64x4xf32>
    %39 = vector.extract_strided_slice %4 {offsets = [1, 2, 0], sizes = [8, 8, 4], strides = [1, 1, 1]} : vector<10x10x4xbf16> to vector<8x8x4xbf16>
    %40 = vector.shape_cast %39 : vector<8x8x4xbf16> to vector<64x4xbf16>
    %c5 = arith.constant 5 : index
    %c0_31 = arith.constant 0 : index
    %c0_32 = arith.constant 0 : index
    %41 = vector.load %arg5[%c5, %c0_31, %c0_32] : memref<27x4x4xbf16, #tpu.memory_space<vmem>>, vector<1x4x4xbf16>
    %42 = vector.shape_cast %41 : vector<1x4x4xbf16> to vector<4x4xbf16>
    %cst_33 = arith.constant dense<0.000000e+00> : vector<64x4xf32>
    %43 = tpu.matmul %40, %42, %cst_33 {dimension_numbers = #tpu.dot_dimension_numbers<[1], [0], [0], [1], [0, 0, 1, 1], [], []>} : vector<64x4xbf16>, vector<4x4xbf16>, vector<64x4xf32> -> vector<64x4xf32>
    %44 = arith.addf %38, %43 : vector<64x4xf32>
    %45 = vector.extract_strided_slice %4 {offsets = [2, 0, 0], sizes = [8, 8, 4], strides = [1, 1, 1]} : vector<10x10x4xbf16> to vector<8x8x4xbf16>
    %46 = vector.shape_cast %45 : vector<8x8x4xbf16> to vector<64x4xbf16>
    %c6 = arith.constant 6 : index
    %c0_34 = arith.constant 0 : index
    %c0_35 = arith.constant 0 : index
    %47 = vector.load %arg5[%c6, %c0_34, %c0_35] : memref<27x4x4xbf16, #tpu.memory_space<vmem>>, vector<1x4x4xbf16>
    %48 = vector.shape_cast %47 : vector<1x4x4xbf16> to vector<4x4xbf16>
    %cst_36 = arith.constant dense<0.000000e+00> : vector<64x4xf32>
    %49 = tpu.matmul %46, %48, %cst_36 {dimension_numbers = #tpu.dot_dimension_numbers<[1], [0], [0], [1], [0, 0, 1, 1], [], []>} : vector<64x4xbf16>, vector<4x4xbf16>, vector<64x4xf32> -> vector<64x4xf32>
    %50 = arith.addf %44, %49 : vector<64x4xf32>
    %51 = vector.extract_strided_slice %4 {offsets = [2, 1, 0], sizes = [8, 8, 4], strides = [1, 1, 1]} : vector<10x10x4xbf16> to vector<8x8x4xbf16>
    %52 = vector.shape_cast %51 : vector<8x8x4xbf16> to vector<64x4xbf16>
    %c7 = arith.constant 7 : index
    %c0_37 = arith.constant 0 : index
    %c0_38 = arith.constant 0 : index
    %53 = vector.load %arg5[%c7, %c0_37, %c0_38] : memref<27x4x4xbf16, #tpu.memory_space<vmem>>, vector<1x4x4xbf16>
    %54 = vector.shape_cast %53 : vector<1x4x4xbf16> to vector<4x4xbf16>
    %cst_39 = arith.constant dense<0.000000e+00> : vector<64x4xf32>
    %55 = tpu.matmul %52, %54, %cst_39 {dimension_numbers = #tpu.dot_dimension_numbers<[1], [0], [0], [1], [0, 0, 1, 1], [], []>} : vector<64x4xbf16>, vector<4x4xbf16>, vector<64x4xf32> -> vector<64x4xf32>
    %56 = arith.addf %50, %55 : vector<64x4xf32>
    %57 = vector.extract_strided_slice %4 {offsets = [2, 2, 0], sizes = [8, 8, 4], strides = [1, 1, 1]} : vector<10x10x4xbf16> to vector<8x8x4xbf16>
    %58 = vector.shape_cast %57 : vector<8x8x4xbf16> to vector<64x4xbf16>
    %c8 = arith.constant 8 : index
    %c0_40 = arith.constant 0 : index
    %c0_41 = arith.constant 0 : index
    %59 = vector.load %arg5[%c8, %c0_40, %c0_41] : memref<27x4x4xbf16, #tpu.memory_space<vmem>>, vector<1x4x4xbf16>
    %60 = vector.shape_cast %59 : vector<1x4x4xbf16> to vector<4x4xbf16>
    %cst_42 = arith.constant dense<0.000000e+00> : vector<64x4xf32>
    %61 = tpu.matmul %58, %60, %cst_42 {dimension_numbers = #tpu.dot_dimension_numbers<[1], [0], [0], [1], [0, 0, 1, 1], [], []>} : vector<64x4xbf16>, vector<4x4xbf16>, vector<64x4xf32> -> vector<64x4xf32>
    %62 = arith.addf %56, %61 : vector<64x4xf32>
    %63 = vector.extract_strided_slice %6 {offsets = [0, 0, 0], sizes = [8, 8, 4], strides = [1, 1, 1]} : vector<10x10x4xbf16> to vector<8x8x4xbf16>
    %64 = vector.shape_cast %63 : vector<8x8x4xbf16> to vector<64x4xbf16>
    %c9 = arith.constant 9 : index
    %c0_43 = arith.constant 0 : index
    %c0_44 = arith.constant 0 : index
    %65 = vector.load %arg5[%c9, %c0_43, %c0_44] : memref<27x4x4xbf16, #tpu.memory_space<vmem>>, vector<1x4x4xbf16>
    %66 = vector.shape_cast %65 : vector<1x4x4xbf16> to vector<4x4xbf16>
    %cst_45 = arith.constant dense<0.000000e+00> : vector<64x4xf32>
    %67 = tpu.matmul %64, %66, %cst_45 {dimension_numbers = #tpu.dot_dimension_numbers<[1], [0], [0], [1], [0, 0, 1, 1], [], []>} : vector<64x4xbf16>, vector<4x4xbf16>, vector<64x4xf32> -> vector<64x4xf32>
    %68 = arith.addf %62, %67 : vector<64x4xf32>
    %69 = vector.extract_strided_slice %6 {offsets = [0, 1, 0], sizes = [8, 8, 4], strides = [1, 1, 1]} : vector<10x10x4xbf16> to vector<8x8x4xbf16>
    %70 = vector.shape_cast %69 : vector<8x8x4xbf16> to vector<64x4xbf16>
    %c10 = arith.constant 10 : index
    %c0_46 = arith.constant 0 : index
    %c0_47 = arith.constant 0 : index
    %71 = vector.load %arg5[%c10, %c0_46, %c0_47] : memref<27x4x4xbf16, #tpu.memory_space<vmem>>, vector<1x4x4xbf16>
    %72 = vector.shape_cast %71 : vector<1x4x4xbf16> to vector<4x4xbf16>
    %cst_48 = arith.constant dense<0.000000e+00> : vector<64x4xf32>
    %73 = tpu.matmul %70, %72, %cst_48 {dimension_numbers = #tpu.dot_dimension_numbers<[1], [0], [0], [1], [0, 0, 1, 1], [], []>} : vector<64x4xbf16>, vector<4x4xbf16>, vector<64x4xf32> -> vector<64x4xf32>
    %74 = arith.addf %68, %73 : vector<64x4xf32>
    %75 = vector.extract_strided_slice %6 {offsets = [0, 2, 0], sizes = [8, 8, 4], strides = [1, 1, 1]} : vector<10x10x4xbf16> to vector<8x8x4xbf16>
    %76 = vector.shape_cast %75 : vector<8x8x4xbf16> to vector<64x4xbf16>
    %c11 = arith.constant 11 : index
    %c0_49 = arith.constant 0 : index
    %c0_50 = arith.constant 0 : index
    %77 = vector.load %arg5[%c11, %c0_49, %c0_50] : memref<27x4x4xbf16, #tpu.memory_space<vmem>>, vector<1x4x4xbf16>
    %78 = vector.shape_cast %77 : vector<1x4x4xbf16> to vector<4x4xbf16>
    %cst_51 = arith.constant dense<0.000000e+00> : vector<64x4xf32>
    %79 = tpu.matmul %76, %78, %cst_51 {dimension_numbers = #tpu.dot_dimension_numbers<[1], [0], [0], [1], [0, 0, 1, 1], [], []>} : vector<64x4xbf16>, vector<4x4xbf16>, vector<64x4xf32> -> vector<64x4xf32>
    %80 = arith.addf %74, %79 : vector<64x4xf32>
    %81 = vector.extract_strided_slice %6 {offsets = [1, 0, 0], sizes = [8, 8, 4], strides = [1, 1, 1]} : vector<10x10x4xbf16> to vector<8x8x4xbf16>
    %82 = vector.shape_cast %81 : vector<8x8x4xbf16> to vector<64x4xbf16>
    %c12 = arith.constant 12 : index
    %c0_52 = arith.constant 0 : index
    %c0_53 = arith.constant 0 : index
    %83 = vector.load %arg5[%c12, %c0_52, %c0_53] : memref<27x4x4xbf16, #tpu.memory_space<vmem>>, vector<1x4x4xbf16>
    %84 = vector.shape_cast %83 : vector<1x4x4xbf16> to vector<4x4xbf16>
    %cst_54 = arith.constant dense<0.000000e+00> : vector<64x4xf32>
    %85 = tpu.matmul %82, %84, %cst_54 {dimension_numbers = #tpu.dot_dimension_numbers<[1], [0], [0], [1], [0, 0, 1, 1], [], []>} : vector<64x4xbf16>, vector<4x4xbf16>, vector<64x4xf32> -> vector<64x4xf32>
    %86 = arith.addf %80, %85 : vector<64x4xf32>
    %87 = vector.extract_strided_slice %6 {offsets = [1, 1, 0], sizes = [8, 8, 4], strides = [1, 1, 1]} : vector<10x10x4xbf16> to vector<8x8x4xbf16>
    %88 = vector.shape_cast %87 : vector<8x8x4xbf16> to vector<64x4xbf16>
    %c13 = arith.constant 13 : index
    %c0_55 = arith.constant 0 : index
    %c0_56 = arith.constant 0 : index
    %89 = vector.load %arg5[%c13, %c0_55, %c0_56] : memref<27x4x4xbf16, #tpu.memory_space<vmem>>, vector<1x4x4xbf16>
    %90 = vector.shape_cast %89 : vector<1x4x4xbf16> to vector<4x4xbf16>
    %cst_57 = arith.constant dense<0.000000e+00> : vector<64x4xf32>
    %91 = tpu.matmul %88, %90, %cst_57 {dimension_numbers = #tpu.dot_dimension_numbers<[1], [0], [0], [1], [0, 0, 1, 1], [], []>} : vector<64x4xbf16>, vector<4x4xbf16>, vector<64x4xf32> -> vector<64x4xf32>
    %92 = arith.addf %86, %91 : vector<64x4xf32>
    %93 = vector.extract_strided_slice %6 {offsets = [1, 2, 0], sizes = [8, 8, 4], strides = [1, 1, 1]} : vector<10x10x4xbf16> to vector<8x8x4xbf16>
    %94 = vector.shape_cast %93 : vector<8x8x4xbf16> to vector<64x4xbf16>
    %c14 = arith.constant 14 : index
    %c0_58 = arith.constant 0 : index
    %c0_59 = arith.constant 0 : index
    %95 = vector.load %arg5[%c14, %c0_58, %c0_59] : memref<27x4x4xbf16, #tpu.memory_space<vmem>>, vector<1x4x4xbf16>
    %96 = vector.shape_cast %95 : vector<1x4x4xbf16> to vector<4x4xbf16>
    %cst_60 = arith.constant dense<0.000000e+00> : vector<64x4xf32>
    %97 = tpu.matmul %94, %96, %cst_60 {dimension_numbers = #tpu.dot_dimension_numbers<[1], [0], [0], [1], [0, 0, 1, 1], [], []>} : vector<64x4xbf16>, vector<4x4xbf16>, vector<64x4xf32> -> vector<64x4xf32>
    %98 = arith.addf %92, %97 : vector<64x4xf32>
    %99 = vector.extract_strided_slice %6 {offsets = [2, 0, 0], sizes = [8, 8, 4], strides = [1, 1, 1]} : vector<10x10x4xbf16> to vector<8x8x4xbf16>
    %100 = vector.shape_cast %99 : vector<8x8x4xbf16> to vector<64x4xbf16>
    %c15 = arith.constant 15 : index
    %c0_61 = arith.constant 0 : index
    %c0_62 = arith.constant 0 : index
    %101 = vector.load %arg5[%c15, %c0_61, %c0_62] : memref<27x4x4xbf16, #tpu.memory_space<vmem>>, vector<1x4x4xbf16>
    %102 = vector.shape_cast %101 : vector<1x4x4xbf16> to vector<4x4xbf16>
    %cst_63 = arith.constant dense<0.000000e+00> : vector<64x4xf32>
    %103 = tpu.matmul %100, %102, %cst_63 {dimension_numbers = #tpu.dot_dimension_numbers<[1], [0], [0], [1], [0, 0, 1, 1], [], []>} : vector<64x4xbf16>, vector<4x4xbf16>, vector<64x4xf32> -> vector<64x4xf32>
    %104 = arith.addf %98, %103 : vector<64x4xf32>
    %105 = vector.extract_strided_slice %6 {offsets = [2, 1, 0], sizes = [8, 8, 4], strides = [1, 1, 1]} : vector<10x10x4xbf16> to vector<8x8x4xbf16>
    %106 = vector.shape_cast %105 : vector<8x8x4xbf16> to vector<64x4xbf16>
    %c16 = arith.constant 16 : index
    %c0_64 = arith.constant 0 : index
    %c0_65 = arith.constant 0 : index
    %107 = vector.load %arg5[%c16, %c0_64, %c0_65] : memref<27x4x4xbf16, #tpu.memory_space<vmem>>, vector<1x4x4xbf16>
    %108 = vector.shape_cast %107 : vector<1x4x4xbf16> to vector<4x4xbf16>
    %cst_66 = arith.constant dense<0.000000e+00> : vector<64x4xf32>
    %109 = tpu.matmul %106, %108, %cst_66 {dimension_numbers = #tpu.dot_dimension_numbers<[1], [0], [0], [1], [0, 0, 1, 1], [], []>} : vector<64x4xbf16>, vector<4x4xbf16>, vector<64x4xf32> -> vector<64x4xf32>
    %110 = arith.addf %104, %109 : vector<64x4xf32>
    %111 = vector.extract_strided_slice %6 {offsets = [2, 2, 0], sizes = [8, 8, 4], strides = [1, 1, 1]} : vector<10x10x4xbf16> to vector<8x8x4xbf16>
    %112 = vector.shape_cast %111 : vector<8x8x4xbf16> to vector<64x4xbf16>
    %c17 = arith.constant 17 : index
    %c0_67 = arith.constant 0 : index
    %c0_68 = arith.constant 0 : index
    %113 = vector.load %arg5[%c17, %c0_67, %c0_68] : memref<27x4x4xbf16, #tpu.memory_space<vmem>>, vector<1x4x4xbf16>
    %114 = vector.shape_cast %113 : vector<1x4x4xbf16> to vector<4x4xbf16>
    %cst_69 = arith.constant dense<0.000000e+00> : vector<64x4xf32>
    %115 = tpu.matmul %112, %114, %cst_69 {dimension_numbers = #tpu.dot_dimension_numbers<[1], [0], [0], [1], [0, 0, 1, 1], [], []>} : vector<64x4xbf16>, vector<4x4xbf16>, vector<64x4xf32> -> vector<64x4xf32>
    %116 = arith.addf %110, %115 : vector<64x4xf32>
    %117 = vector.extract_strided_slice %8 {offsets = [0, 0, 0], sizes = [8, 8, 4], strides = [1, 1, 1]} : vector<10x10x4xbf16> to vector<8x8x4xbf16>
    %118 = vector.shape_cast %117 : vector<8x8x4xbf16> to vector<64x4xbf16>
    %c18 = arith.constant 18 : index
    %c0_70 = arith.constant 0 : index
    %c0_71 = arith.constant 0 : index
    %119 = vector.load %arg5[%c18, %c0_70, %c0_71] : memref<27x4x4xbf16, #tpu.memory_space<vmem>>, vector<1x4x4xbf16>
    %120 = vector.shape_cast %119 : vector<1x4x4xbf16> to vector<4x4xbf16>
    %cst_72 = arith.constant dense<0.000000e+00> : vector<64x4xf32>
    %121 = tpu.matmul %118, %120, %cst_72 {dimension_numbers = #tpu.dot_dimension_numbers<[1], [0], [0], [1], [0, 0, 1, 1], [], []>} : vector<64x4xbf16>, vector<4x4xbf16>, vector<64x4xf32> -> vector<64x4xf32>
    %122 = arith.addf %116, %121 : vector<64x4xf32>
    %123 = vector.extract_strided_slice %8 {offsets = [0, 1, 0], sizes = [8, 8, 4], strides = [1, 1, 1]} : vector<10x10x4xbf16> to vector<8x8x4xbf16>
    %124 = vector.shape_cast %123 : vector<8x8x4xbf16> to vector<64x4xbf16>
    %c19 = arith.constant 19 : index
    %c0_73 = arith.constant 0 : index
    %c0_74 = arith.constant 0 : index
    %125 = vector.load %arg5[%c19, %c0_73, %c0_74] : memref<27x4x4xbf16, #tpu.memory_space<vmem>>, vector<1x4x4xbf16>
    %126 = vector.shape_cast %125 : vector<1x4x4xbf16> to vector<4x4xbf16>
    %cst_75 = arith.constant dense<0.000000e+00> : vector<64x4xf32>
    %127 = tpu.matmul %124, %126, %cst_75 {dimension_numbers = #tpu.dot_dimension_numbers<[1], [0], [0], [1], [0, 0, 1, 1], [], []>} : vector<64x4xbf16>, vector<4x4xbf16>, vector<64x4xf32> -> vector<64x4xf32>
    %128 = arith.addf %122, %127 : vector<64x4xf32>
    %129 = vector.extract_strided_slice %8 {offsets = [0, 2, 0], sizes = [8, 8, 4], strides = [1, 1, 1]} : vector<10x10x4xbf16> to vector<8x8x4xbf16>
    %130 = vector.shape_cast %129 : vector<8x8x4xbf16> to vector<64x4xbf16>
    %c20 = arith.constant 20 : index
    %c0_76 = arith.constant 0 : index
    %c0_77 = arith.constant 0 : index
    %131 = vector.load %arg5[%c20, %c0_76, %c0_77] : memref<27x4x4xbf16, #tpu.memory_space<vmem>>, vector<1x4x4xbf16>
    %132 = vector.shape_cast %131 : vector<1x4x4xbf16> to vector<4x4xbf16>
    %cst_78 = arith.constant dense<0.000000e+00> : vector<64x4xf32>
    %133 = tpu.matmul %130, %132, %cst_78 {dimension_numbers = #tpu.dot_dimension_numbers<[1], [0], [0], [1], [0, 0, 1, 1], [], []>} : vector<64x4xbf16>, vector<4x4xbf16>, vector<64x4xf32> -> vector<64x4xf32>
    %134 = arith.addf %128, %133 : vector<64x4xf32>
    %135 = vector.extract_strided_slice %8 {offsets = [1, 0, 0], sizes = [8, 8, 4], strides = [1, 1, 1]} : vector<10x10x4xbf16> to vector<8x8x4xbf16>
    %136 = vector.shape_cast %135 : vector<8x8x4xbf16> to vector<64x4xbf16>
    %c21 = arith.constant 21 : index
    %c0_79 = arith.constant 0 : index
    %c0_80 = arith.constant 0 : index
    %137 = vector.load %arg5[%c21, %c0_79, %c0_80] : memref<27x4x4xbf16, #tpu.memory_space<vmem>>, vector<1x4x4xbf16>
    %138 = vector.shape_cast %137 : vector<1x4x4xbf16> to vector<4x4xbf16>
    %cst_81 = arith.constant dense<0.000000e+00> : vector<64x4xf32>
    %139 = tpu.matmul %136, %138, %cst_81 {dimension_numbers = #tpu.dot_dimension_numbers<[1], [0], [0], [1], [0, 0, 1, 1], [], []>} : vector<64x4xbf16>, vector<4x4xbf16>, vector<64x4xf32> -> vector<64x4xf32>
    %140 = arith.addf %134, %139 : vector<64x4xf32>
    %141 = vector.extract_strided_slice %8 {offsets = [1, 1, 0], sizes = [8, 8, 4], strides = [1, 1, 1]} : vector<10x10x4xbf16> to vector<8x8x4xbf16>
    %142 = vector.shape_cast %141 : vector<8x8x4xbf16> to vector<64x4xbf16>
    %c22 = arith.constant 22 : index
    %c0_82 = arith.constant 0 : index
    %c0_83 = arith.constant 0 : index
    %143 = vector.load %arg5[%c22, %c0_82, %c0_83] : memref<27x4x4xbf16, #tpu.memory_space<vmem>>, vector<1x4x4xbf16>
    %144 = vector.shape_cast %143 : vector<1x4x4xbf16> to vector<4x4xbf16>
    %cst_84 = arith.constant dense<0.000000e+00> : vector<64x4xf32>
    %145 = tpu.matmul %142, %144, %cst_84 {dimension_numbers = #tpu.dot_dimension_numbers<[1], [0], [0], [1], [0, 0, 1, 1], [], []>} : vector<64x4xbf16>, vector<4x4xbf16>, vector<64x4xf32> -> vector<64x4xf32>
    %146 = arith.addf %140, %145 : vector<64x4xf32>
    %147 = vector.extract_strided_slice %8 {offsets = [1, 2, 0], sizes = [8, 8, 4], strides = [1, 1, 1]} : vector<10x10x4xbf16> to vector<8x8x4xbf16>
    %148 = vector.shape_cast %147 : vector<8x8x4xbf16> to vector<64x4xbf16>
    %c23 = arith.constant 23 : index
    %c0_85 = arith.constant 0 : index
    %c0_86 = arith.constant 0 : index
    %149 = vector.load %arg5[%c23, %c0_85, %c0_86] : memref<27x4x4xbf16, #tpu.memory_space<vmem>>, vector<1x4x4xbf16>
    %150 = vector.shape_cast %149 : vector<1x4x4xbf16> to vector<4x4xbf16>
    %cst_87 = arith.constant dense<0.000000e+00> : vector<64x4xf32>
    %151 = tpu.matmul %148, %150, %cst_87 {dimension_numbers = #tpu.dot_dimension_numbers<[1], [0], [0], [1], [0, 0, 1, 1], [], []>} : vector<64x4xbf16>, vector<4x4xbf16>, vector<64x4xf32> -> vector<64x4xf32>
    %152 = arith.addf %146, %151 : vector<64x4xf32>
    %153 = vector.extract_strided_slice %8 {offsets = [2, 0, 0], sizes = [8, 8, 4], strides = [1, 1, 1]} : vector<10x10x4xbf16> to vector<8x8x4xbf16>
    %154 = vector.shape_cast %153 : vector<8x8x4xbf16> to vector<64x4xbf16>
    %c24 = arith.constant 24 : index
    %c0_88 = arith.constant 0 : index
    %c0_89 = arith.constant 0 : index
    %155 = vector.load %arg5[%c24, %c0_88, %c0_89] : memref<27x4x4xbf16, #tpu.memory_space<vmem>>, vector<1x4x4xbf16>
    %156 = vector.shape_cast %155 : vector<1x4x4xbf16> to vector<4x4xbf16>
    %cst_90 = arith.constant dense<0.000000e+00> : vector<64x4xf32>
    %157 = tpu.matmul %154, %156, %cst_90 {dimension_numbers = #tpu.dot_dimension_numbers<[1], [0], [0], [1], [0, 0, 1, 1], [], []>} : vector<64x4xbf16>, vector<4x4xbf16>, vector<64x4xf32> -> vector<64x4xf32>
    %158 = arith.addf %152, %157 : vector<64x4xf32>
    %159 = vector.extract_strided_slice %8 {offsets = [2, 1, 0], sizes = [8, 8, 4], strides = [1, 1, 1]} : vector<10x10x4xbf16> to vector<8x8x4xbf16>
    %160 = vector.shape_cast %159 : vector<8x8x4xbf16> to vector<64x4xbf16>
    %c25 = arith.constant 25 : index
    %c0_91 = arith.constant 0 : index
    %c0_92 = arith.constant 0 : index
    %161 = vector.load %arg5[%c25, %c0_91, %c0_92] : memref<27x4x4xbf16, #tpu.memory_space<vmem>>, vector<1x4x4xbf16>
    %162 = vector.shape_cast %161 : vector<1x4x4xbf16> to vector<4x4xbf16>
    %cst_93 = arith.constant dense<0.000000e+00> : vector<64x4xf32>
    %163 = tpu.matmul %160, %162, %cst_93 {dimension_numbers = #tpu.dot_dimension_numbers<[1], [0], [0], [1], [0, 0, 1, 1], [], []>} : vector<64x4xbf16>, vector<4x4xbf16>, vector<64x4xf32> -> vector<64x4xf32>
    %164 = arith.addf %158, %163 : vector<64x4xf32>
    %165 = vector.extract_strided_slice %8 {offsets = [2, 2, 0], sizes = [8, 8, 4], strides = [1, 1, 1]} : vector<10x10x4xbf16> to vector<8x8x4xbf16>
    %166 = vector.shape_cast %165 : vector<8x8x4xbf16> to vector<64x4xbf16>
    %c26 = arith.constant 26 : index
    %c0_94 = arith.constant 0 : index
    %c0_95 = arith.constant 0 : index
    %167 = vector.load %arg5[%c26, %c0_94, %c0_95] : memref<27x4x4xbf16, #tpu.memory_space<vmem>>, vector<1x4x4xbf16>
    %168 = vector.shape_cast %167 : vector<1x4x4xbf16> to vector<4x4xbf16>
    %cst_96 = arith.constant dense<0.000000e+00> : vector<64x4xf32>
    %169 = tpu.matmul %166, %168, %cst_96 {dimension_numbers = #tpu.dot_dimension_numbers<[1], [0], [0], [1], [0, 0, 1, 1], [], []>} : vector<64x4xbf16>, vector<4x4xbf16>, vector<64x4xf32> -> vector<64x4xf32>
    %170 = arith.addf %164, %169 : vector<64x4xf32>
    %cst_97 = arith.constant 0.000000e+00 : f32
    %171 = vector.broadcast %cst_97 : f32 to vector<64x4xf32>
    %172 = arith.maximumf %170, %171 : vector<64x4xf32>
    %173 = vector.shape_cast %172 : vector<64x4xf32> to vector<1x1x8x8x4xf32>
    %174 = arith.truncf %173 : vector<1x1x8x8x4xf32> to vector<1x1x8x8x4xbf16>
    %c0_98 = arith.constant 0 : index
    %c0_99 = arith.constant 0 : index
    %c0_100 = arith.constant 0 : index
    %c0_101 = arith.constant 0 : index
    %c0_102 = arith.constant 0 : index
    %175 = vector.load %arg7[%c0_98, %c0_99, %c0_100, %c0_101, %c0_102] : memref<1x1x8x8x4xbf16, #tpu.memory_space<vmem>>, vector<1x1x8x8x4xbf16>
    tpu.vector_store %arg7[%c0_98, %c0_99, %c0_100, %c0_101, %c0_102], %174 {strides = array<i32>} : memref<1x1x8x8x4xbf16, #tpu.memory_space<vmem>>, vector<1x1x8x8x4xbf16>,
    return
  }
  func.func @transform_0(%arg0: i32, %arg1: i32) -> (i32, i32, i32, i32, i32) {
    %c0_i32 = arith.constant 0 : i32
    %0 = arith.addi %arg1, %c0_i32 : i32
    %c0_i32_0 = arith.constant 0 : i32
    %c0_i32_1 = arith.constant 0 : i32
    %c0_i32_2 = arith.constant 0 : i32
    %c0_i32_3 = arith.constant 0 : i32
    return %arg0, %0, %c0_i32_0, %c0_i32_1, %c0_i32_2 : i32, i32, i32, i32, i32
  }
  func.func @transform_1(%arg0: i32, %arg1: i32) -> (i32, i32, i32, i32, i32) {
    %c1_i32 = arith.constant 1 : i32
    %0 = arith.addi %arg1, %c1_i32 : i32
    %c0_i32 = arith.constant 0 : i32
    %c0_i32_0 = arith.constant 0 : i32
    %c0_i32_1 = arith.constant 0 : i32
    %c0_i32_2 = arith.constant 0 : i32
    return %arg0, %0, %c0_i32, %c0_i32_0, %c0_i32_1 : i32, i32, i32, i32, i32
  }
  func.func @transform_2(%arg0: i32, %arg1: i32) -> (i32, i32, i32, i32, i32) {
    %c2_i32 = arith.constant 2 : i32
    %0 = arith.addi %arg1, %c2_i32 : i32
    %c0_i32 = arith.constant 0 : i32
    %c0_i32_0 = arith.constant 0 : i32
    %c0_i32_1 = arith.constant 0 : i32
    %c0_i32_2 = arith.constant 0 : i32
    return %arg0, %0, %c0_i32, %c0_i32_0, %c0_i32_1 : i32, i32, i32, i32, i32
  }
  func.func @transform_3(%arg0: i32, %arg1: i32) -> (i32, i32, i32) {
    %c0_i32 = arith.constant 0 : i32
    %c0_i32_0 = arith.constant 0 : i32
    %c0_i32_1 = arith.constant 0 : i32
    %c0_i32_2 = arith.constant 0 : i32
    return %c0_i32, %c0_i32_0, %c0_i32_1 : i32, i32, i32
  }
  func.func @transform_4(%arg0: i32, %arg1: i32) -> (i32, i32) {
    %c0_i32 = arith.constant 0 : i32
    %c0_i32_0 = arith.constant 0 : i32
    %c0_i32_1 = arith.constant 0 : i32
    return %c0_i32, %c0_i32_0 : i32, i32
  }
  func.func @transform_5(%arg0: i32, %arg1: i32) -> (i32, i32, i32, i32, i32) {
    %c0_i32 = arith.constant 0 : i32
    %c0_i32_0 = arith.constant 0 : i32
    %c0_i32_1 = arith.constant 0 : i32
    %c0_i32_2 = arith.constant 0 : i32
    return %arg0, %arg1, %c0_i32, %c0_i32_0, %c0_i32_1 : i32, i32, i32, i32, i32
  }
}

module attributes {stable_mosaic.version = 11 : i64} {
  func.func @kernel(%arg0: i32, %arg1: i32, %arg2: memref<1x1x10x10x4xbf16, #tpu.memory_space<vmem>>, %arg3: memref<1x1x10x10x4xbf16, #tpu.memory_space<vmem>>, %arg4: memref<1x1x10x10x4xbf16, #tpu.memory_space<vmem>>, %arg5: memref<27x4x4xbf16, #tpu.memory_space<vmem>>, %arg6: memref<1x4xf32, #tpu.memory_space<vmem>>, %arg7: memref<1x1x8x8x4xf32, #tpu.memory_space<vmem>>, %arg8: memref<1x1x8x8x4xf32, #tpu.memory_space<vmem>>) attributes {dimension_semantics = [#tpu.dimension_semantics<parallel>, #tpu.dimension_semantics<parallel>], iteration_bounds = array<i64: 2, 4>, scalar_prefetch = 0 : i64, scratch_operands = 0 : i64, tpu.core_type = #tpu.core_type<tc>, window_params = [{transform_indices = @transform_0, window_bounds = array<i64: 1, 1, 10, 10, 4>}, {transform_indices = @transform_1, window_bounds = array<i64: 1, 1, 10, 10, 4>}, {transform_indices = @transform_2, window_bounds = array<i64: 1, 1, 10, 10, 4>}, {pipeline_mode = #tpu.pipeline_mode<synchronous>, transform_indices = @transform_3, window_bounds = array<i64: 27, 4, 4>}, {pipeline_mode = #tpu.pipeline_mode<synchronous>, transform_indices = @transform_4, window_bounds = array<i64: 1, 4>}, {transform_indices = @transform_5, window_bounds = array<i64: 1, 1, 8, 8, 4>}, {transform_indices = @transform_6, window_bounds = array<i64: 1, 1, 8, 8, 4>}]} {
    %c0 = arith.constant 0 : index
    %c0_0 = arith.constant 0 : index
    %0 = vector.load %arg6[%c0, %c0_0] : memref<1x4xf32, #tpu.memory_space<vmem>>, vector<1x4xf32>
    %1 = vector.shape_cast %0 : vector<1x4xf32> to vector<1x4xf32>
    %2 = vector.broadcast %1 : vector<1x4xf32> to vector<64x4xf32>
    %c0_1 = arith.constant 0 : index
    %c0_2 = arith.constant 0 : index
    %c0_3 = arith.constant 0 : index
    %c0_4 = arith.constant 0 : index
    %c0_5 = arith.constant 0 : index
    %3 = vector.load %arg2[%c0_1, %c0_2, %c0_3, %c0_4, %c0_5] : memref<1x1x10x10x4xbf16, #tpu.memory_space<vmem>>, vector<1x1x10x10x4xbf16>
    %4 = vector.shape_cast %3 : vector<1x1x10x10x4xbf16> to vector<10x10x4xbf16>
    %c0_6 = arith.constant 0 : index
    %c0_7 = arith.constant 0 : index
    %c0_8 = arith.constant 0 : index
    %c0_9 = arith.constant 0 : index
    %c0_10 = arith.constant 0 : index
    %5 = vector.load %arg3[%c0_6, %c0_7, %c0_8, %c0_9, %c0_10] : memref<1x1x10x10x4xbf16, #tpu.memory_space<vmem>>, vector<1x1x10x10x4xbf16>
    %6 = vector.shape_cast %5 : vector<1x1x10x10x4xbf16> to vector<10x10x4xbf16>
    %c0_11 = arith.constant 0 : index
    %c0_12 = arith.constant 0 : index
    %c0_13 = arith.constant 0 : index
    %c0_14 = arith.constant 0 : index
    %c0_15 = arith.constant 0 : index
    %7 = vector.load %arg4[%c0_11, %c0_12, %c0_13, %c0_14, %c0_15] : memref<1x1x10x10x4xbf16, #tpu.memory_space<vmem>>, vector<1x1x10x10x4xbf16>
    %8 = vector.shape_cast %7 : vector<1x1x10x10x4xbf16> to vector<10x10x4xbf16>
    %9 = vector.extract_strided_slice %4 {offsets = [0, 0, 0], sizes = [8, 8, 4], strides = [1, 1, 1]} : vector<10x10x4xbf16> to vector<8x8x4xbf16>
    %10 = vector.shape_cast %9 : vector<8x8x4xbf16> to vector<64x4xbf16>
    %c0_16 = arith.constant 0 : index
    %c0_17 = arith.constant 0 : index
    %c0_18 = arith.constant 0 : index
    %11 = vector.load %arg5[%c0_16, %c0_17, %c0_18] : memref<27x4x4xbf16, #tpu.memory_space<vmem>>, vector<1x4x4xbf16>
    %12 = vector.shape_cast %11 : vector<1x4x4xbf16> to vector<4x4xbf16>
    %cst = arith.constant dense<0.000000e+00> : vector<64x4xf32>
    %13 = tpu.matmul %10, %12, %cst {dimension_numbers = #tpu.dot_dimension_numbers<[1], [0], [0], [1], [0, 0, 1, 1], [], []>} : vector<64x4xbf16>, vector<4x4xbf16>, vector<64x4xf32> -> vector<64x4xf32>
    %14 = arith.addf %2, %13 : vector<64x4xf32>
    %15 = vector.extract_strided_slice %4 {offsets = [0, 1, 0], sizes = [8, 8, 4], strides = [1, 1, 1]} : vector<10x10x4xbf16> to vector<8x8x4xbf16>
    %16 = vector.shape_cast %15 : vector<8x8x4xbf16> to vector<64x4xbf16>
    %c1 = arith.constant 1 : index
    %c0_19 = arith.constant 0 : index
    %c0_20 = arith.constant 0 : index
    %17 = vector.load %arg5[%c1, %c0_19, %c0_20] : memref<27x4x4xbf16, #tpu.memory_space<vmem>>, vector<1x4x4xbf16>
    %18 = vector.shape_cast %17 : vector<1x4x4xbf16> to vector<4x4xbf16>
    %cst_21 = arith.constant dense<0.000000e+00> : vector<64x4xf32>
    %19 = tpu.matmul %16, %18, %cst_21 {dimension_numbers = #tpu.dot_dimension_numbers<[1], [0], [0], [1], [0, 0, 1, 1], [], []>} : vector<64x4xbf16>, vector<4x4xbf16>, vector<64x4xf32> -> vector<64x4xf32>
    %20 = arith.addf %14, %19 : vector<64x4xf32>
    %21 = vector.extract_strided_slice %4 {offsets = [0, 2, 0], sizes = [8, 8, 4], strides = [1, 1, 1]} : vector<10x10x4xbf16> to vector<8x8x4xbf16>
    %22 = vector.shape_cast %21 : vector<8x8x4xbf16> to vector<64x4xbf16>
    %c2 = arith.constant 2 : index
    %c0_22 = arith.constant 0 : index
    %c0_23 = arith.constant 0 : index
    %23 = vector.load %arg5[%c2, %c0_22, %c0_23] : memref<27x4x4xbf16, #tpu.memory_space<vmem>>, vector<1x4x4xbf16>
    %24 = vector.shape_cast %23 : vector<1x4x4xbf16> to vector<4x4xbf16>
    %cst_24 = arith.constant dense<0.000000e+00> : vector<64x4xf32>
    %25 = tpu.matmul %22, %24, %cst_24 {dimension_numbers = #tpu.dot_dimension_numbers<[1], [0], [0], [1], [0, 0, 1, 1], [], []>} : vector<64x4xbf16>, vector<4x4xbf16>, vector<64x4xf32> -> vector<64x4xf32>
    %26 = arith.addf %20, %25 : vector<64x4xf32>
    %27 = vector.extract_strided_slice %4 {offsets = [1, 0, 0], sizes = [8, 8, 4], strides = [1, 1, 1]} : vector<10x10x4xbf16> to vector<8x8x4xbf16>
    %28 = vector.shape_cast %27 : vector<8x8x4xbf16> to vector<64x4xbf16>
    %c3 = arith.constant 3 : index
    %c0_25 = arith.constant 0 : index
    %c0_26 = arith.constant 0 : index
    %29 = vector.load %arg5[%c3, %c0_25, %c0_26] : memref<27x4x4xbf16, #tpu.memory_space<vmem>>, vector<1x4x4xbf16>
    %30 = vector.shape_cast %29 : vector<1x4x4xbf16> to vector<4x4xbf16>
    %cst_27 = arith.constant dense<0.000000e+00> : vector<64x4xf32>
    %31 = tpu.matmul %28, %30, %cst_27 {dimension_numbers = #tpu.dot_dimension_numbers<[1], [0], [0], [1], [0, 0, 1, 1], [], []>} : vector<64x4xbf16>, vector<4x4xbf16>, vector<64x4xf32> -> vector<64x4xf32>
    %32 = arith.addf %26, %31 : vector<64x4xf32>
    %33 = vector.extract_strided_slice %4 {offsets = [1, 1, 0], sizes = [8, 8, 4], strides = [1, 1, 1]} : vector<10x10x4xbf16> to vector<8x8x4xbf16>
    %34 = vector.shape_cast %33 : vector<8x8x4xbf16> to vector<64x4xbf16>
    %c4 = arith.constant 4 : index
    %c0_28 = arith.constant 0 : index
    %c0_29 = arith.constant 0 : index
    %35 = vector.load %arg5[%c4, %c0_28, %c0_29] : memref<27x4x4xbf16, #tpu.memory_space<vmem>>, vector<1x4x4xbf16>
    %36 = vector.shape_cast %35 : vector<1x4x4xbf16> to vector<4x4xbf16>
    %cst_30 = arith.constant dense<0.000000e+00> : vector<64x4xf32>
    %37 = tpu.matmul %34, %36, %cst_30 {dimension_numbers = #tpu.dot_dimension_numbers<[1], [0], [0], [1], [0, 0, 1, 1], [], []>} : vector<64x4xbf16>, vector<4x4xbf16>, vector<64x4xf32> -> vector<64x4xf32>
    %38 = arith.addf %32, %37 : vector<64x4xf32>
    %39 = vector.extract_strided_slice %4 {offsets = [1, 2, 0], sizes = [8, 8, 4], strides = [1, 1, 1]} : vector<10x10x4xbf16> to vector<8x8x4xbf16>
    %40 = vector.shape_cast %39 : vector<8x8x4xbf16> to vector<64x4xbf16>
    %c5 = arith.constant 5 : index
    %c0_31 = arith.constant 0 : index
    %c0_32 = arith.constant 0 : index
    %41 = vector.load %arg5[%c5, %c0_31, %c0_32] : memref<27x4x4xbf16, #tpu.memory_space<vmem>>, vector<1x4x4xbf16>
    %42 = vector.shape_cast %41 : vector<1x4x4xbf16> to vector<4x4xbf16>
    %cst_33 = arith.constant dense<0.000000e+00> : vector<64x4xf32>
    %43 = tpu.matmul %40, %42, %cst_33 {dimension_numbers = #tpu.dot_dimension_numbers<[1], [0], [0], [1], [0, 0, 1, 1], [], []>} : vector<64x4xbf16>, vector<4x4xbf16>, vector<64x4xf32> -> vector<64x4xf32>
    %44 = arith.addf %38, %43 : vector<64x4xf32>
    %45 = vector.extract_strided_slice %4 {offsets = [2, 0, 0], sizes = [8, 8, 4], strides = [1, 1, 1]} : vector<10x10x4xbf16> to vector<8x8x4xbf16>
    %46 = vector.shape_cast %45 : vector<8x8x4xbf16> to vector<64x4xbf16>
    %c6 = arith.constant 6 : index
    %c0_34 = arith.constant 0 : index
    %c0_35 = arith.constant 0 : index
    %47 = vector.load %arg5[%c6, %c0_34, %c0_35] : memref<27x4x4xbf16, #tpu.memory_space<vmem>>, vector<1x4x4xbf16>
    %48 = vector.shape_cast %47 : vector<1x4x4xbf16> to vector<4x4xbf16>
    %cst_36 = arith.constant dense<0.000000e+00> : vector<64x4xf32>
    %49 = tpu.matmul %46, %48, %cst_36 {dimension_numbers = #tpu.dot_dimension_numbers<[1], [0], [0], [1], [0, 0, 1, 1], [], []>} : vector<64x4xbf16>, vector<4x4xbf16>, vector<64x4xf32> -> vector<64x4xf32>
    %50 = arith.addf %44, %49 : vector<64x4xf32>
    %51 = vector.extract_strided_slice %4 {offsets = [2, 1, 0], sizes = [8, 8, 4], strides = [1, 1, 1]} : vector<10x10x4xbf16> to vector<8x8x4xbf16>
    %52 = vector.shape_cast %51 : vector<8x8x4xbf16> to vector<64x4xbf16>
    %c7 = arith.constant 7 : index
    %c0_37 = arith.constant 0 : index
    %c0_38 = arith.constant 0 : index
    %53 = vector.load %arg5[%c7, %c0_37, %c0_38] : memref<27x4x4xbf16, #tpu.memory_space<vmem>>, vector<1x4x4xbf16>
    %54 = vector.shape_cast %53 : vector<1x4x4xbf16> to vector<4x4xbf16>
    %cst_39 = arith.constant dense<0.000000e+00> : vector<64x4xf32>
    %55 = tpu.matmul %52, %54, %cst_39 {dimension_numbers = #tpu.dot_dimension_numbers<[1], [0], [0], [1], [0, 0, 1, 1], [], []>} : vector<64x4xbf16>, vector<4x4xbf16>, vector<64x4xf32> -> vector<64x4xf32>
    %56 = arith.addf %50, %55 : vector<64x4xf32>
    %57 = vector.extract_strided_slice %4 {offsets = [2, 2, 0], sizes = [8, 8, 4], strides = [1, 1, 1]} : vector<10x10x4xbf16> to vector<8x8x4xbf16>
    %58 = vector.shape_cast %57 : vector<8x8x4xbf16> to vector<64x4xbf16>
    %c8 = arith.constant 8 : index
    %c0_40 = arith.constant 0 : index
    %c0_41 = arith.constant 0 : index
    %59 = vector.load %arg5[%c8, %c0_40, %c0_41] : memref<27x4x4xbf16, #tpu.memory_space<vmem>>, vector<1x4x4xbf16>
    %60 = vector.shape_cast %59 : vector<1x4x4xbf16> to vector<4x4xbf16>
    %cst_42 = arith.constant dense<0.000000e+00> : vector<64x4xf32>
    %61 = tpu.matmul %58, %60, %cst_42 {dimension_numbers = #tpu.dot_dimension_numbers<[1], [0], [0], [1], [0, 0, 1, 1], [], []>} : vector<64x4xbf16>, vector<4x4xbf16>, vector<64x4xf32> -> vector<64x4xf32>
    %62 = arith.addf %56, %61 : vector<64x4xf32>
    %63 = vector.extract_strided_slice %6 {offsets = [0, 0, 0], sizes = [8, 8, 4], strides = [1, 1, 1]} : vector<10x10x4xbf16> to vector<8x8x4xbf16>
    %64 = vector.shape_cast %63 : vector<8x8x4xbf16> to vector<64x4xbf16>
    %c9 = arith.constant 9 : index
    %c0_43 = arith.constant 0 : index
    %c0_44 = arith.constant 0 : index
    %65 = vector.load %arg5[%c9, %c0_43, %c0_44] : memref<27x4x4xbf16, #tpu.memory_space<vmem>>, vector<1x4x4xbf16>
    %66 = vector.shape_cast %65 : vector<1x4x4xbf16> to vector<4x4xbf16>
    %cst_45 = arith.constant dense<0.000000e+00> : vector<64x4xf32>
    %67 = tpu.matmul %64, %66, %cst_45 {dimension_numbers = #tpu.dot_dimension_numbers<[1], [0], [0], [1], [0, 0, 1, 1], [], []>} : vector<64x4xbf16>, vector<4x4xbf16>, vector<64x4xf32> -> vector<64x4xf32>
    %68 = arith.addf %62, %67 : vector<64x4xf32>
    %69 = vector.extract_strided_slice %6 {offsets = [0, 1, 0], sizes = [8, 8, 4], strides = [1, 1, 1]} : vector<10x10x4xbf16> to vector<8x8x4xbf16>
    %70 = vector.shape_cast %69 : vector<8x8x4xbf16> to vector<64x4xbf16>
    %c10 = arith.constant 10 : index
    %c0_46 = arith.constant 0 : index
    %c0_47 = arith.constant 0 : index
    %71 = vector.load %arg5[%c10, %c0_46, %c0_47] : memref<27x4x4xbf16, #tpu.memory_space<vmem>>, vector<1x4x4xbf16>
    %72 = vector.shape_cast %71 : vector<1x4x4xbf16> to vector<4x4xbf16>
    %cst_48 = arith.constant dense<0.000000e+00> : vector<64x4xf32>
    %73 = tpu.matmul %70, %72, %cst_48 {dimension_numbers = #tpu.dot_dimension_numbers<[1], [0], [0], [1], [0, 0, 1, 1], [], []>} : vector<64x4xbf16>, vector<4x4xbf16>, vector<64x4xf32> -> vector<64x4xf32>
    %74 = arith.addf %68, %73 : vector<64x4xf32>
    %75 = vector.extract_strided_slice %6 {offsets = [0, 2, 0], sizes = [8, 8, 4], strides = [1, 1, 1]} : vector<10x10x4xbf16> to vector<8x8x4xbf16>
    %76 = vector.shape_cast %75 : vector<8x8x4xbf16> to vector<64x4xbf16>
    %c11 = arith.constant 11 : index
    %c0_49 = arith.constant 0 : index
    %c0_50 = arith.constant 0 : index
    %77 = vector.load %arg5[%c11, %c0_49, %c0_50] : memref<27x4x4xbf16, #tpu.memory_space<vmem>>, vector<1x4x4xbf16>
    %78 = vector.shape_cast %77 : vector<1x4x4xbf16> to vector<4x4xbf16>
    %cst_51 = arith.constant dense<0.000000e+00> : vector<64x4xf32>
    %79 = tpu.matmul %76, %78, %cst_51 {dimension_numbers = #tpu.dot_dimension_numbers<[1], [0], [0], [1], [0, 0, 1, 1], [], []>} : vector<64x4xbf16>, vector<4x4xbf16>, vector<64x4xf32> -> vector<64x4xf32>
    %80 = arith.addf %74, %79 : vector<64x4xf32>
    %81 = vector.extract_strided_slice %6 {offsets = [1, 0, 0], sizes = [8, 8, 4], strides = [1, 1, 1]} : vector<10x10x4xbf16> to vector<8x8x4xbf16>
    %82 = vector.shape_cast %81 : vector<8x8x4xbf16> to vector<64x4xbf16>
    %c12 = arith.constant 12 : index
    %c0_52 = arith.constant 0 : index
    %c0_53 = arith.constant 0 : index
    %83 = vector.load %arg5[%c12, %c0_52, %c0_53] : memref<27x4x4xbf16, #tpu.memory_space<vmem>>, vector<1x4x4xbf16>
    %84 = vector.shape_cast %83 : vector<1x4x4xbf16> to vector<4x4xbf16>
    %cst_54 = arith.constant dense<0.000000e+00> : vector<64x4xf32>
    %85 = tpu.matmul %82, %84, %cst_54 {dimension_numbers = #tpu.dot_dimension_numbers<[1], [0], [0], [1], [0, 0, 1, 1], [], []>} : vector<64x4xbf16>, vector<4x4xbf16>, vector<64x4xf32> -> vector<64x4xf32>
    %86 = arith.addf %80, %85 : vector<64x4xf32>
    %87 = vector.extract_strided_slice %6 {offsets = [1, 1, 0], sizes = [8, 8, 4], strides = [1, 1, 1]} : vector<10x10x4xbf16> to vector<8x8x4xbf16>
    %88 = vector.shape_cast %87 : vector<8x8x4xbf16> to vector<64x4xbf16>
    %c13 = arith.constant 13 : index
    %c0_55 = arith.constant 0 : index
    %c0_56 = arith.constant 0 : index
    %89 = vector.load %arg5[%c13, %c0_55, %c0_56] : memref<27x4x4xbf16, #tpu.memory_space<vmem>>, vector<1x4x4xbf16>
    %90 = vector.shape_cast %89 : vector<1x4x4xbf16> to vector<4x4xbf16>
    %cst_57 = arith.constant dense<0.000000e+00> : vector<64x4xf32>
    %91 = tpu.matmul %88, %90, %cst_57 {dimension_numbers = #tpu.dot_dimension_numbers<[1], [0], [0], [1], [0, 0, 1, 1], [], []>} : vector<64x4xbf16>, vector<4x4xbf16>, vector<64x4xf32> -> vector<64x4xf32>
    %92 = arith.addf %86, %91 : vector<64x4xf32>
    %93 = vector.extract_strided_slice %6 {offsets = [1, 2, 0], sizes = [8, 8, 4], strides = [1, 1, 1]} : vector<10x10x4xbf16> to vector<8x8x4xbf16>
    %94 = vector.shape_cast %93 : vector<8x8x4xbf16> to vector<64x4xbf16>
    %c14 = arith.constant 14 : index
    %c0_58 = arith.constant 0 : index
    %c0_59 = arith.constant 0 : index
    %95 = vector.load %arg5[%c14, %c0_58, %c0_59] : memref<27x4x4xbf16, #tpu.memory_space<vmem>>, vector<1x4x4xbf16>
    %96 = vector.shape_cast %95 : vector<1x4x4xbf16> to vector<4x4xbf16>
    %cst_60 = arith.constant dense<0.000000e+00> : vector<64x4xf32>
    %97 = tpu.matmul %94, %96, %cst_60 {dimension_numbers = #tpu.dot_dimension_numbers<[1], [0], [0], [1], [0, 0, 1, 1], [], []>} : vector<64x4xbf16>, vector<4x4xbf16>, vector<64x4xf32> -> vector<64x4xf32>
    %98 = arith.addf %92, %97 : vector<64x4xf32>
    %99 = vector.extract_strided_slice %6 {offsets = [2, 0, 0], sizes = [8, 8, 4], strides = [1, 1, 1]} : vector<10x10x4xbf16> to vector<8x8x4xbf16>
    %100 = vector.shape_cast %99 : vector<8x8x4xbf16> to vector<64x4xbf16>
    %c15 = arith.constant 15 : index
    %c0_61 = arith.constant 0 : index
    %c0_62 = arith.constant 0 : index
    %101 = vector.load %arg5[%c15, %c0_61, %c0_62] : memref<27x4x4xbf16, #tpu.memory_space<vmem>>, vector<1x4x4xbf16>
    %102 = vector.shape_cast %101 : vector<1x4x4xbf16> to vector<4x4xbf16>
    %cst_63 = arith.constant dense<0.000000e+00> : vector<64x4xf32>
    %103 = tpu.matmul %100, %102, %cst_63 {dimension_numbers = #tpu.dot_dimension_numbers<[1], [0], [0], [1], [0, 0, 1, 1], [], []>} : vector<64x4xbf16>, vector<4x4xbf16>, vector<64x4xf32> -> vector<64x4xf32>
    %104 = arith.addf %98, %103 : vector<64x4xf32>
    %105 = vector.extract_strided_slice %6 {offsets = [2, 1, 0], sizes = [8, 8, 4], strides = [1, 1, 1]} : vector<10x10x4xbf16> to vector<8x8x4xbf16>
    %106 = vector.shape_cast %105 : vector<8x8x4xbf16> to vector<64x4xbf16>
    %c16 = arith.constant 16 : index
    %c0_64 = arith.constant 0 : index
    %c0_65 = arith.constant 0 : index
    %107 = vector.load %arg5[%c16, %c0_64, %c0_65] : memref<27x4x4xbf16, #tpu.memory_space<vmem>>, vector<1x4x4xbf16>
    %108 = vector.shape_cast %107 : vector<1x4x4xbf16> to vector<4x4xbf16>
    %cst_66 = arith.constant dense<0.000000e+00> : vector<64x4xf32>
    %109 = tpu.matmul %106, %108, %cst_66 {dimension_numbers = #tpu.dot_dimension_numbers<[1], [0], [0], [1], [0, 0, 1, 1], [], []>} : vector<64x4xbf16>, vector<4x4xbf16>, vector<64x4xf32> -> vector<64x4xf32>
    %110 = arith.addf %104, %109 : vector<64x4xf32>
    %111 = vector.extract_strided_slice %6 {offsets = [2, 2, 0], sizes = [8, 8, 4], strides = [1, 1, 1]} : vector<10x10x4xbf16> to vector<8x8x4xbf16>
    %112 = vector.shape_cast %111 : vector<8x8x4xbf16> to vector<64x4xbf16>
    %c17 = arith.constant 17 : index
    %c0_67 = arith.constant 0 : index
    %c0_68 = arith.constant 0 : index
    %113 = vector.load %arg5[%c17, %c0_67, %c0_68] : memref<27x4x4xbf16, #tpu.memory_space<vmem>>, vector<1x4x4xbf16>
    %114 = vector.shape_cast %113 : vector<1x4x4xbf16> to vector<4x4xbf16>
    %cst_69 = arith.constant dense<0.000000e+00> : vector<64x4xf32>
    %115 = tpu.matmul %112, %114, %cst_69 {dimension_numbers = #tpu.dot_dimension_numbers<[1], [0], [0], [1], [0, 0, 1, 1], [], []>} : vector<64x4xbf16>, vector<4x4xbf16>, vector<64x4xf32> -> vector<64x4xf32>
    %116 = arith.addf %110, %115 : vector<64x4xf32>
    %117 = vector.extract_strided_slice %8 {offsets = [0, 0, 0], sizes = [8, 8, 4], strides = [1, 1, 1]} : vector<10x10x4xbf16> to vector<8x8x4xbf16>
    %118 = vector.shape_cast %117 : vector<8x8x4xbf16> to vector<64x4xbf16>
    %c18 = arith.constant 18 : index
    %c0_70 = arith.constant 0 : index
    %c0_71 = arith.constant 0 : index
    %119 = vector.load %arg5[%c18, %c0_70, %c0_71] : memref<27x4x4xbf16, #tpu.memory_space<vmem>>, vector<1x4x4xbf16>
    %120 = vector.shape_cast %119 : vector<1x4x4xbf16> to vector<4x4xbf16>
    %cst_72 = arith.constant dense<0.000000e+00> : vector<64x4xf32>
    %121 = tpu.matmul %118, %120, %cst_72 {dimension_numbers = #tpu.dot_dimension_numbers<[1], [0], [0], [1], [0, 0, 1, 1], [], []>} : vector<64x4xbf16>, vector<4x4xbf16>, vector<64x4xf32> -> vector<64x4xf32>
    %122 = arith.addf %116, %121 : vector<64x4xf32>
    %123 = vector.extract_strided_slice %8 {offsets = [0, 1, 0], sizes = [8, 8, 4], strides = [1, 1, 1]} : vector<10x10x4xbf16> to vector<8x8x4xbf16>
    %124 = vector.shape_cast %123 : vector<8x8x4xbf16> to vector<64x4xbf16>
    %c19 = arith.constant 19 : index
    %c0_73 = arith.constant 0 : index
    %c0_74 = arith.constant 0 : index
    %125 = vector.load %arg5[%c19, %c0_73, %c0_74] : memref<27x4x4xbf16, #tpu.memory_space<vmem>>, vector<1x4x4xbf16>
    %126 = vector.shape_cast %125 : vector<1x4x4xbf16> to vector<4x4xbf16>
    %cst_75 = arith.constant dense<0.000000e+00> : vector<64x4xf32>
    %127 = tpu.matmul %124, %126, %cst_75 {dimension_numbers = #tpu.dot_dimension_numbers<[1], [0], [0], [1], [0, 0, 1, 1], [], []>} : vector<64x4xbf16>, vector<4x4xbf16>, vector<64x4xf32> -> vector<64x4xf32>
    %128 = arith.addf %122, %127 : vector<64x4xf32>
    %129 = vector.extract_strided_slice %8 {offsets = [0, 2, 0], sizes = [8, 8, 4], strides = [1, 1, 1]} : vector<10x10x4xbf16> to vector<8x8x4xbf16>
    %130 = vector.shape_cast %129 : vector<8x8x4xbf16> to vector<64x4xbf16>
    %c20 = arith.constant 20 : index
    %c0_76 = arith.constant 0 : index
    %c0_77 = arith.constant 0 : index
    %131 = vector.load %arg5[%c20, %c0_76, %c0_77] : memref<27x4x4xbf16, #tpu.memory_space<vmem>>, vector<1x4x4xbf16>
    %132 = vector.shape_cast %131 : vector<1x4x4xbf16> to vector<4x4xbf16>
    %cst_78 = arith.constant dense<0.000000e+00> : vector<64x4xf32>
    %133 = tpu.matmul %130, %132, %cst_78 {dimension_numbers = #tpu.dot_dimension_numbers<[1], [0], [0], [1], [0, 0, 1, 1], [], []>} : vector<64x4xbf16>, vector<4x4xbf16>, vector<64x4xf32> -> vector<64x4xf32>
    %134 = arith.addf %128, %133 : vector<64x4xf32>
    %135 = vector.extract_strided_slice %8 {offsets = [1, 0, 0], sizes = [8, 8, 4], strides = [1, 1, 1]} : vector<10x10x4xbf16> to vector<8x8x4xbf16>
    %136 = vector.shape_cast %135 : vector<8x8x4xbf16> to vector<64x4xbf16>
    %c21 = arith.constant 21 : index
    %c0_79 = arith.constant 0 : index
    %c0_80 = arith.constant 0 : index
    %137 = vector.load %arg5[%c21, %c0_79, %c0_80] : memref<27x4x4xbf16, #tpu.memory_space<vmem>>, vector<1x4x4xbf16>
    %138 = vector.shape_cast %137 : vector<1x4x4xbf16> to vector<4x4xbf16>
    %cst_81 = arith.constant dense<0.000000e+00> : vector<64x4xf32>
    %139 = tpu.matmul %136, %138, %cst_81 {dimension_numbers = #tpu.dot_dimension_numbers<[1], [0], [0], [1], [0, 0, 1, 1], [], []>} : vector<64x4xbf16>, vector<4x4xbf16>, vector<64x4xf32> -> vector<64x4xf32>
    %140 = arith.addf %134, %139 : vector<64x4xf32>
    %141 = vector.extract_strided_slice %8 {offsets = [1, 1, 0], sizes = [8, 8, 4], strides = [1, 1, 1]} : vector<10x10x4xbf16> to vector<8x8x4xbf16>
    %142 = vector.shape_cast %141 : vector<8x8x4xbf16> to vector<64x4xbf16>
    %c22 = arith.constant 22 : index
    %c0_82 = arith.constant 0 : index
    %c0_83 = arith.constant 0 : index
    %143 = vector.load %arg5[%c22, %c0_82, %c0_83] : memref<27x4x4xbf16, #tpu.memory_space<vmem>>, vector<1x4x4xbf16>
    %144 = vector.shape_cast %143 : vector<1x4x4xbf16> to vector<4x4xbf16>
    %cst_84 = arith.constant dense<0.000000e+00> : vector<64x4xf32>
    %145 = tpu.matmul %142, %144, %cst_84 {dimension_numbers = #tpu.dot_dimension_numbers<[1], [0], [0], [1], [0, 0, 1, 1], [], []>} : vector<64x4xbf16>, vector<4x4xbf16>, vector<64x4xf32> -> vector<64x4xf32>
    %146 = arith.addf %140, %145 : vector<64x4xf32>
    %147 = vector.extract_strided_slice %8 {offsets = [1, 2, 0], sizes = [8, 8, 4], strides = [1, 1, 1]} : vector<10x10x4xbf16> to vector<8x8x4xbf16>
    %148 = vector.shape_cast %147 : vector<8x8x4xbf16> to vector<64x4xbf16>
    %c23 = arith.constant 23 : index
    %c0_85 = arith.constant 0 : index
    %c0_86 = arith.constant 0 : index
    %149 = vector.load %arg5[%c23, %c0_85, %c0_86] : memref<27x4x4xbf16, #tpu.memory_space<vmem>>, vector<1x4x4xbf16>
    %150 = vector.shape_cast %149 : vector<1x4x4xbf16> to vector<4x4xbf16>
    %cst_87 = arith.constant dense<0.000000e+00> : vector<64x4xf32>
    %151 = tpu.matmul %148, %150, %cst_87 {dimension_numbers = #tpu.dot_dimension_numbers<[1], [0], [0], [1], [0, 0, 1, 1], [], []>} : vector<64x4xbf16>, vector<4x4xbf16>, vector<64x4xf32> -> vector<64x4xf32>
    %152 = arith.addf %146, %151 : vector<64x4xf32>
    %153 = vector.extract_strided_slice %8 {offsets = [2, 0, 0], sizes = [8, 8, 4], strides = [1, 1, 1]} : vector<10x10x4xbf16> to vector<8x8x4xbf16>
    %154 = vector.shape_cast %153 : vector<8x8x4xbf16> to vector<64x4xbf16>
    %c24 = arith.constant 24 : index
    %c0_88 = arith.constant 0 : index
    %c0_89 = arith.constant 0 : index
    %155 = vector.load %arg5[%c24, %c0_88, %c0_89] : memref<27x4x4xbf16, #tpu.memory_space<vmem>>, vector<1x4x4xbf16>
    %156 = vector.shape_cast %155 : vector<1x4x4xbf16> to vector<4x4xbf16>
    %cst_90 = arith.constant dense<0.000000e+00> : vector<64x4xf32>
    %157 = tpu.matmul %154, %156, %cst_90 {dimension_numbers = #tpu.dot_dimension_numbers<[1], [0], [0], [1], [0, 0, 1, 1], [], []>} : vector<64x4xbf16>, vector<4x4xbf16>, vector<64x4xf32> -> vector<64x4xf32>
    %158 = arith.addf %152, %157 : vector<64x4xf32>
    %159 = vector.extract_strided_slice %8 {offsets = [2, 1, 0], sizes = [8, 8, 4], strides = [1, 1, 1]} : vector<10x10x4xbf16> to vector<8x8x4xbf16>
    %160 = vector.shape_cast %159 : vector<8x8x4xbf16> to vector<64x4xbf16>
    %c25 = arith.constant 25 : index
    %c0_91 = arith.constant 0 : index
    %c0_92 = arith.constant 0 : index
    %161 = vector.load %arg5[%c25, %c0_91, %c0_92] : memref<27x4x4xbf16, #tpu.memory_space<vmem>>, vector<1x4x4xbf16>
    %162 = vector.shape_cast %161 : vector<1x4x4xbf16> to vector<4x4xbf16>
    %cst_93 = arith.constant dense<0.000000e+00> : vector<64x4xf32>
    %163 = tpu.matmul %160, %162, %cst_93 {dimension_numbers = #tpu.dot_dimension_numbers<[1], [0], [0], [1], [0, 0, 1, 1], [], []>} : vector<64x4xbf16>, vector<4x4xbf16>, vector<64x4xf32> -> vector<64x4xf32>
    %164 = arith.addf %158, %163 : vector<64x4xf32>
    %165 = vector.extract_strided_slice %8 {offsets = [2, 2, 0], sizes = [8, 8, 4], strides = [1, 1, 1]} : vector<10x10x4xbf16> to vector<8x8x4xbf16>
    %166 = vector.shape_cast %165 : vector<8x8x4xbf16> to vector<64x4xbf16>
    %c26 = arith.constant 26 : index
    %c0_94 = arith.constant 0 : index
    %c0_95 = arith.constant 0 : index
    %167 = vector.load %arg5[%c26, %c0_94, %c0_95] : memref<27x4x4xbf16, #tpu.memory_space<vmem>>, vector<1x4x4xbf16>
    %168 = vector.shape_cast %167 : vector<1x4x4xbf16> to vector<4x4xbf16>
    %cst_96 = arith.constant dense<0.000000e+00> : vector<64x4xf32>
    %169 = tpu.matmul %166, %168, %cst_96 {dimension_numbers = #tpu.dot_dimension_numbers<[1], [0], [0], [1], [0, 0, 1, 1], [], []>} : vector<64x4xbf16>, vector<4x4xbf16>, vector<64x4xf32> -> vector<64x4xf32>
    %170 = arith.addf %164, %169 : vector<64x4xf32>
    %c0_97 = arith.constant 0 : index
    %c0_98 = arith.constant 0 : index
    %c0_99 = arith.constant 0 : index
    %c0_100 = arith.constant 0 : index
    %c0_101 = arith.constant 0 : index
    %171 = vector.load %arg7[%c0_97, %c0_98, %c0_99, %c0_100, %c0_101] : memref<1x1x8x8x4xf32, #tpu.memory_space<vmem>>, vector<1x1x8x8x4xf32>
    %172 = vector.shape_cast %171 : vector<1x1x8x8x4xf32> to vector<8x8x4xf32>
    %173 = vector.shape_cast %172 : vector<8x8x4xf32> to vector<64x4xf32>
    %174 = arith.addf %170, %173 : vector<64x4xf32>
    %cst_102 = arith.constant 0.000000e+00 : f32
    %175 = vector.broadcast %cst_102 : f32 to vector<64x4xf32>
    %176 = arith.maximumf %174, %175 : vector<64x4xf32>
    %177 = vector.shape_cast %176 : vector<64x4xf32> to vector<1x1x8x8x4xf32>
    %c0_103 = arith.constant 0 : index
    %c0_104 = arith.constant 0 : index
    %c0_105 = arith.constant 0 : index
    %c0_106 = arith.constant 0 : index
    %c0_107 = arith.constant 0 : index
    %178 = vector.load %arg8[%c0_103, %c0_104, %c0_105, %c0_106, %c0_107] : memref<1x1x8x8x4xf32, #tpu.memory_space<vmem>>, vector<1x1x8x8x4xf32>
    tpu.vector_store %arg8[%c0_103, %c0_104, %c0_105, %c0_106, %c0_107], %177 {strides = array<i32>} : memref<1x1x8x8x4xf32, #tpu.memory_space<vmem>>, vector<1x1x8x8x4xf32>,
    return
  }
  func.func @transform_0(%arg0: i32, %arg1: i32) -> (i32, i32, i32, i32, i32) {
    %c0_i32 = arith.constant 0 : i32
    %0 = arith.addi %arg1, %c0_i32 : i32
    %c0_i32_0 = arith.constant 0 : i32
    %c0_i32_1 = arith.constant 0 : i32
    %c0_i32_2 = arith.constant 0 : i32
    %c0_i32_3 = arith.constant 0 : i32
    return %arg0, %0, %c0_i32_0, %c0_i32_1, %c0_i32_2 : i32, i32, i32, i32, i32
  }
  func.func @transform_1(%arg0: i32, %arg1: i32) -> (i32, i32, i32, i32, i32) {
    %c1_i32 = arith.constant 1 : i32
    %0 = arith.addi %arg1, %c1_i32 : i32
    %c0_i32 = arith.constant 0 : i32
    %c0_i32_0 = arith.constant 0 : i32
    %c0_i32_1 = arith.constant 0 : i32
    %c0_i32_2 = arith.constant 0 : i32
    return %arg0, %0, %c0_i32, %c0_i32_0, %c0_i32_1 : i32, i32, i32, i32, i32
  }
  func.func @transform_2(%arg0: i32, %arg1: i32) -> (i32, i32, i32, i32, i32) {
    %c2_i32 = arith.constant 2 : i32
    %0 = arith.addi %arg1, %c2_i32 : i32
    %c0_i32 = arith.constant 0 : i32
    %c0_i32_0 = arith.constant 0 : i32
    %c0_i32_1 = arith.constant 0 : i32
    %c0_i32_2 = arith.constant 0 : i32
    return %arg0, %0, %c0_i32, %c0_i32_0, %c0_i32_1 : i32, i32, i32, i32, i32
  }
  func.func @transform_3(%arg0: i32, %arg1: i32) -> (i32, i32, i32) {
    %c0_i32 = arith.constant 0 : i32
    %c0_i32_0 = arith.constant 0 : i32
    %c0_i32_1 = arith.constant 0 : i32
    %c0_i32_2 = arith.constant 0 : i32
    return %c0_i32, %c0_i32_0, %c0_i32_1 : i32, i32, i32
  }
  func.func @transform_4(%arg0: i32, %arg1: i32) -> (i32, i32) {
    %c0_i32 = arith.constant 0 : i32
    %c0_i32_0 = arith.constant 0 : i32
    %c0_i32_1 = arith.constant 0 : i32
    return %c0_i32, %c0_i32_0 : i32, i32
  }
  func.func @transform_5(%arg0: i32, %arg1: i32) -> (i32, i32, i32, i32, i32) {
    %c0_i32 = arith.constant 0 : i32
    %c0_i32_0 = arith.constant 0 : i32
    %c0_i32_1 = arith.constant 0 : i32
    %c0_i32_2 = arith.constant 0 : i32
    return %arg0, %arg1, %c0_i32, %c0_i32_0, %c0_i32_1 : i32, i32, i32, i32, i32
  }
  func.func @transform_6(%arg0: i32, %arg1: i32) -> (i32, i32, i32, i32, i32) {
    %c0_i32 = arith.constant 0 : i32
    %c0_i32_0 = arith.constant 0 : i32
    %c0_i32_1 = arith.constant 0 : i32
    %c0_i32_2 = arith.constant 0 : i32
    return %arg0, %arg1, %c0_i32, %c0_i32_0, %c0_i32_1 : i32, i32, i32, i32, i32
  }
}

</mosaic_0001>

<bundles_post_ra>
// kernel: basic_block_forward.2
= control target key start
LH: loop header
LB: loop body
LE: loop exit
PB: predicated region body
PF: predicated region fallthrough
CT: control target
= control target key end

     0   :  { %s4759_s18 = smov 0   ;;  %s4761_s19 = smov 0   ;;  %s5964_s0 = inlined_call_operand.vmem [shape: bf16[2,6,10,10,4], index: 0, kind: input, shape index: {}, may-alias: {0,1,2}]   ;;  %s5965_s1 = inlined_call_operand.vmem [shape: bf16[2,6,10,10,4], index: 1, kind: input, shape index: {}, may-alias: {0,1,2}]   ;;  %s5966_s2 = inlined_call_operand.vmem [shape: bf16[2,6,10,10,4], index: 2, kind: input, shape index: {}, may-alias: {0,1,2}]   ;;  %s5967_s3 = inlined_call_operand.vmem [shape: bf16[27,4,4], index: 3, kind: input, shape index: {}]   ;;  %s5968_s4 = inlined_call_operand.vmem [shape: f32[1,4], index: 4, kind: input, shape index: {}]   ;;  %s5969_s5 = inlined_call_operand.vmem [shape: bf16[2,4,8,8,4], index: 5, kind: output, shape index: {}]  }
   0x1   :  { %s4763_s20 = smov 0   ;;  %s4765_s21 = smov 0  }
   0x2   :  { %s4767_s22 = smov 0  }
   0x3 LB: > { %s24_s23 = sadd.s32 1, %s4719_s20  ;;  %s27_s24 = sadd.s32 1, %s4723_s21  ;;  %s4727_s22 = sphi %s4767_s22, %s15_s22   ;;  %s4723_s21 = sphi %s4765_s21, %s6033_s21   ;;  %s4719_s20 = sphi %s4763_s20, %s6032_s20   ;;  %s4715_s19 = sphi %s4761_s19, %s6031_s19   ;;  %s4711_s18 = sphi %s4759_s18, %s6030_s18  }
   0x4   : > { %p25_p0 = scmp.ge.s32.totalorder %s24_s23, 4  ;;  %p3704_p1 = scmp.ge.s32.totalorder %s4727_s22, 1 }
   0x5   : > { %p247_p2 = scmp.lt.s32.totalorder %s4727_s22, 9 }
   0x6   : > { %s6035_s23 = smov (%p25_p0, %s24_s23), 0  ;;  %s6037_s24 = smov (!%p25_p0, %s27_s24), %s4723_s21 }
   0x7   : > { %p248_p3 = pnand %p3704_p1, %p247_p2  ;;  %p29_p4 = scmp.ge.s32.totalorder %s6037_s24, 2 }
   0x9   : > { %s6039_s24 = smov (%p29_p4, %s6037_s24), 0  ;;  %251 = sbr.rel (%p248_p3) target bundleno = 486 (0x1e6), region = 40 }
  0x10   : > { %v411_v0 = vld [vmem:[%s5967_s3] sm:$0x3]  ;;  %vm445_vm0 = vcmask 1041408   ;;  %p303_p5 = scmp.lt.s32.totalorder %s4715_s19, 1  ;;  %p305_p6 = scmp.lt.s32.totalorder %s4711_s18, 5  ;;  %vm432_vm1 = vcmask 31744  }
  0x11   : > { %4582 = vmatprep.subr.msk.bf16.mxu1 %vm445_vm0, %v411_v0  ;;  %v447_v1 = vsel %vm445_vm0, %v411_v0, 0  ;;  %v3837_v2 = vld [vmem:[%s5967_s3 + $0x1a] sm:$0x3]  ;;  %v3720_v3 = vld [vmem:[%s5967_s3 + $0x2] sm:$0x3]  ;;  %s312_s6 = sadd.s32 1, %s4711_s18 }
  0x12   : > { %4095 = vmatpush3.bf16.msra.mxu1 %v447_v1  ;;  %s6041_s19 = smov (!%p303_p5, %s4715_s19), 1  ;;  %4595 = vmatprep.subr.msk.bf16.mxu0 %vm445_vm0, %v3837_v2  ;;  %v4808_v4 = vsel %vm445_vm0, %v3837_v2, 0  ;;  %v3847_v5 = vld [vmem:[%s5967_s3 + $0x1c] sm:$0x3]  ;;  %p315_p7 = scmp.lt.s32.totalorder %s312_s6, 5  ;;  %v664_v12 = vsel %vm445_vm0, %v3720_v3, 0 }
  0x13   : > { %5986 = vst [vmem:[#allocation2_spill] sm:$0xff] %v4808_v4  ;;  %s306_s7 = scalar_select %p305_p6, %s4711_s18, 5  ;;  %4225 = vmatpush3.bf16.msra.mxu0 %v4808_v4  ;;  %4583 = vmatprep.subr.msk.bf16.mxu1 %vm445_vm0, %v3720_v3  ;;  %v4849_v13 = vld [vmem:[%s5967_s3 + $0x4] sm:$0x3]  ;;  %vm522_vm2 = vsmask.f32 3328 }
  0x14   : > { %s4817_s10 = smul.u32 120, %s6041_s19  ;;  %4597 = vmatprep.subr.msk.bf16.mxu0 %vm445_vm0, %v3847_v5  ;;  %s6043_s6 = smov (!%p315_p7, %s312_s6), 5  ;;  %vm523_vm3 = vsmask.f32 7440  ;;  %v4888_v29 = vsel %vm445_vm0, %v3847_v5, 0  ;;  %vm747_vm4 = vcmask 1042432  }
  0x15   : > { %s4610_s11 = smul.u32 20, %s306_s7  ;;  %vm748_vm5 = vcmask 1046532   ;;  %vm4951_vm6 = vmor %vm522_vm2, %vm523_vm3  ;;  %p336_p9 = scmp.lt.s32.totalorder %s4711_s18, 3  ;;  %vm3554_vm8 = vcmask 27648  }
  0x16   : > { %s4612_s14 = smul.u32 20, %s6043_s6  ;;  %vm5016_vm7 = vmor %vm747_vm4, %vm748_vm5 }
  0x17   : > { %s309_s12 = sadd.s32 %s4817_s10, %s4610_s11 }
  0x18   : > { %s3705_s13 = sshll.u32 %s309_s12, 2  ;;  %s319_s25 = sadd.s32 %s4612_s14, %s4817_s10 }
  0x19   : > { %s4824_s17 = scalar_lea.vmem %s5964_s0, %s3705_s13  ;;  %s3706_s26 = sshll.u32 %s319_s25, 2 }
  0x1a   : > { %v4827_v6 = vld [vmem:[%s4824_s17] sm:$0xf]  ;;  %v4830_v7 = vld [vmem:[%s4824_s17 + $0x8] sm:$0xf]  ;;  %v4833_v8 = vld [vmem:[%s4824_s17 + $0x10] sm:$0xf]  ;;  %s4874_s6 = scalar_lea.vmem %s5965_s1, %s3706_s26 }
  0x1b   : > { %v3712_v9 = vcombine.low %v4827_v6, %v4830_v7  ;;  %v4839_v10 = vld [vmem:[%s4824_s17 + $0x18] sm:$0xf]  ;;  %v526_v14 = vshrl.u32 %v4827_v6, 16  ;;  %v4854_v15 = vld [vmem:[%s4824_s17 + $0x20] sm:$0xf]  ;;  %v529_v17 = vshll.u32 %v4827_v6, 16 }
  0x1c   : > { %v4843_v11 = vcombine.low %v4833_v8, %v4839_v10  ;;  %v4857_v16 = vld [vmem:[%s4824_s17 + $0x28] sm:$0xf]  ;;  %v540_v18 = vshrl.u32 %v4830_v7, 16  ;;  %v543_v19 = vshll.u32 %v4830_v7, 16  ;;  %v554_v20 = vshrl.u32 %v4833_v8, 16  ;;  %s323_s26 = sadd.s32 2, %s4711_s18 }
  0x1d   : > { %4096 = vmatprep.mubr.msk.bf16.mxu1 %vm432_vm1, %v3712_v9  ;;  %v4866_v21 = vld [vmem:[%s4824_s17 + $0x30] sm:$0xf]  ;;  %v4869_v22 = vld [vmem:[%s4824_s17 + $0x38] sm:$0xf]  ;;  %v557_v23 = vshll.u32 %v4833_v8, 16  ;;  %v4879_v24 = vcombine.low %v4854_v15, %v4857_v16  ;;  %v4884_v26 = vrot.slane %v526_v14, 4 }
  0x1e   : > { %5987 = vst [vmem:[#allocation3_spill] sm:$0xff] %v4843_v11  ;;  %4097 = vmatmul.mubr.msk.bf16.vlgmr.msra.gmra.mrb[0].mxu1 %vm432_vm1, %v4843_v11  ;;  %v371_v25 = vld [vmem:[%s4874_s6] sm:$0xf]  ;;  %v568_v27 = vshrl.u32 %v4839_v10, 16  ;;  %v4894_v30 = vcombine.low %v4866_v21, %v4869_v22  ;;  %v372_v31 = vld [vmem:[%s4874_s6 + $0x4] sm:$0x1] }
  0x1f   : > { %4105 = vmatpush3.bf16.msra.mxu1 %v664_v12  ;;  %5988 = vst [vmem:[#allocation4_spill] sm:$0xff] %v4879_v24  ;;  %v1569_v28 = vshrl.u32 %v371_v25, 16  ;;  %4100 = vmatprep.mubr.msk.bf16.mxu1 %vm432_vm1, %v4879_v24  ;;  %v4898_v32 = vld [vmem:[%s4874_s6 + $0x8] sm:$0xf]  ;;  %v4901_v33 = vld [vmem:[%s4874_s6 + $0xc] sm:$0x1] }
  0x20   : > { %4584 = vmatprep.subr.msk.bf16.mxu1 %vm445_vm0, %v4849_v13  ;;  %5989 = vst [vmem:[#allocation5_spill] sm:$0xff] %v4894_v30  ;;  %v4905_v35 = vrot.slane %v529_v17, 5  ;;  %v4907_v36 = vrot.slane %v540_v18, 4  ;;  %v4909_v37 = vrot.slane %v543_v19, 5  ;;  %v4911_v38 = vrot.slane %v554_v20, 4  ;;  %p326_p8 = scmp.lt.s32.totalorder %s323_s26, 5 }
  0x21   : > { %v4914_v39 = vld [vmem:[%s4874_s6 + $0x10] sm:$0xf]  ;;  %v4916_v40 = vrot.slane %v557_v23, 5  ;;  %v571_v41 = vshll.u32 %v4839_v10, 16  ;;  %v4920_v42 = vld [vmem:[%s4874_s6 + $0x14] sm:$0x1] }
  0x22   : > { %v1571_v43 = vrot.slane %v1569_v28, 4  ;;  %v1572_v44 = vshll.u32 %v371_v25, 16  ;;  %v4923_v45 = vld [vmem:[%s4874_s6 + $0x18] sm:$0xf]  ;;  %v1578_v46 = vshll.u32 %v372_v31, 16  ;;  %v1583_v47 = vshrl.u32 %v4898_v32, 16 }
  0x23   : > { %v1586_v48 = vshll.u32 %v4898_v32, 16  ;;  %v1592_v49 = vshll.u32 %v4901_v33, 16  ;;  %v4928_v50 = vrot.slane %v568_v27, 4  ;;  %v4933_v51 = vld [vmem:[%s4874_s6 + $0x1c] sm:$0x1]  ;;  %v1597_v53 = vshrl.u32 %v4914_v39, 16 }
  0x24   : > { %v1574_v52 = vrot.slane %v1572_v44, 5  ;;  %v1600_v54 = vshll.u32 %v4914_v39, 16  ;;  %v4938_v55 = vld [vmem:[%s4874_s6 + $0x20] sm:$0xf]  ;;  %v1580_v56 = vrot.slane %v1578_v46, 5  ;;  %v1585_v57 = vrot.slane %v1583_v47, 4 }
  0x25   : > { %v1588_v58 = vrot.slane %v1586_v48, 5  ;;  %v1606_v59 = vshll.u32 %v4920_v42, 16  ;;  %v1594_v61 = vrot.slane %v1592_v49, 5  ;;  %v1599_v62 = vrot.slane %v1597_v53, 4  ;;  %v4945_v5 = vld [vmem:[%s4874_s6 + $0x24] sm:$0x1] }
  0x26   : > { %4101 = vmatmul.mubr.msk.bf16.gmra.mrb[4].mxu1 %vm432_vm1, %v4894_v30  ;;  %v1575_v60 = vor.u32 %v1574_v52, %v1571_v43  ;;  %v1602_v63 = vrot.slane %v1600_v54, 5  ;;  %v1611_v1 = vshrl.u32 %v4923_v45, 16  ;;  %v1614_v2 = vshll.u32 %v4923_v45, 16  ;;  %v3856_v27 = vld [vmem:[%s5967_s3 + $0x1e] sm:$0x3]  ;;  %s6045_s26 = smov (!%p326_p8, %s323_s26), 5 }
  0x27   : > { %v1589_v0 = vor.u32 %v1588_v58, %v1585_v57  ;;  %v1620_v3 = vshll.u32 %v4933_v51, 16  ;;  %v1625_v14 = vshrl.u32 %v4938_v55, 16  ;;  %v1628_v17 = vshll.u32 %v4938_v55, 16  ;;  %v5125_v34 = vld [vmem:[%s4874_s6 + $0x34] sm:$0x1]  ;;  %s4613_s7 = smul.u32 20, %s6045_s26 }
  0x28   : > { %v1576_v9 = vrot.slane %v1575_v60, 4  ;;  %v1603_v12 = vor.u32 %v1602_v63, %v1599_v62  ;;  %v1608_v20 = vrot.slane %v1606_v59, 5  ;;  %v1613_v23 = vrot.slane %v1611_v1, 4  ;;  %s6047_s18 = smov (!%p336_p9, %s4711_s18), 3 }
  0x29   : > { %v1590_v19 = vrot.slane %v1589_v0, 4  ;;  %v1616_v25 = vrot.slane %v1614_v2, 5  ;;  %v1627_v43 = vrot.slane %v1625_v14, 4  ;;  %v1630_v44 = vrot.slane %v1628_v17, 5  ;;  %s330_s8 = sadd.s32 %s4613_s7, %s4817_s10 }
  0x2a   : > { %v1581_v28 = vsel %vm4951_vm6, %v1576_v9, %v1580_v56  ;;  %v1604_v31 = vrot.slane %v1603_v12, 4  ;;  %v573_v46 = vrot.slane %v571_v41, 5  ;;  %v1622_v48 = vrot.slane %v1620_v3, 5  ;;  %s3707_s9 = sshll.u32 %s330_s8, 2 }
  0x2b   : > { %v1617_v47 = vor.u32 %v1616_v25, %v1613_v23  ;;  %v1634_v49 = vshll.u32 %v4945_v5, 16  ;;  %v532_v52 = vor.u32 %v4905_v35, %v4884_v26  ;;  %v1595_v53 = vsel %vm4951_vm6, %v1590_v19, %v1594_v61  ;;  %v4981_v61 = vld [vmem:[%s4824_s17 + $0x4] sm:$0x1]  ;;  %s5413_s12 = scalar_lea.vmem %s5966_s2, %s3707_s9 }
  0x2c   : > { %v1631_v54 = vor.u32 %v1630_v44, %v1627_v43  ;;  %v4966_v56 = vsel %vm445_vm0, %v3856_v27, 0  ;;  %v4968_v59 = vcombine.low %v1581_v28, %v1595_v53  ;;  %v4972_v41 = vsel %vm445_vm0, %v4849_v13, 0 }
  0x2d   : > { %v1618_v57 = vrot.slane %v1617_v47, 4  ;;  %v1636_v58 = vrot.slane %v1634_v49, 5  ;;  %v560_v26 = vor.u32 %v4916_v40, %v4911_v38  ;;  %v4978_v35 = vsel %vm4951_vm6, %v1604_v31, %v1608_v20  ;;  %v4993_v38 = vld [vmem:[%s4824_s17 + $0xc] sm:$0x1]  ;;  %v4996_v40 = vld [vmem:[%s4824_s17 + $0x14] sm:$0x1] }
  0x2e   : > { %5992 = vst [vmem:[#allocation6_spill] sm:$0xff] %v4968_v59  ;;  %v1632_v60 = vrot.slane %v1631_v54, 4  ;;  %v546_v62 = vor.u32 %v4909_v37, %v4907_v36  ;;  %v574_v0 = vor.u32 %v573_v46, %v4928_v50  ;;  %v533_v2 = vrot.slane %v532_v52, 4  ;;  %v5005_v50 = vld [vmem:[%s4824_s17 + $0x1c] sm:$0x1] }
  0x2f   : > { %v4990_v1 = vsel %vm4951_vm6, %v1618_v57, %v1622_v48  ;;  %v1796_v37 = vrot.slane %v4901_v33, 5  ;;  %v1800_v9 = vrot.slane %v4920_v42, 5  ;;  %v3838_v12 = vcombine.low %v1595_v53, %v4978_v35  ;;  %v5049_v57 = vld [vmem:[%s4824_s17 + $0x24] sm:$0x1]  ;;  %v3711_v33 = vld [vmem:[%s5968_s4] ss:$0 sm:$0xff] }
  0x30   : > { %v5001_v36 = vsel %vm4951_vm6, %v1632_v60, %v1636_v58  ;;  %v535_v17 = vshll.u32 %v4981_v61, 16  ;;  %v547_v19 = vrot.slane %v546_v62, 4  ;;  %v549_v20 = vshll.u32 %v4993_v38, 16 }
  0x31   : > { %v3839_v14 = vcombine.low %v4990_v1, %v5001_v36  ;;  %v561_v23 = vrot.slane %v560_v26, 4  ;;  %v563_v25 = vshll.u32 %v4996_v40, 16  ;;  %4226 = vmatprep.mubr.msk.bf16.mxu0 %vm432_vm1, %v3838_v12  ;;  %v575_v28 = vrot.slane %v574_v0, 4  ;;  %v5060_v0 = vld [vmem:[%s4824_s17 + $0x2c] sm:$0x1] }
  0x32   : > { %v537_v42 = vrot.slane %v535_v17, 5  ;;  %v577_v31 = vshll.u32 %v5005_v50, 16  ;;  %v3812_v43 = vrot.slane %v4898_v32, 9  ;;  %v1804_v44 = vrot.slane %v4933_v51, 5  ;;  %v5075_v12 = vld [vmem:[%s5967_s3 + $0x6] sm:$0x3] }
  0x33   : > { %4227 = vmatmul.mubr.msk.bf16.vlgmr.msra.gmra.mrb[0].mxu0 %vm432_vm1, %v3839_v14  ;;  %v551_v46 = vrot.slane %v549_v20, 5  ;;  %v565_v47 = vrot.slane %v563_v25, 5  ;;  %v3813_v48 = vrot.slane %v4914_v39, 9  ;;  %v1808_v49 = vrot.slane %v4945_v5, 5 }
  0x34   : > { %4235 = vmatpush3.bf16.msra.mxu0 %v4888_v29  ;;  %v538_v52 = vsel %vm4951_vm6, %v533_v2, %v537_v42  ;;  %v579_v53 = vrot.slane %v577_v31, 5  ;;  %v5032_v32 = vsel %vm5016_vm7, %v3812_v43, %v1796_v37  ;;  %v3814_v29 = vrot.slane %v4923_v45, 9 }
  0x35   : > { %5995 = vst [vmem:[#allocation7_spill] sm:$0xff] %v5032_v32  ;;  %v5036_v51 = vsel %vm4951_vm6, %v547_v19, %v551_v46  ;;  %v5040_v54 = vsel %vm4951_vm6, %v561_v23, %v565_v47  ;;  %v5044_v5 = vsel %vm5016_vm7, %v3813_v48, %v1800_v9  ;;  %4598 = vmatprep.subr.msk.bf16.mxu0 %vm445_vm0, %v3856_v27  ;;  %v3815_v62 = vrot.slane %v4938_v55, 9  ;;  %v5087_v23 = vld [vmem:[%s4824_s17 + $0x34] sm:$0x1]  ;;  %v5095_v47 = vld [vmem:[%s4824_s17 + $0x3c] sm:$0x1] }
  0x36   : > { %v3721_v58 = vcombine.low %v538_v52, %v5036_v51  ;;  %v5054_v26 = vsel %vm4951_vm6, %v575_v28, %v579_v53  ;;  %v3848_v60 = vcombine.low %v5032_v32, %v5044_v5  ;;  %v5068_v2 = vsel %vm5016_vm7, %v3814_v29, %v1804_v44 }
  0x37   : > { %v5064_v27 = vcombine.low %v5040_v54, %v5054_v26  ;;  %v582_v37 = vshrl.u32 %v4854_v15, 16  ;;  %v585_v9 = vshll.u32 %v4854_v15, 16  ;;  %v5081_v14 = vsel %vm5016_vm7, %v3815_v62, %v1808_v49  ;;  %v5100_v49 = vld [vmem:[%s4874_s6 + $0x28] sm:$0xf] }
  0x38   : > { %4106 = vmatprep.mubr.msk.bf16.mxu1 %vm432_vm1, %v3721_v58  ;;  %4236 = vmatprep.mubr.msk.bf16.mxu0 %vm432_vm1, %v3848_v60  ;;  %v591_v17 = vshll.u32 %v5049_v57, 16  ;;  %v596_v19 = vshrl.u32 %v4857_v16, 16  ;;  %v599_v20 = vshll.u32 %v4857_v16, 16  ;;  %v3849_v25 = vcombine.low %v5068_v2, %v5081_v14  ;;  %v5107_v60 = vld [vmem:[%s4874_s6 + $0x2c] sm:$0x1] }
  0x39   : > { %5996 = vst [vmem:[#allocation8_spill] sm:$0xff] %v5064_v27  ;;  %4107 = vmatmul.mubr.msk.bf16.vlgmr.msra.gmra.mrb[0].mxu1 %vm432_vm1, %v5064_v27  ;;  %v584_v42 = vrot.slane %v582_v37, 4  ;;  %v587_v28 = vrot.slane %v585_v9, 5  ;;  %v605_v31 = vshll.u32 %v5060_v0, 16  ;;  %v610_v48 = vshrl.u32 %v4866_v21, 16 }
  0x3a   : > { %v593_v43 = vrot.slane %v591_v17, 5  ;;  %v598_v44 = vrot.slane %v596_v19, 4  ;;  %v601_v46 = vrot.slane %v599_v20, 5  ;;  %4115 = vmatpush3.bf16.msra.mxu1 %v4972_v41  ;;  %v613_v29 = vshll.u32 %v4866_v21, 16  ;;  %v5114_v17 = vld [vmem:[%s5967_s3 + $0x20] sm:$0x3] }
  0x3b   : > { %v588_v52 = vor.u32 %v587_v28, %v584_v42  ;;  %v607_v53 = vrot.slane %v605_v31, 5  ;;  %v619_v58 = vshll.u32 %v5087_v23, 16  ;;  %4585 = vmatprep.subr.msk.bf16.mxu1 %vm445_vm0, %v5075_v12  ;;  %v612_v37 = vrot.slane %v610_v48, 4  ;;  %v5118_v28 = vld [vmem:[%s4874_s6 + $0x30] sm:$0xf] }
  0x3c   : > { %v602_v62 = vor.u32 %v601_v46, %v598_v44  ;;  %v624_v9 = vshrl.u32 %v4869_v22, 16  ;;  %v627_v41 = vshll.u32 %v4869_v22, 16  ;;  %v615_v20 = vrot.slane %v613_v29, 5  ;;  %5997 = vst [vmem:[#allocation9_spill] sm:$0xff] %v5118_v28 }
  0x3d   : > { %v589_v19 = vrot.slane %v588_v52, 4  ;;  %v633_v42 = vshll.u32 %v5095_v47, 16  ;;  %v5122_v31 = vcombine.low %v4914_v39, %v4923_v45  ;;  %v3816_v3 = vrot.slane %v5100_v49, 9  ;;  %v5135_v45 = vld [vmem:[%s4874_s6 + $0x38] sm:$0xf] }
  0x3e   : > { %v603_v44 = vrot.slane %v602_v62, 4  ;;  %v626_v46 = vrot.slane %v624_v9, 4  ;;  %v629_v48 = vrot.slane %v627_v41, 5  ;;  %v616_v29 = vor.u32 %v615_v20, %v612_v37  ;;  %5999 = vst [vmem:[#allocation11_spill] sm:$0xff] %v5135_v45  ;;  %v5138_v62 = vld [vmem:[%s4874_s6 + $0x3c] sm:$0x1] }
  0x3f   : > { %5998 = vst [vmem:[#allocation10_spill] sm:$0xff] %v5122_v31  ;;  %4237 = vmatmul.mubr.msk.bf16.vlgmr.msra.gmra.mrb[0].mxu0 %vm432_vm1, %v3849_v25  ;;  %v5131_v52 = vsel %vm4951_vm6, %v589_v19, %v593_v43  ;;  %v621_v13 = vrot.slane %v619_v58, 5  ;;  %v1812_v39 = vrot.slane %v5107_v60, 5  ;;  %v635_v25 = vrot.slane %v633_v42, 5  ;;  %v5147_v43 = vld [vmem:[%s4874_s6 + $0x40] sm:$0xf] }
  0x40   : > { %4245 = vmatpush3.bf16.msra.mxu0 %v4966_v56  ;;  %v5143_v9 = vsel %vm4951_vm6, %v603_v44, %v607_v53  ;;  %v630_v41 = vor.u32 %v629_v48, %v626_v46  ;;  %v3817_v63 = vrot.slane %v5118_v28, 9  ;;  %v5150_v37 = vld [vmem:[%s4874_s6 + $0x44] sm:$0x1]  ;;  %v617_v19 = vrot.slane %v616_v29, 4 }
  0x41   : > { %v5154_v58 = vcombine.low %v5131_v52, %v5143_v9  ;;  %v5158_v56 = vsel %vm5016_vm7, %v3816_v3, %v1812_v39  ;;  %v1816_v53 = vrot.slane %v5125_v34, 5  ;;  %4599 = vmatprep.subr.msk.bf16.mxu0 %vm445_vm0, %v5114_v17  ;;  %v1639_v20 = vshrl.u32 %v5100_v49, 16 }
  0x42   : > { %v631_v42 = vrot.slane %v630_v41, 4  ;;  %v3818_v44 = vrot.slane %v5135_v45, 9  ;;  %v1820_v46 = vrot.slane %v5138_v62, 5  ;;  %v5170_v48 = vsel %vm4951_vm6, %v617_v19, %v621_v13 }
  0x43   : > { %6000 = vst [vmem:[#allocation12_spill] sm:$0xff] %v5154_v58  ;;  %4110 = vmatprep.mubr.msk.bf16.mxu1 %vm432_vm1, %v5154_v58  ;;  %v5174_v3 = vsel %vm5016_vm7, %v3817_v63, %v1816_v53  ;;  %v3846_v29 = vrot.slane %v5147_v43, 9  ;;  %v2132_v39 = vrot.slane %v5150_v37, 5  ;;  %v752_v13 = vrot.slane %v4981_v61, 5 }
  0x44   : > { %v5180_v41 = vsel %vm4951_vm6, %v631_v42, %v635_v25  ;;  %v3850_v4 = vcombine.low %v5158_v56, %v5174_v3  ;;  %v5186_v32 = vsel %vm5016_vm7, %v3818_v44, %v1820_v46  ;;  %v3730_v25 = vrot.slane %v4830_v7, 9 }
  0x45   : > { %v5191_v63 = vcombine.low %v5170_v48, %v5180_v41  ;;  %v5195_v19 = vsel %vm5016_vm7, %v3846_v29, %v2132_v39  ;;  %v756_v53 = vrot.slane %v4993_v38, 5  ;;  %v6002_v44 = vrot.slane %v4827_v6, 9 }
  0x46   : > { %4240 = vmatprep.mubr.msk.bf16.mxu0 %vm432_vm1, %v3850_v4  ;;  %v3851_v42 = vcombine.low %v5186_v32, %v5195_v19  ;;  %v760_v46 = vrot.slane %v4996_v40, 5  ;;  %v764_v59 = vrot.slane %v5005_v50, 5  ;;  %v1642_v29 = vshll.u32 %v5100_v49, 16 }
  0x47   : > { %6001 = vst [vmem:[#allocation13_spill] sm:$0xff] %v5191_v63  ;;  %v753_v61 = vsel %vm5016_vm7, %v6002_v44, %v752_v13  ;;  %4111 = vmatmul.mubr.msk.bf16.gmra.mrb[4].mxu1 %vm432_vm1, %v5191_v63  ;;  %v5213_v4 = vsel %vm5016_vm7, %v3730_v25, %v756_v53  ;;  %v3733_v38 = vrot.slane %v4854_v15, 9  ;;  %v768_v6 = vrot.slane %v5049_v57, 5 }
  0x48   : > { %4241 = vmatmul.mubr.msk.bf16.gmra.mrb[4].mxu0 %vm432_vm1, %v3851_v42  ;;  %v3738_v40 = vcombine.low %v753_v61, %v5213_v4  ;;  %v6003_v50 = vrot.slane %v4833_v8, 9  ;;  %v6004_v13 = vrot.slane %v4839_v10, 9  ;;  %v3734_v53 = vrot.slane %v4857_v16, 9 }
  0x49   : > { %4246 = vmatprep.mubr.msk.bf16.mxu0 %vm432_vm1, %v5122_v31  ;;  %v2335_v57 = vsel %vm445_vm0, %v5114_v17, 0  ;;  %v5238_v42 = vsel %vm5016_vm7, %v3733_v38, %v768_v6  ;;  %v772_v44 = vrot.slane %v5060_v0, 5  ;;  %v3735_v61 = vrot.slane %v4866_v21, 9  ;;  %v5249_v17 = vld [vmem:[%s4824_s17 + $0x40] sm:$0xf] }
  0x4a   : > { %v5223_v39 = vsel %vm5016_vm7, %v6003_v50, %v760_v46  ;;  %v5229_v25 = vsel %vm5016_vm7, %v6004_v13, %v764_v59  ;;  %4116 = vmatprep.mubr.msk.bf16.mxu1 %vm432_vm1, %v3738_v40  ;;  %v776_v59 = vrot.slane %v5087_v23, 5  ;;  %v3736_v46 = vrot.slane %v4869_v22, 9  ;;  %v5295_v40 = vld [vmem:[%s4874_s6 + $0x48] sm:$0xf] }
  0x4b   : > { %v780_v50 = vrot.slane %v5095_v47, 5  ;;  %v905_v13 = vsel %vm445_vm0, %v5075_v12, 0  ;;  %v1641_v31 = vrot.slane %v1639_v20, 4  ;;  %v1648_v38 = vshll.u32 %v5107_v60, 16 }
  0x4c   : > { %v5254_v0 = vcombine.low %v5223_v39, %v5229_v25  ;;  %v5258_v23 = vsel %vm5016_vm7, %v3734_v53, %v772_v44  ;;  %v1644_v6 = vrot.slane %v1642_v29, 5  ;;  %v5262_v47 = vcombine.low %v4938_v55, %v5100_v49  ;;  %v5287_v53 = vld [vmem:[%s5967_s3 + $0x22] sm:$0x3] }
  0x4d   : > { %v5266_v12 = vcombine.low %v5238_v42, %v5258_v23  ;;  %v5270_v60 = vcombine.low %v5118_v28, %v5135_v45  ;;  %v5274_v20 = vsel %vm5016_vm7, %v3735_v61, %v776_v59  ;;  %v1653_v29 = vshrl.u32 %v5118_v28, 16 }
  0x4e   : > { %6005 = vst [vmem:[#allocation14_spill] sm:$0xff] %v5254_v0  ;;  %6006 = vst [vmem:[#allocation15_spill] sm:$0xff] %v5262_v47  ;;  %v1656_v55 = vshll.u32 %v5118_v28, 16  ;;  %v5282_v49 = vsel %vm5016_vm7, %v3736_v46, %v780_v50  ;;  %v1667_v44 = vshrl.u32 %v5135_v45, 16  ;;  %v1670_v61 = vshll.u32 %v5135_v45, 16 }
  0x4f   : > { %6007 = vst [vmem:[#allocation16_spill] sm:$0xff] %v5266_v12  ;;  %6008 = vst [vmem:[#allocation17_spill] sm:$0xff] %v5270_v60  ;;  %v1676_v59 = vshll.u32 %v5138_v62, 16  ;;  %4117 = vmatmul.mubr.msk.bf16.vlgmr.msra.gmra.mrb[0].mxu1 %vm432_vm1, %v5254_v0  ;;  %v1655_v28 = vrot.slane %v1653_v29, 4  ;;  %v2021_v46 = vshrl.u32 %v5147_v43, 16  ;;  %v2024_v50 = vshll.u32 %v5147_v43, 16 }
  0x50   : > { %v1658_v63 = vrot.slane %v1656_v55, 5  ;;  %v1645_v58 = vor.u32 %v1644_v6, %v1641_v31  ;;  %4247 = vmatmul.mubr.msk.bf16.vlgmr.msra.gmra.mrb[0].mxu0 %vm432_vm1, %v5262_v47  ;;  %4120 = vmatprep.mubr.msk.bf16.mxu1 %vm432_vm1, %v5266_v12  ;;  %v2314_v62 = vshrl.u32 %v5295_v40, 16  ;;  %v3755_v45 = vld [vmem:[%s5967_s3 + $0x8] sm:$0x3]  ;;  %v1669_v0 = vrot.slane %v1667_v44, 4 }
  0x51   : > { %v1672_v29 = vrot.slane %v1670_v61, 5  ;;  %4255 = vmatpush3.bf16.msra.mxu0 %v2335_v57  ;;  %4125 = vmatpush3.bf16.msra.mxu1 %v905_v13  ;;  %v2317_v55 = vshll.u32 %v5295_v40, 16  ;;  %v2023_v27 = vrot.slane %v2021_v46, 4  ;;  %v2026_v31 = vrot.slane %v2024_v50, 5 }
  0x52   : > { %v2030_v6 = vshll.u32 %v5150_v37, 16  ;;  %v5311_v47 = vcombine.low %v5274_v20, %v5282_v49  ;;  %4250 = vmatprep.mubr.msk.bf16.mxu0 %vm432_vm1, %v5270_v60  ;;  %v3747_v12 = vcombine.low %v4830_v7, %v4833_v8  ;;  %4600 = vmatprep.subr.msk.bf16.mxu0 %vm445_vm0, %v5287_v53  ;;  %v1662_v57 = vshll.u32 %v5125_v34, 16 }
  0x53   : > { %v1673_v13 = vor.u32 %v1672_v29, %v1669_v0  ;;  %4586 = vmatprep.subr.msk.bf16.mxu1 %vm445_vm0, %v3755_v45  ;;  %v1659_v37 = vor.u32 %v1658_v63, %v1655_v28  ;;  %v1678_v44 = vrot.slane %v1676_v59, 5  ;;  %v2027_v61 = vor.u32 %v2026_v31, %v2023_v27  ;;  %v5329_v0 = vld [vmem:[%s4874_s6 + $0x4c] sm:$0x1] }
  0x54   : > { %v2032_v46 = vrot.slane %v2030_v6, 5  ;;  %v1650_v50 = vrot.slane %v1648_v38, 5  ;;  %v5323_v60 = vcombine.low %v4978_v35, %v4990_v1  ;;  %v3857_v7 = vcombine.low %v5147_v43, %v5295_v40 }
  0x55   : > { %v1674_v8 = vrot.slane %v1673_v13, 4  ;;  %v1646_v30 = vrot.slane %v1645_v58, 4  ;;  %v2028_v24 = vrot.slane %v2027_v61, 4  ;;  %v2316_v34 = vrot.slane %v2314_v62, 4 }
  0x56   : > { %v2319_v11 = vrot.slane %v2317_v55, 5  ;;  %v1660_v27 = vrot.slane %v1659_v37, 4  ;;  %v1664_v28 = vrot.slane %v1662_v57, 5  ;;  %v2323_v59 = vshll.u32 %v5329_v0, 16 }
  0x57   : > { %4121 = vmatmul.mubr.msk.bf16.gmra.mrb[4].mxu1 %vm432_vm1, %v5311_v47  ;;  %v5335_v35 = vsel %vm4951_vm6, %v1674_v8, %v1678_v44  ;;  %v5339_v1 = vsel %vm4951_vm6, %v2028_v24, %v2032_v46  ;;  %v5347_v63 = vsel %vm4951_vm6, %v1646_v30, %v1650_v50  ;;  %v3749_v62 = vcombine.low %v4857_v16, %v4866_v21  ;;  %v3875_v16 = vld [vmem:[%s5967_s3 + $0x24] sm:$0x3]  ;;  %v3765_v21 = vld [vmem:[%s5967_s3 + $0xa] sm:$0x3] }
  0x58   : > { %6009 = vst [vmem:[#allocation18_spill] sm:$0xff] %v5339_v1  ;;  %4251 = vmatmul.mubr.msk.bf16.gmra.mrb[4].mxu0 %vm432_vm1, %v3857_v7  ;;  %4126 = vmatprep.mubr.msk.bf16.mxu1 %vm432_vm1, %v3747_v12  ;;  %v2320_v38 = vor.u32 %v2319_v11, %v2316_v34  ;;  %v5354_v24 = vsel %vm4951_vm6, %v1660_v27, %v1664_v28  ;;  %v2325_v29 = vrot.slane %v2323_v59, 5  ;;  %v2423_v55 = vsel %vm445_vm0, %v5287_v53, 0  ;;  %v5399_v44 = vld [vmem:[%s4824_s17 + $0x44] sm:$0x1] }
  0x59   : > { %4256 = vmatprep.mubr.msk.bf16.mxu0 %vm432_vm1, %v5323_v60  ;;  %v5358_v12 = vcombine.low %v5001_v36, %v5347_v63  ;;  %v1014_v11 = vsel %vm445_vm0, %v3755_v45, 0  ;;  %v5367_v31 = vcombine.low %v5354_v24, %v5335_v35  ;;  %v6010_v6 = vcombine.low %v4839_v10, %v4854_v15  ;;  %v5427_v27 = vld [vmem:[%s5413_s12] sm:$0xf] }
  0x5a   : > { %v2321_v30 = vrot.slane %v2320_v38, 4  ;;  %v981_v36 = vshrl.u32 %v5249_v17, 16  ;;  %v984_v10 = vshll.u32 %v5249_v17, 16  ;;  %v3756_v53 = vcombine.low %v5036_v51, %v5040_v54 }
  0x5b   : > { %v5396_v37 = vcombine.low %v5044_v5, %v5068_v2  ;;  %v6011_v61 = vcombine.low %v4869_v22, %v5249_v17  ;;  %v990_v54 = vshll.u32 %v5399_v44, 16  ;;  %v3757_v22 = vcombine.low %v5054_v26, %v5131_v52 }
  0x5c   : > { %v2326_v15 = vsel %vm4951_vm6, %v2321_v30, %v2325_v29  ;;  %v983_v57 = vrot.slane %v981_v36, 4  ;;  %v986_v13 = vrot.slane %v984_v10, 5  ;;  %v5419_v5 = vcombine.low %v5081_v14, %v5158_v56  ;;  %v3884_v56 = vld [vmem:[%s5967_s3 + $0x26] sm:$0x3]  ;;  %v5464_v30 = vld [vmem:[%s5413_s12 + $0x4] sm:$0x1] }
  0x5d   : > { %v3863_v45 = vcombine.low %v5339_v1, %v2326_v15  ;;  %v3758_v2 = vcombine.low %v5143_v9, %v5170_v48  ;;  %v992_v50 = vrot.slane %v990_v54, 5  ;;  %v2533_v7 = vsel %vm445_vm0, %v3875_v16, 0  ;;  %v5438_v9 = vld [vmem:[%s5413_s12 + $0x8] sm:$0xf]  ;;  %v3774_v48 = vld [vmem:[%s5967_s3 + $0xc] sm:$0x3] }
  0x5e   : > { %v987_v51 = vor.u32 %v986_v13, %v983_v57  ;;  %v3868_v8 = vrot.slane %v5295_v40, 9  ;;  %v2413_v34 = vrot.slane %v5329_v0, 5  ;;  %v1114_v28 = vsel %vm445_vm0, %v3765_v21, 0  ;;  %v5467_v29 = vld [vmem:[%s5413_s12 + $0xc] sm:$0x1] }
  0x5f   : > { %4127 = vmatmul.mubr.msk.bf16.vlgmr.msra.gmra.mrb[0].mxu1 %vm432_vm1, %v6010_v6  ;;  %v5432_v26 = vcombine.low %v5174_v3, %v5186_v32  ;;  %v2609_v14 = vshrl.u32 %v5427_v27, 16  ;;  %v2612_v52 = vshll.u32 %v5427_v27, 16  ;;  %v2623_v3 = vshrl.u32 %v5438_v9, 16  ;;  %v5475_v36 = vld [vmem:[%s5413_s12 + $0x10] sm:$0xf] }
  0x60   : > { %4257 = vmatmul.mubr.msk.bf16.vlgmr.msra.gmra.mrb[0].mxu0 %vm432_vm1, %v5358_v12  ;;  %4130 = vmatprep.mubr.msk.bf16.mxu1 %vm432_vm1, %v3749_v62  ;;  %v988_v46 = vrot.slane %v987_v51, 4  ;;  %v2626_v40 = vshll.u32 %v5438_v9, 16  ;;  %v2414_v0 = vsel %vm5016_vm7, %v3868_v8, %v2413_v34  ;;  %v5478_v10 = vld [vmem:[%s5413_s12 + $0x18] sm:$0xf]  ;;  %v2618_v15 = vshll.u32 %v5464_v30, 16 }
  0x61   : > { %4265 = vmatpush3.bf16.msra.mxu0 %v2423_v55  ;;  %4135 = vmatpush3.bf16.msra.mxu1 %v1014_v11  ;;  %v2611_v38 = vrot.slane %v2609_v14, 4  ;;  %v2614_v59 = vrot.slane %v2612_v52, 5  ;;  %v3870_v55 = vcombine.low %v5195_v19, %v2414_v0  ;;  %v3766_v11 = vcombine.low %v5213_v4, %v5223_v39  ;;  %v5501_v54 = vld [vmem:[%s5413_s12 + $0x20] sm:$0xf]  ;;  %v5507_v8 = vld [vmem:[%s5413_s12 + $0x14] sm:$0x1] }
  0x62   : > { %4260 = vmatprep.mubr.msk.bf16.mxu0 %vm432_vm1, %v5367_v31  ;;  %4601 = vmatprep.subr.msk.bf16.mxu0 %vm445_vm0, %v3875_v16  ;;  %v5448_v32 = vsel %vm4951_vm6, %v988_v46, %v992_v50  ;;  %v2625_v6 = vrot.slane %v2623_v3, 4  ;;  %v2628_v16 = vrot.slane %v2626_v40, 5  ;;  %v2637_v19 = vshrl.u32 %v5475_v36, 16 }
  0x63   : > { %4587 = vmatprep.subr.msk.bf16.mxu1 %vm445_vm0, %v3765_v21  ;;  %v3759_v62 = vcombine.low %v5180_v41, %v5448_v32  ;;  %v3876_v21 = vcombine.low %v5427_v27, %v5438_v9  ;;  %v2615_v41 = vor.u32 %v2614_v59, %v2611_v38  ;;  %v3767_v4 = vcombine.low %v5229_v25, %v5238_v42  ;;  %v5516_v38 = vld [vmem:[%s5413_s12 + $0x30] sm:$0xf]  ;;  %v5519_v59 = vld [vmem:[%s5413_s12 + $0x1c] sm:$0x1] }
  0x64   : > { %v2629_v39 = vor.u32 %v2628_v16, %v2625_v6  ;;  %v2651_v57 = vshrl.u32 %v5478_v10, 16  ;;  %v2654_v13 = vshll.u32 %v5478_v10, 16  ;;  %v3768_v25 = vcombine.low %v5258_v23, %v5274_v20  ;;  %v3780_v16 = vld [vmem:[%s5967_s3 + $0xe] sm:$0x3] }
  0x65   : > { %v3764_v42 = vrot.slane %v5249_v17, 9  ;;  %v1092_v51 = vrot.slane %v5399_v44, 5  ;;  %v2620_v46 = vrot.slane %v2618_v15, 5  ;;  %v2665_v34 = vshrl.u32 %v5501_v54, 16 }
  0x66   : > { %v2668_v23 = vshll.u32 %v5501_v54, 16  ;;  %v2653_v52 = vrot.slane %v2651_v57, 4  ;;  %v2656_v3 = vrot.slane %v2654_v13, 5  ;;  %v2747_v40 = vsel %vm445_vm0, %v3884_v56, 0  ;;  %v5551_v57 = vld [vmem:[%s5413_s12 + $0x24] sm:$0x1] }
  0x67   : > { %4131 = vmatmul.mubr.msk.bf16.gmra.mrb[4].mxu1 %vm432_vm1, %v6011_v61  ;;  %v5494_v61 = vcombine.low %v5475_v36, %v5478_v10  ;;  %v1198_v0 = vsel %vm445_vm0, %v3774_v48, 0  ;;  %v2646_v6 = vshll.u32 %v5507_v8, 16  ;;  %v5554_v13 = vld [vmem:[%s5413_s12 + $0x2c] sm:$0x1] }
  0x68   : > { %4261 = vmatmul.mubr.msk.bf16.gmra.mrb[4].mxu0 %vm432_vm1, %v3863_v45  ;;  %4136 = vmatprep.mubr.msk.bf16.mxu1 %vm432_vm1, %v3756_v53  ;;  %v2632_v45 = vshll.u32 %v5467_v29, 16  ;;  %v2640_v53 = vshll.u32 %v5475_v36, 16 }
  0x69   : > { %4266 = vmatprep.mubr.msk.bf16.mxu0 %vm432_vm1, %v5396_v37 }
  0x6a   : > { %v2634_v50 = vrot.slane %v2632_v45, 5  ;;  %v2642_v14 = vrot.slane %v2640_v53, 5  ;;  %v2657_v53 = vor.u32 %v2656_v3, %v2653_v52  ;;  %v5574_v3 = vld [vmem:[%s5413_s12 + $0x34] sm:$0x1] }
  0x6f   : > { %4137 = vmatmul.mubr.msk.bf16.vlgmr.msra.gmra.mrb[0].mxu1 %vm432_vm1, %v3757_v22  ;;  %v5504_v22 = vld [vmem:[%s5413_s12 + $0x28] sm:$0xf] }
  0x70   : > { %4267 = vmatmul.mubr.msk.bf16.vlgmr.msra.gmra.mrb[0].mxu0 %vm432_vm1, %v5419_v5  ;;  %4140 = vmatprep.mubr.msk.bf16.mxu1 %vm432_vm1, %v3758_v2  ;;  %v2616_v2 = vrot.slane %v2615_v41, 4  ;;  %v2679_v20 = vshrl.u32 %v5504_v22, 16  ;;  %v2682_v44 = vshll.u32 %v5504_v22, 16  ;;  %v2670_v41 = vrot.slane %v2668_v23, 5 }
  0x71   : > { %4275 = vmatpush3.bf16.msra.mxu0 %v2533_v7  ;;  %4145 = vmatpush3.bf16.msra.mxu1 %v1114_v28  ;;  %v2639_v7 = vrot.slane %v2637_v19, 4  ;;  %v2630_v28 = vrot.slane %v2629_v39, 4  ;;  %v2674_v23 = vshll.u32 %v5551_v57, 16 }
  0x72   : > { %4270 = vmatprep.mubr.msk.bf16.mxu0 %vm432_vm1, %v5432_v26  ;;  %4602 = vmatprep.subr.msk.bf16.mxu0 %vm445_vm0, %v3884_v56  ;;  %v2621_v56 = vsel %vm4951_vm6, %v2616_v2, %v2620_v46  ;;  %v2681_v15 = vrot.slane %v2679_v20, 4  ;;  %v2684_v45 = vrot.slane %v2682_v44, 5  ;;  %v2688_v44 = vshll.u32 %v5554_v13, 16 }
  0x73   : > { %4588 = vmatprep.subr.msk.bf16.mxu1 %vm445_vm0, %v3774_v48  ;;  %v3901_v48 = vld [vmem:[%s5967_s3 + $0x28] sm:$0x3]  ;;  %v5547_v19 = vsel %vm4951_vm6, %v2630_v28, %v2634_v50  ;;  %v2643_v39 = vor.u32 %v2642_v14, %v2639_v7  ;;  %v2648_v7 = vrot.slane %v2646_v6, 5  ;;  %v2658_v14 = vrot.slane %v2657_v53, 4  ;;  %v5577_v6 = vld [vmem:[%s5413_s12 + $0x3c] sm:$0x1] }
  0x74   : > { %v2685_v20 = vor.u32 %v2684_v45, %v2681_v15  ;;  %v2690_v45 = vrot.slane %v2688_v44, 5  ;;  %v2702_v53 = vshll.u32 %v5574_v3, 16 }
  0x75   : > { %v2644_v28 = vrot.slane %v2643_v39, 4 }
  0x76   : > { %v2686_v15 = vrot.slane %v2685_v20, 4 }
  0x77   : > { %4141 = vmatmul.mubr.msk.bf16.gmra.mrb[4].mxu1 %vm432_vm1, %v3759_v62  ;;  %v5523_v62 = vsel %vm5016_vm7, %v3764_v42, %v1092_v51  ;;  %v2693_v42 = vshrl.u32 %v5516_v38, 16  ;;  %v2696_v51 = vshll.u32 %v5516_v38, 16  ;;  %v5586_v39 = vsel %vm4951_vm6, %v2644_v28, %v2648_v7 }
  0x78   : > { %4271 = vmatmul.mubr.msk.bf16.gmra.mrb[4].mxu0 %vm432_vm1, %v3870_v55  ;;  %4146 = vmatprep.mubr.msk.bf16.mxu1 %vm432_vm1, %v3766_v11  ;;  %v5527_v55 = vcombine.low %v5501_v54, %v5504_v22  ;;  %v5530_v11 = vld [vmem:[%s5413_s12 + $0x38] sm:$0xf]  ;;  %v3769_v46 = vcombine.low %v5282_v49, %v5523_v62  ;;  %v3885_v49 = vcombine.low %v2621_v56, %v5547_v19  ;;  %v6012_v56 = vld [vmem:[#allocation3_spill] sm:$0xff] }
  0x79   : > { %4276 = vmatprep.mubr.msk.bf16.mxu0 %vm432_vm1, %v3876_v21  ;;  %v2667_v21 = vrot.slane %v2665_v34, 4  ;;  %v2710_v2 = vshll.u32 %v5530_v11, 16  ;;  %v5566_v50 = vcombine.low %v5516_v38, %v5530_v11 }
  0x7b   : > { %v2671_v34 = vor.u32 %v2670_v41, %v2667_v21  ;;  %v2712_v1 = vrot.slane %v2710_v2, 5  ;;  %v2676_v41 = vrot.slane %v2674_v23, 5  ;;  %v1295_v23 = vsel %vm445_vm0, %v3780_v16, 0 }
  0x7d   : > { %v2672_v21 = vrot.slane %v2671_v34, 4  ;;  %v2889_v34 = vsel %vm445_vm0, %v3901_v48, 0 }
  0x7f   : > { %4147 = vmatmul.mubr.msk.bf16.vlgmr.msra.gmra.mrb[0].mxu1 %vm432_vm1, %v3767_v4  ;;  %v2660_v4 = vshll.u32 %v5519_v59, 16  ;;  %v5597_v2 = vsel %vm4951_vm6, %v2672_v21, %v2676_v41 }
  0x80   : > { %4277 = vmatmul.mubr.msk.bf16.vlgmr.msra.gmra.mrb[0].mxu0 %vm432_vm1, %v5494_v61  ;;  %4150 = vmatprep.mubr.msk.bf16.mxu1 %vm432_vm1, %v3768_v25  ;;  %v2707_v25 = vshrl.u32 %v5530_v11, 16 }
  0x81   : > { %4285 = vmatpush3.bf16.msra.mxu0 %v2747_v40  ;;  %4155 = vmatpush3.bf16.msra.mxu1 %v1198_v0  ;;  %v2662_v52 = vrot.slane %v2660_v4, 5  ;;  %v2695_v40 = vrot.slane %v2693_v42, 4  ;;  %v2698_v0 = vrot.slane %v2696_v51, 5 }
  0x82   : > { %4280 = vmatprep.mubr.msk.bf16.mxu0 %vm432_vm1, %v5527_v55  ;;  %4603 = vmatprep.subr.msk.bf16.mxu0 %vm445_vm0, %v3901_v48  ;;  %v2709_v58 = vrot.slane %v2707_v25, 4  ;;  %v2716_v25 = vshll.u32 %v5577_v6, 16  ;;  %v5620_v48 = vld [vmem:[%s4824_s17 + $0x48] sm:$0xf] }
  0x83   : > { %4589 = vmatprep.subr.msk.bf16.mxu1 %vm445_vm0, %v3780_v16  ;;  %v5592_v4 = vsel %vm4951_vm6, %v2658_v14, %v2662_v52  ;;  %v2699_v42 = vor.u32 %v2698_v0, %v2695_v40  ;;  %v2832_v14 = vrot.slane %v5464_v30, 5  ;;  %v3894_v52 = vrot.slane %v5438_v9, 9  ;;  %v6013_v0 = vld [vmem:[#allocation4_spill] sm:$0xff]  ;;  %v3910_v16 = vld [vmem:[%s5967_s3 + $0x2a] sm:$0x3] }
  0x84   : > { %v2713_v51 = vor.u32 %v2712_v1, %v2709_v58  ;;  %v5605_v7 = vcombine.low %v5586_v39, %v5592_v4  ;;  %v2704_v1 = vrot.slane %v2702_v53, 5  ;;  %v2718_v44 = vrot.slane %v2716_v25, 5 }
  0x85   : > { %v2700_v58 = vrot.slane %v2699_v42, 4  ;;  %v2836_v40 = vrot.slane %v5467_v29, 5  ;;  %v1274_v30 = vshrl.u32 %v5620_v48, 16  ;;  %v1277_v21 = vshll.u32 %v5620_v48, 16  ;;  %v3787_v29 = vld [vmem:[%s5967_s3 + $0x10] sm:$0x3] }
  0x86   : > { %v2714_v20 = vrot.slane %v2713_v51, 4  ;;  %v3775_v53 = vcombine.low %v5249_v17, %v5620_v48  ;;  %v3895_v51 = vrot.slane %v5475_v36, 9  ;;  %v3897_v17 = vrot.slane %v5501_v54, 9 }
  0x87   : > { %4151 = vmatmul.mubr.msk.bf16.gmra.mrb[4].mxu1 %vm432_vm1, %v3769_v46  ;;  %v5601_v46 = vsel %vm4951_vm6, %v2686_v15, %v2690_v45  ;;  %v5636_v41 = vsel %vm4951_vm6, %v2700_v58, %v2704_v1  ;;  %v1276_v25 = vrot.slane %v1274_v30, 4  ;;  %v2840_v1 = vrot.slane %v5507_v8, 5 }
  0x88   : > { %4281 = vmatmul.mubr.msk.bf16.gmra.mrb[4].mxu0 %vm432_vm1, %v5566_v50  ;;  %4156 = vmatprep.mubr.msk.bf16.mxu1 %vm432_vm1, %v6012_v56  ;;  %v5612_v28 = vcombine.low %v5597_v2, %v5601_v46  ;;  %v5640_v15 = vsel %vm4951_vm6, %v2714_v20, %v2718_v44  ;;  %v5648_v56 = vsel %vm5016_vm7, %v3894_v52, %v2836_v40  ;;  %v3896_v58 = vrot.slane %v5478_v10, 9  ;;  %v370_v44 = vld [vmem:[%s4824_s17 + $0x4c] sm:$0x1]  ;;  %v6015_v40 = vld [vmem:[#allocation8_spill] sm:$0xff] }
  0x89   : > { %4286 = vmatprep.mubr.msk.bf16.mxu0 %vm432_vm1, %v3885_v49  ;;  %v3893_v49 = vrot.slane %v5427_v27, 9  ;;  %v6014_v27 = vld [vmem:[#allocation5_spill] sm:$0xff]  ;;  %v5656_v42 = vcombine.low %v5636_v41, %v5640_v15  ;;  %v2844_v20 = vrot.slane %v5519_v59, 5  ;;  %v2852_v52 = vrot.slane %v5554_v13, 5 }
  0x8a   : > { %v5676_v59 = vsel %vm5016_vm7, %v3895_v51, %v2840_v1  ;;  %v2856_v51 = vrot.slane %v5574_v3, 5  ;;  %v1383_v1 = vsel %vm445_vm0, %v3787_v29, 0  ;;  %v6017_v3 = vld [vmem:[#allocation13_spill] sm:$0xff] }
  0x8b   : > { %v2833_v45 = vsel %vm5016_vm7, %v3893_v49, %v2832_v14  ;;  %v2848_v49 = vrot.slane %v5551_v57, 5  ;;  %v3898_v14 = vrot.slane %v5504_v22, 9  ;;  %v5680_v57 = vsel %vm5016_vm7, %v3896_v58, %v2844_v20  ;;  %v6016_v20 = vld [vmem:[#allocation12_spill] sm:$0xff] }
  0x8c   : > { %v5692_v30 = vcombine.low %v5676_v59, %v5680_v57 }
  0x8d   : > { %v5684_v13 = vsel %vm5016_vm7, %v3897_v17, %v2848_v49  ;;  %v3919_v17 = vld [vmem:[%s5967_s3 + $0x2c] sm:$0x3] }
  0x8f   : > { %4157 = vmatmul.mubr.msk.bf16.vlgmr.msra.gmra.mrb[0].mxu1 %vm432_vm1, %v6013_v0  ;;  %v1283_v0 = vshll.u32 %v370_v44, 16 }
  0x90   : > { %4287 = vmatmul.mubr.msk.bf16.vlgmr.msra.gmra.mrb[0].mxu0 %vm432_vm1, %v5605_v7  ;;  %4160 = vmatprep.mubr.msk.bf16.mxu1 %vm432_vm1, %v6014_v27  ;;  %v5688_v27 = vsel %vm5016_vm7, %v3898_v14, %v2852_v52 }
  0x91   : > { %4295 = vmatpush3.bf16.msra.mxu0 %v2889_v34  ;;  %4165 = vmatpush3.bf16.msra.mxu1 %v1295_v23  ;;  %v1279_v34 = vrot.slane %v1277_v21, 5  ;;  %v3902_v23 = vcombine.low %v2833_v45, %v5648_v56  ;;  %v1285_v45 = vrot.slane %v1283_v0, 5  ;;  %v5702_v58 = vcombine.low %v5684_v13, %v5688_v27 }
  0x92   : > { %4290 = vmatprep.mubr.msk.bf16.mxu0 %vm432_vm1, %v5612_v28  ;;  %4604 = vmatprep.subr.msk.bf16.mxu0 %vm445_vm0, %v3910_v16  ;;  %v3786_v0 = vrot.slane %v5620_v48, 9 }
  0x93   : > { %4590 = vmatprep.subr.msk.bf16.mxu1 %vm445_vm0, %v3787_v29  ;;  %v1280_v8 = vor.u32 %v1279_v34, %v1276_v25  ;;  %v3900_v25 = vrot.slane %v5530_v11, 9  ;;  %v2860_v34 = vrot.slane %v5577_v6, 5 }
  0x95   : > { %v1281_v21 = vrot.slane %v1280_v8, 4  ;;  %v5724_v49 = vsel %vm5016_vm7, %v3900_v25, %v2860_v34  ;;  %v6018_v8 = vld [vmem:[#allocation14_spill] sm:$0xff]  ;;  %v5776_v34 = vld [vmem:[%s4874_s6 + $0x8] sm:$0xf] }
  0x96   : > { %v4681_v25 = vld [vmem:[%s4874_s6] sm:$0xf] }
  0x97   : > { %4161 = vmatmul.mubr.msk.bf16.gmra.mrb[4].mxu1 %vm432_vm1, %v3775_v53  ;;  %v3899_v53 = vrot.slane %v5516_v38, 9  ;;  %v1286_v6 = vsel %vm4951_vm6, %v1281_v21, %v1285_v45  ;;  %v1373_v21 = vrot.slane %v370_v44, 5  ;;  %v3094_v45 = vsel %vm445_vm0, %v3919_v17, 0 }
  0x98   : > { %4291 = vmatmul.mubr.msk.bf16.gmra.mrb[4].mxu0 %vm432_vm1, %v5656_v42  ;;  %4166 = vmatprep.mubr.msk.bf16.mxu1 %vm432_vm1, %v6015_v40  ;;  %v3781_v14 = vcombine.low %v5448_v32, %v1286_v6  ;;  %v3911_v40 = vcombine.low %v5438_v9, %v5475_v36  ;;  %v3912_v32 = vcombine.low %v5478_v10, %v5501_v54  ;;  %v5761_v54 = vld [vmem:[%s5413_s12 + $0x40] sm:$0xf] }
  0x99   : > { %4296 = vmatprep.mubr.msk.bf16.mxu0 %vm432_vm1, %v3902_v23  ;;  %v2985_v23 = vsel %vm445_vm0, %v3910_v16, 0  ;;  %v3793_v16 = vld [vmem:[%s5967_s3 + $0x12] sm:$0x3]  ;;  %v5720_v29 = vsel %vm5016_vm7, %v3899_v53, %v2856_v51  ;;  %v3913_v36 = vcombine.low %v5504_v22, %v5516_v38  ;;  %v3929_v51 = vld [vmem:[%s5967_s3 + $0x2e] sm:$0x3]  ;;  %v1374_v10 = vsel %vm5016_vm7, %v3786_v0, %v1373_v21  ;;  %v6022_v21 = vld [vmem:[#allocation17_spill] sm:$0xff] }
  0x9a   : > { %v5733_v52 = vcombine.low %v5720_v29, %v5724_v49  ;;  %v1493_v9 = vsel %vm445_vm0, %v3793_v16, 0  ;;  %v6019_v53 = vld [vmem:[#allocation16_spill] sm:$0xff]  ;;  %v3061_v38 = vshrl.u32 %v5761_v54, 16  ;;  %v3064_v48 = vshll.u32 %v5761_v54, 16  ;;  %v6021_v0 = vld [vmem:[#allocation15_spill] sm:$0xff] }
  0x9b   : > { %v3802_v22 = vld [vmem:[%s5967_s3 + $0x14] sm:$0x3]  ;;  %v3914_v44 = vcombine.low %v5530_v11, %v5761_v54  ;;  %v3921_v6 = vcombine.low %v5592_v4, %v5597_v2  ;;  %v3819_v4 = vld [vmem:[%s5967_s3 + $0x16] sm:$0x3] }
  0x9f   : > { %4167 = vmatmul.mubr.msk.bf16.vlgmr.msra.gmra.mrb[0].mxu1 %vm432_vm1, %v6016_v20  ;;  %v3063_v20 = vrot.slane %v3061_v38, 4 }
  0xa0   : > { %4297 = vmatmul.mubr.msk.bf16.vlgmr.msra.gmra.mrb[0].mxu0 %vm432_vm1, %v5692_v30  ;;  %4170 = vmatprep.mubr.msk.bf16.mxu1 %vm432_vm1, %v6017_v3  ;;  %v408_v3 = vld [vmem:[%s5413_s12 + $0x44] sm:$0x1] }
  0xa1   : > { %4305 = vmatpush3.bf16.msra.mxu0 %v2985_v23  ;;  %4175 = vmatpush3.bf16.msra.mxu1 %v1383_v1  ;;  %v3794_v23 = vcombine.low %v4681_v25, %v5776_v34  ;;  %v3920_v1 = vcombine.low %v5547_v19, %v5586_v39  ;;  %v3070_v11 = vshll.u32 %v408_v3, 16  ;;  %v3194_v19 = vsel %vm445_vm0, %v3929_v51, 0 }
  0xa2   : > { %4300 = vmatprep.mubr.msk.bf16.mxu0 %vm432_vm1, %v5702_v58  ;;  %4605 = vmatprep.subr.msk.bf16.mxu0 %vm445_vm0, %v3919_v17  ;;  %v3066_v17 = vrot.slane %v3064_v48, 5  ;;  %v1707_v39 = vsel %vm445_vm0, %v3802_v22, 0 }
  0xa3   : > { %4591 = vmatprep.subr.msk.bf16.mxu1 %vm445_vm0, %v3793_v16 }
  0xa7   : > { %4171 = vmatmul.mubr.msk.bf16.gmra.mrb[4].mxu1 %vm432_vm1, %v3781_v14  ;;  %v3072_v14 = vrot.slane %v3070_v11, 5  ;;  %v4688_v11 = vld [vmem:[%s4874_s6 + $0x28] sm:$0xf] }
  0xa8   : > { %4301 = vmatmul.mubr.msk.bf16.gmra.mrb[4].mxu0 %vm432_vm1, %v5733_v52  ;;  %4176 = vmatprep.mubr.msk.bf16.mxu1 %vm432_vm1, %v6018_v8  ;;  %v6020_v8 = vld [vmem:[#allocation10_spill] sm:$0xff] }
  0xa9   : > { %4306 = vmatprep.mubr.msk.bf16.mxu0 %vm432_vm1, %v3911_v40  ;;  %v3922_v40 = vcombine.low %v5601_v46, %v5636_v41  ;;  %v3930_v41 = vcombine.low %v5648_v56, %v5676_v59  ;;  %v1849_v59 = vsel %vm445_vm0, %v3819_v4, 0 }
  0xaf   : > { %4177 = vmatmul.mubr.msk.bf16.vlgmr.msra.gmra.mrb[0].mxu1 %vm432_vm1, %v6019_v53 }
  0xb0   : > { %4307 = vmatmul.mubr.msk.bf16.vlgmr.msra.gmra.mrb[0].mxu0 %vm432_vm1, %v3912_v32  ;;  %4180 = vmatprep.mubr.msk.bf16.mxu1 %vm432_vm1, %v5311_v47  ;;  %v3788_v47 = vcombine.low %v5523_v62, %v1374_v10  ;;  %v3067_v62 = vor.u32 %v3066_v17, %v3063_v20  ;;  %v3938_v32 = vld [vmem:[%s5967_s3 + $0x30] sm:$0x3]  ;;  %v3811_v10 = vrot.slane %v4681_v25, 9  ;;  %v410_v20 = vld [vmem:[%s5413_s12 + $0x4c] sm:$0x1] }
  0xb1   : > { %4315 = vmatpush3.bf16.msra.mxu0 %v3094_v45  ;;  %4185 = vmatpush3.bf16.msra.mxu1 %v1493_v9  ;;  %v6023_v45 = vld [vmem:[#allocation6_spill] sm:$0xff]  ;;  %v3931_v9 = vcombine.low %v5680_v57, %v5684_v13  ;;  %v3278_v56 = vsel %vm445_vm0, %v3938_v32, 0  ;;  %v3944_v57 = vld [vmem:[%s5967_s3 + $0x32] sm:$0x3]  ;;  %v3828_v13 = vld [vmem:[%s5967_s3 + $0x18] sm:$0x3] }
  0xb2   : > { %4310 = vmatprep.mubr.msk.bf16.mxu0 %vm432_vm1, %v3913_v36  ;;  %4606 = vmatprep.subr.msk.bf16.mxu0 %vm445_vm0, %v3929_v51  ;;  %v3068_v16 = vrot.slane %v3067_v62, 4  ;;  %v4683_v36 = vld [vmem:[%s4874_s6 + $0x4] sm:$0x1]  ;;  %v3172_v51 = vrot.slane %v408_v3, 5  ;;  %v3375_v48 = vsel %vm445_vm0, %v3944_v57, 0  ;;  %v3363_v17 = vshll.u32 %v410_v20, 16 }
  0xb3   : > { %4592 = vmatprep.subr.msk.bf16.mxu1 %vm445_vm0, %v3802_v22  ;;  %v1792_v53 = vrot.slane %v4683_v36, 5  ;;  %v3932_v22 = vcombine.low %v5688_v27, %v5720_v29  ;;  %v6024_v29 = vld [vmem:[#allocation7_spill] sm:$0xff]  ;;  %v4686_v3 = vld [vmem:[%s4874_s6 + $0x18] sm:$0xf] }
  0xb4   : > { %v5805_v2 = vsel %vm4951_vm6, %v3068_v16, %v3072_v14  ;;  %v3365_v14 = vrot.slane %v3363_v17, 5 }
  0xb5   : > { %v3923_v46 = vcombine.low %v5640_v15, %v5805_v2  ;;  %v3928_v15 = vrot.slane %v5761_v54, 9 }
  0xb7   : > { %4181 = vmatmul.mubr.msk.bf16.gmra.mrb[4].mxu1 %vm432_vm1, %v3788_v47  ;;  %v5841_v27 = vsel %vm5016_vm7, %v3928_v15, %v3172_v51  ;;  %v1945_v47 = vsel %vm445_vm0, %v3828_v13, 0 }
  0xb8   : > { %4311 = vmatmul.mubr.msk.bf16.gmra.mrb[4].mxu0 %vm432_vm1, %v3914_v44  ;;  %4186 = vmatprep.mubr.msk.bf16.mxu1 %vm432_vm1, %v3794_v23 }
  0xb9   : > { %4316 = vmatprep.mubr.msk.bf16.mxu0 %vm432_vm1, %v3920_v1 }
  0xbf   : > { %4187 = vmatmul.mubr.msk.bf16.vlgmr.msra.gmra.mrb[0].mxu1 %vm432_vm1, %v6020_v8 }
  0xc0   : > { %4317 = vmatmul.mubr.msk.bf16.vlgmr.msra.gmra.mrb[0].mxu0 %vm432_vm1, %v3921_v6  ;;  %4190 = vmatprep.mubr.msk.bf16.mxu1 %vm432_vm1, %v6021_v0 }
  0xc1   : > { %4325 = vmatpush3.bf16.msra.mxu0 %v3194_v19  ;;  %4195 = vmatpush3.bf16.msra.mxu1 %v1707_v39  ;;  %v6027_v39 = vld [vmem:[#allocation11_spill] sm:$0xff] }
  0xc2   : > { %4320 = vmatprep.mubr.msk.bf16.mxu0 %vm432_vm1, %v3922_v40  ;;  %4607 = vmatprep.subr.msk.bf16.mxu0 %vm445_vm0, %v3938_v32  ;;  %v3832_v40 = vcombine.low %v6027_v39, %v5147_v43  ;;  %v3840_v32 = vcombine.low %v5347_v63, %v5354_v24  ;;  %v6028_v63 = vld [vmem:[#allocation18_spill] sm:$0xff] }
  0xc3   : > { %4593 = vmatprep.subr.msk.bf16.mxu1 %vm445_vm0, %v3819_v4  ;;  %v6029_v24 = vcombine.low %v5335_v35, %v6028_v63 }
  0xc7   : > { %4191 = vmatmul.mubr.msk.bf16.gmra.mrb[4].mxu1 %vm432_vm1, %v6022_v21 }
  0xc8   : > { %4321 = vmatmul.mubr.msk.bf16.gmra.mrb[4].mxu0 %vm432_vm1, %v3923_v46  ;;  %4196 = vmatprep.mubr.msk.bf16.mxu1 %vm432_vm1, %v6023_v45 }
  0xc9   : > { %4326 = vmatprep.mubr.msk.bf16.mxu0 %vm432_vm1, %v3930_v41 }
  0xcf   : > { %4197 = vmatmul.mubr.msk.bf16.vlgmr.msra.gmra.mrb[0].mxu1 %vm432_vm1, %v5323_v60  ;;  %v1793_v60 = vsel %vm5016_vm7, %v3811_v10, %v1792_v53 }
  0xd0   : > { %4327 = vmatmul.mubr.msk.bf16.vlgmr.msra.gmra.mrb[0].mxu0 %vm432_vm1, %v3931_v9  ;;  %4200 = vmatprep.mubr.msk.bf16.mxu1 %vm432_vm1, %v5358_v12  ;;  %v3933_v12 = vcombine.low %v5724_v49, %v5841_v27  ;;  %v3820_v38 = vcombine.low %v1793_v60, %v6024_v29  ;;  %v3951_v49 = vld [vmem:[%s5967_s3 + $0x34] sm:$0x3] }
  0xd1   : > { %4335 = vmatpush3.bf16.msra.mxu0 %v3278_v56  ;;  %4205 = vmatpush3.bf16.msra.mxu1 %v1849_v59  ;;  %v3463_v19 = vsel %vm445_vm0, %v3951_v49, 0 }
  0xd2   : > { %4330 = vmatprep.mubr.msk.bf16.mxu0 %vm432_vm1, %v3932_v22  ;;  %4608 = vmatprep.subr.msk.bf16.mxu0 %vm445_vm0, %v3944_v57 }
  0xd3   : > { %4594 = vmatprep.subr.msk.bf16.mxu1 %vm445_vm0, %v3828_v13 }
  0xd7   : > { %4201 = vmatmul.mubr.msk.bf16.gmra.mrb[4].mxu1 %vm432_vm1, %v5367_v31  ;;  %v409_v31 = vld [vmem:[%s5413_s12 + $0x48] sm:$0xf]  ;;  %s3709_s12 = sshll.u32 %s6041_s19, 5 }
  0xd8   : > { %4331 = vmatmul.mubr.msk.bf16.gmra.mrb[4].mxu0 %vm432_vm1, %v3933_v12  ;;  %4206 = vmatprep.mubr.msk.bf16.mxu1 %vm432_vm1, %v3820_v38  ;;  %v3357_v44 = vshll.u32 %v409_v31, 16  ;;  %v3950_v18 = vrot.slane %v409_v31, 9 }
  0xd9   : > { %4336 = vmatprep.mubr.msk.bf16.mxu0 %vm432_vm1, %v5494_v61  ;;  %v3354_v61 = vshrl.u32 %v409_v31, 16 }
  0xda   : > { %v3359_v1 = vrot.slane %v3357_v44, 5 }
  0xdb   : > { %v3356_v23 = vrot.slane %v3354_v61, 4 }
  0xdf   : > { %4207 = vmatmul.mubr.msk.bf16.vlgmr.msra.gmra.mrb[0].mxu1 %vm432_vm1, %v5396_v37  ;;  %v4684_v37 = vld [vmem:[%s5967_s3 + $0x1a] sm:$0x3] }
  0xe0   : > { %4337 = vmatmul.mubr.msk.bf16.vlgmr.msra.gmra.mrb[0].mxu0 %vm432_vm1, %v5527_v55  ;;  %4210 = vmatprep.mubr.msk.bf16.mxu1 %vm432_vm1, %v5419_v5  ;;  %v3939_v5 = vcombine.low %v5761_v54, %v409_v31  ;;  %v4685_v55 = vld [vmem:[%s4874_s6 + $0x10] sm:$0xf]  ;;  %v4687_v54 = vld [vmem:[%s4874_s6 + $0x20] sm:$0xf]  ;;  %s3708_s6 = sshll.u32 %s6047_s18, 3 }
  0xe1   : > { %4345 = vmatpush3.bf16.msra.mxu0 %v3375_v48  ;;  %4215 = vmatpush3.bf16.msra.mxu1 %v1945_v47  ;;  %v3829_v25 = vcombine.low %v5776_v34, %v4685_v55  ;;  %v3830_v62 = vcombine.low %v4686_v3, %v4687_v54  ;;  %v6025_v34 = vld [vmem:[#allocation9_spill] sm:$0xff]  ;;  %s340_s15 = sadd.s32 %s3709_s12, %s3708_s6 }
  0xe2   : > { %4340 = vmatprep.mubr.msk.bf16.mxu0 %vm432_vm1, %v5566_v50  ;;  %4609 = vmatprep.subr.msk.bf16.mxu0 %vm445_vm0, %v3951_v49  ;;  %v3360_v50 = vor.u32 %v3359_v1, %v3356_v23  ;;  %v3831_v6 = vcombine.low %v4688_v11, %v6025_v34  ;;  %s3710_s16 = sshll.u32 %s340_s15, 2 }
  0xe3   : > { %4596 = vmatprep.subr.msk.bf16.mxu1 %vm445_vm0, %v4684_v37  ;;  %s5931_s25 = scalar_lea.vmem %s5969_s5, %s3710_s16 }
  0xe4   : > { %v3361_v16 = vrot.slane %v3360_v50, 4 }
  0xe7   : > { %4211 = vmatmul.mubr.msk.bf16.gmra.mrb[4].mxu1 %vm432_vm1, %v5432_v26  ;;  %v6026_v26 = vld [vmem:[#allocation2_spill] sm:$0xff] }
  0xe8   : > { %4341 = vmatmul.mubr.msk.bf16.gmra.mrb[4].mxu0 %vm432_vm1, %v3939_v5  ;;  %4216 = vmatprep.mubr.msk.bf16.mxu1 %vm432_vm1, %v3829_v25 }
  0xe9   : > { %4346 = vmatprep.mubr.msk.bf16.mxu0 %vm432_vm1, %v5605_v7  ;;  %v3366_v7 = vsel %vm4951_vm6, %v3361_v16, %v3365_v14 }
  0xea   : > { %v3945_v8 = vcombine.low %v5805_v2, %v3366_v7 }
  0xef   : > { %4217 = vmatmul.mubr.msk.bf16.vlgmr.msra.gmra.mrb[0].mxu1 %vm432_vm1, %v3830_v62 }
  0xf0   : > { %4347 = vmatmul.mubr.msk.bf16.vlgmr.msra.gmra.mrb[0].mxu0 %vm432_vm1, %v5612_v28  ;;  %4220 = vmatprep.mubr.msk.bf16.mxu1 %vm432_vm1, %v3831_v6  ;;  %v3453_v28 = vrot.slane %v410_v20, 5 }
  0xf1   : > { %4355 = vmatpush3.bf16.msra.mxu0 %v3463_v19  ;;  %4365 = vmatpush3.bf16.msra.mxu1 %v6026_v26 }
  0xf2   : > { %4350 = vmatprep.mubr.msk.bf16.mxu0 %vm432_vm1, %v5656_v42  ;;  %v3454_v43 = vsel %vm5016_vm7, %v3950_v18, %v3453_v28 }
  0xf3   : > { %v3952_v42 = vcombine.low %v5841_v27, %v3454_v43 }
  0xf7   : > { %4221 = vmatmul.mubr.msk.bf16.gmra.mrb[4].mxu1 %vm432_vm1, %v3832_v40 }
  0xf8   : > { %4351 = vmatmul.mubr.msk.bf16.gmra.mrb[4].mxu0 %vm432_vm1, %v3945_v8  ;;  %4230 = vmatprep.mubr.msk.bf16.mxu1 %vm432_vm1, %v3840_v32 }
  0xf9   : > { %4356 = vmatprep.mubr.msk.bf16.mxu0 %vm432_vm1, %v5692_v30 }
 0x100   : > { %4357 = vmatmul.mubr.msk.bf16.vlgmr.msra.gmra.mrb[0].mxu0 %vm432_vm1, %v5702_v58 }
 0x101   : > { %4360 = vmatprep.mubr.msk.bf16.mxu0 %vm432_vm1, %v5733_v52 }
 0x103   : > { %4231 = vmatmul.mubr.msk.bf16.vlgmr.msra.gmra.mrb[4].mxu1 %vm432_vm1, %v6029_v24 }
 0x108   : > { %4361 = vmatmul.mubr.msk.bf16.gmra.mrb[4].mxu0 %vm432_vm1, %v3952_v42 }
 0x1c2   : > { %v4218_v30 = vpop.f32.mrb[0].mxu1 }
 0x1c3   : > { %v1981_v0 = vpop.f32.mrb[1].mxu1  ;;  %v4366_v35 = vadd.f32 %v4218_v30, %v3711_v33 }
 0x1c4   : > { %v4219_v4 = vpop.f32.mrb[2].mxu1  ;;  %v4368_v58 = vadd.f32 %v3711_v33, %v1981_v0 }
 0x1c5   : > { %v1984_v2 = vpop.f32.mrb[3].mxu1  ;;  %v4370_v46 = vadd.f32 %v4219_v4, %v3711_v33 }
 0x1c6   : > { %v4372_v45 = vadd.f32 %v3711_v33, %v1984_v2 }
 0x1d3   : > { %v4358_v52 = vpop.f32.mrb[0].mxu0 }
 0x1d4   : > { %v4367_v41 = vadd.f32 %v4366_v35, %v4358_v52  ;;  %v3499_v21 = vpop.f32.mrb[1].mxu0 }
 0x1d5   : > { %v4369_v9 = vadd.f32 %v4368_v58, %v3499_v21  ;;  %v4359_v36 = vpop.f32.mrb[2].mxu0 }
 0x1d6   : > { %v4232_v53 = vpop.f32.mrb[4].mxu1  ;;  %v3540_v15 = vmax.f32 %v4367_v41, 0.0  ;;  %v4371_v51 = vadd.f32 %v4370_v46, %v4359_v36  ;;  %v3502_v10 = vpop.f32.mrb[3].mxu0 }
 0x1d7   : > { %v2106_v56 = vpop.f32.mrb[5].mxu1  ;;  %v3538_v59 = vmax.f32 %v4369_v9, 0.0  ;;  %v4373_v22 = vadd.f32 %v4372_v45, %v3502_v10  ;;  %v4374_v38 = vadd.f32 %v4232_v53, %v3711_v33 }
 0x1d8   : > { %v4233_v57 = vpop.f32.mrb[6].mxu1  ;;  %v3548_v13 = vpack.c.bf16 %v3540_v15, %v3540_v15  ;;  %v3541_v27 = vmax.f32 %v4371_v51, 0.0  ;;  %v4376_v47 = vadd.f32 %v3711_v33, %v2106_v56 }
 0x1d9   : > { %v2109_v60 = vpop.f32.mrb[7].mxu1  ;;  %v3546_v12 = vpack.c.bf16 %v3538_v59, %v3538_v59  ;;  %v3539_v29 = vmax.f32 %v4373_v22, 0.0  ;;  %v4378_v61 = vadd.f32 %v4233_v57, %v3711_v33 }
 0x1da   : > { %3557 = vst.msk [vmem:[%s5931_s25 + $0x8] sm:$0xf] %vm3554_vm8, %v3548_v13  ;;  %v3549_v48 = vpack.c.bf16 %v3541_v27, %v3541_v27  ;;  %v4380_v5 = vadd.f32 %v3711_v33, %v2109_v60 }
 0x1db   : > { %3555 = vst.msk [vmem:[%s5931_s25] sm:$0xf] %vm3554_vm8, %v3546_v12  ;;  %v3547_v49 = vpack.c.bf16 %v3539_v29, %v3539_v29  ;;  %v4362_v31 = vpop.f32.mrb[4].mxu0 }
 0x1dc   : > { %3558 = vst.msk [vmem:[%s5931_s25 + $0xc] sm:$0xf] %vm3554_vm8, %v3549_v48  ;;  %v4375_v44 = vadd.f32 %v4374_v38, %v4362_v31  ;;  %v3515_v37 = vpop.f32.mrb[5].mxu0 }
 0x1dd   : > { %3556 = vst.msk [vmem:[%s5931_s25 + $0x4] sm:$0xf] %vm3554_vm8, %v3547_v49  ;;  %v4377_v55 = vadd.f32 %v4376_v47, %v3515_v37  ;;  %v4363_v25 = vpop.f32.mrb[6].mxu0 }
 0x1de   : > { %v3544_v23 = vmax.f32 %v4375_v44, 0.0  ;;  %v4379_v1 = vadd.f32 %v4378_v61, %v4363_v25  ;;  %v3518_v20 = vpop.f32.mrb[7].mxu0 }
 0x1df   : > { %v3542_v50 = vmax.f32 %v4377_v55, 0.0  ;;  %v4381_v17 = vadd.f32 %v4380_v5, %v3518_v20 }
 0x1e0   : > { %v3552_v3 = vpack.c.bf16 %v3544_v23, %v3544_v23  ;;  %v3545_v54 = vmax.f32 %v4379_v1, 0.0 }
 0x1e1   : > { %v3550_v62 = vpack.c.bf16 %v3542_v50, %v3542_v50  ;;  %v3543_v11 = vmax.f32 %v4381_v17, 0.0 }
 0x1e2   : > { %3561 = vst.msk [vmem:[%s5931_s25 + $0x18] sm:$0xf] %vm3554_vm8, %v3552_v3  ;;  %v3553_v34 = vpack.c.bf16 %v3545_v54, %v3545_v54 }
 0x1e3   : > { %3559 = vst.msk [vmem:[%s5931_s25 + $0x10] sm:$0xf] %vm3554_vm8, %v3550_v62  ;;  %v3551_v6 = vpack.c.bf16 %v3543_v11, %v3543_v11 }
 0x1e4   : > { %3562 = vst.msk [vmem:[%s5931_s25 + $0x1c] sm:$0xf] %vm3554_vm8, %v3553_v34 }
 0x1e5   : > { %3560 = vst.msk [vmem:[%s5931_s25 + $0x14] sm:$0xf] %vm3554_vm8, %v3551_v6 }
 0x1e6 PF: > { %s15_s22 = sadd.s32 1, %s4727_s22   ;;  %s6030_s18 = smov %s4719_s20 }
 0x1e7   : > { %p12_p10 = scmp.ge.s32.totalorder %s15_s22, 10   ;;  %s6031_s19 = smov %s4723_s21 }
 0x1e8   : > { %s6032_s20 = smov %s6035_s23  ;;  %s6033_s21 = smov %s6039_s24 }
 0x1e9   :  { %14 = sbr.rel (!%p12_p10) target bundleno = 3 (0x3), region = 102 }

// kernel: basic_block_forward.3
= control target key start
LH: loop header
LB: loop body
LE: loop exit
PB: predicated region body
PF: predicated region fallthrough
CT: control target
= control target key end

     0   :  { %s4856_s21 = smov 0   ;;  %s4858_s22 = smov 0   ;;  %s6074_s0 = inlined_call_operand.vmem [shape: bf16[2,6,10,10,4], index: 0, kind: input, shape index: {}, may-alias: {0,1,2}]   ;;  %s6075_s1 = inlined_call_operand.vmem [shape: bf16[2,6,10,10,4], index: 1, kind: input, shape index: {}, may-alias: {0,1,2}]   ;;  %s6076_s2 = inlined_call_operand.vmem [shape: bf16[2,6,10,10,4], index: 2, kind: input, shape index: {}, may-alias: {0,1,2}]   ;;  %s6077_s3 = inlined_call_operand.vmem [shape: bf16[27,4,4], index: 3, kind: input, shape index: {}]   ;;  %s6078_s4 = inlined_call_operand.vmem [shape: f32[1,4], index: 4, kind: input, shape index: {}]   ;;  %s6079_s5 = inlined_call_operand.vmem [shape: f32[2,4,8,8,4], index: 5, kind: input, shape index: {}]   ;;  %s6080_s6 = inlined_call_operand.vmem [shape: f32[2,4,8,8,4], index: 6, kind: output, shape index: {}]  }
   0x1   :  { %s4860_s23 = smov 0   ;;  %s4862_s24 = smov 0  }
   0x2   :  { %s4864_s25 = smov 0  }
   0x3 LB: > { %s25_s26 = sadd.s32 1, %s4811_s23  ;;  %s28_s27 = sadd.s32 1, %s4815_s24  ;;  %s4819_s25 = sphi %s4864_s25, %s16_s25   ;;  %s4815_s24 = sphi %s4862_s24, %s6144_s24   ;;  %s4811_s23 = sphi %s4860_s23, %s6143_s23   ;;  %s4807_s22 = sphi %s4858_s22, %s6142_s22   ;;  %s4803_s21 = sphi %s4856_s21, %s6141_s21  }
   0x4   : > { %p26_p0 = scmp.ge.s32.totalorder %s25_s26, 4  ;;  %p3793_p1 = scmp.ge.s32.totalorder %s4819_s25, 1 }
   0x5   : > { %p288_p2 = scmp.lt.s32.totalorder %s4819_s25, 9 }
   0x6   : > { %s6146_s26 = smov (%p26_p0, %s25_s26), 0  ;;  %s6148_s27 = smov (!%p26_p0, %s28_s27), %s4815_s24 }
   0x7   : > { %p289_p3 = pnand %p3793_p1, %p288_p2  ;;  %p30_p4 = scmp.ge.s32.totalorder %s6148_s27, 2 }
   0x9   : > { %s6150_s27 = smov (%p30_p4, %s6148_s27), 0  ;;  %292 = sbr.rel (%p289_p3) target bundleno = 486 (0x1e6), region = 44 }
  0x10   : > { %v472_v0 = vld [vmem:[%s6077_s3] sm:$0x3]  ;;  %vm506_vm0 = vcmask 1041408   ;;  %p355_p5 = scmp.lt.s32.totalorder %s4807_s22, 1  ;;  %p357_p6 = scmp.lt.s32.totalorder %s4803_s21, 5  ;;  %vm493_vm1 = vcmask 31744  }
  0x11   : > { %4674 = vmatprep.subr.msk.bf16.mxu1 %vm506_vm0, %v472_v0  ;;  %v508_v1 = vsel %vm506_vm0, %v472_v0, 0  ;;  %v3929_v2 = vld [vmem:[%s6077_s3 + $0x1a] sm:$0x3]  ;;  %v3812_v3 = vld [vmem:[%s6077_s3 + $0x2] sm:$0x3]  ;;  %s364_s10 = sadd.s32 1, %s4803_s21 }
  0x12   : > { %4187 = vmatpush3.bf16.msra.mxu1 %v508_v1  ;;  %s6152_s22 = smov (!%p355_p5, %s4807_s22), 1  ;;  %4687 = vmatprep.subr.msk.bf16.mxu0 %vm506_vm0, %v3929_v2  ;;  %v4905_v4 = vsel %vm506_vm0, %v3929_v2, 0  ;;  %v3939_v5 = vld [vmem:[%s6077_s3 + $0x1c] sm:$0x3]  ;;  %p367_p7 = scmp.lt.s32.totalorder %s364_s10, 5  ;;  %v725_v12 = vsel %vm506_vm0, %v3812_v3, 0 }
  0x13   : > { %6097 = vst [vmem:[#allocation2_spill] sm:$0xff] %v4905_v4  ;;  %s358_s11 = scalar_select %p357_p6, %s4803_s21, 5  ;;  %4317 = vmatpush3.bf16.msra.mxu0 %v4905_v4  ;;  %4675 = vmatprep.subr.msk.bf16.mxu1 %vm506_vm0, %v3812_v3  ;;  %v4946_v13 = vld [vmem:[%s6077_s3 + $0x4] sm:$0x3]  ;;  %vm583_vm2 = vsmask.f32 3328 }
  0x14   : > { %s4914_s14 = smul.u32 120, %s6152_s22  ;;  %4689 = vmatprep.subr.msk.bf16.mxu0 %vm506_vm0, %v3939_v5  ;;  %s6154_s10 = smov (!%p367_p7, %s364_s10), 5  ;;  %vm584_vm3 = vsmask.f32 7440  ;;  %v4985_v29 = vsel %vm506_vm0, %v3939_v5, 0  ;;  %vm808_vm4 = vcmask 1042432  }
  0x15   : > { %s4702_s15 = smul.u32 20, %s358_s11  ;;  %vm809_vm5 = vcmask 1046532   ;;  %vm5048_vm6 = vmor %vm583_vm2, %vm584_vm3  ;;  %s375_s7 = sadd.s32 2, %s4803_s21 }
  0x16   : > { %s4704_s18 = smul.u32 20, %s6154_s10  ;;  %vm5113_vm7 = vmor %vm808_vm4, %vm809_vm5  ;;  %p378_p8 = scmp.lt.s32.totalorder %s375_s7, 5 }
  0x17   : > { %s361_s16 = sadd.s32 %s4914_s14, %s4702_s15  ;;  %p388_p9 = scmp.lt.s32.totalorder %s4803_s21, 3 }
  0x18   : > { %s3794_s17 = sshll.u32 %s361_s16, 2  ;;  %s371_s29 = sadd.s32 %s4704_s18, %s4914_s14 }
  0x19   : > { %s4921_s28 = scalar_lea.vmem %s6074_s0, %s3794_s17  ;;  %s3795_s30 = sshll.u32 %s371_s29, 2 }
  0x1a   : > { %v4924_v6 = vld [vmem:[%s4921_s28] sm:$0xf]  ;;  %v4927_v7 = vld [vmem:[%s4921_s28 + $0x8] sm:$0xf]  ;;  %v4930_v8 = vld [vmem:[%s4921_s28 + $0x10] sm:$0xf]  ;;  %s4971_s11 = scalar_lea.vmem %s6075_s1, %s3795_s30 }
  0x1b   : > { %v3804_v9 = vcombine.low %v4924_v6, %v4927_v7  ;;  %v4936_v10 = vld [vmem:[%s4921_s28 + $0x18] sm:$0xf]  ;;  %v587_v14 = vshrl.u32 %v4924_v6, 16  ;;  %v4951_v15 = vld [vmem:[%s4921_s28 + $0x20] sm:$0xf]  ;;  %v590_v17 = vshll.u32 %v4924_v6, 16 }
  0x1c   : > { %v4940_v11 = vcombine.low %v4930_v8, %v4936_v10  ;;  %v4954_v16 = vld [vmem:[%s4921_s28 + $0x28] sm:$0xf]  ;;  %v601_v18 = vshrl.u32 %v4927_v7, 16  ;;  %v604_v19 = vshll.u32 %v4927_v7, 16  ;;  %v615_v20 = vshrl.u32 %v4930_v8, 16  ;;  %s6156_s7 = smov (!%p378_p8, %s375_s7), 5 }
  0x1d   : > { %4188 = vmatprep.mubr.msk.bf16.mxu1 %vm493_vm1, %v3804_v9  ;;  %v4963_v21 = vld [vmem:[%s4921_s28 + $0x30] sm:$0xf]  ;;  %v4966_v22 = vld [vmem:[%s4921_s28 + $0x38] sm:$0xf]  ;;  %v618_v23 = vshll.u32 %v4930_v8, 16  ;;  %v4976_v24 = vcombine.low %v4951_v15, %v4954_v16  ;;  %v4981_v26 = vrot.slane %v587_v14, 4 }
  0x1e   : > { %6098 = vst [vmem:[#allocation3_spill] sm:$0xff] %v4940_v11  ;;  %4189 = vmatmul.mubr.msk.bf16.vlgmr.msra.gmra.mrb[0].mxu1 %vm493_vm1, %v4940_v11  ;;  %v432_v25 = vld [vmem:[%s4971_s11] sm:$0xf]  ;;  %v629_v27 = vshrl.u32 %v4936_v10, 16  ;;  %v4991_v30 = vcombine.low %v4963_v21, %v4966_v22  ;;  %v433_v31 = vld [vmem:[%s4971_s11 + $0x4] sm:$0x1] }
  0x1f   : > { %4197 = vmatpush3.bf16.msra.mxu1 %v725_v12  ;;  %6099 = vst [vmem:[#allocation4_spill] sm:$0xff] %v4976_v24  ;;  %v1630_v28 = vshrl.u32 %v432_v25, 16  ;;  %4192 = vmatprep.mubr.msk.bf16.mxu1 %vm493_vm1, %v4976_v24  ;;  %v4995_v32 = vld [vmem:[%s4971_s11 + $0x8] sm:$0xf]  ;;  %v4998_v33 = vld [vmem:[%s4971_s11 + $0xc] sm:$0x1] }
  0x20   : > { %4676 = vmatprep.subr.msk.bf16.mxu1 %vm506_vm0, %v4946_v13  ;;  %6100 = vst [vmem:[#allocation5_spill] sm:$0xff] %v4991_v30  ;;  %v5002_v35 = vrot.slane %v590_v17, 5  ;;  %v5004_v36 = vrot.slane %v601_v18, 4  ;;  %v5006_v37 = vrot.slane %v604_v19, 5  ;;  %v5008_v38 = vrot.slane %v615_v20, 4  ;;  %s4705_s13 = smul.u32 20, %s6156_s7 }
  0x21   : > { %v5011_v39 = vld [vmem:[%s4971_s11 + $0x10] sm:$0xf]  ;;  %v5013_v40 = vrot.slane %v618_v23, 5  ;;  %v632_v41 = vshll.u32 %v4936_v10, 16  ;;  %v5017_v42 = vld [vmem:[%s4971_s11 + $0x14] sm:$0x1] }
  0x22   : > { %v1632_v43 = vrot.slane %v1630_v28, 4  ;;  %v1633_v44 = vshll.u32 %v432_v25, 16  ;;  %v5020_v45 = vld [vmem:[%s4971_s11 + $0x18] sm:$0xf]  ;;  %v1639_v46 = vshll.u32 %v433_v31, 16  ;;  %v1644_v47 = vshrl.u32 %v4995_v32, 16  ;;  %s382_s15 = sadd.s32 %s4705_s13, %s4914_s14 }
  0x23   : > { %v1647_v48 = vshll.u32 %v4995_v32, 16  ;;  %v1653_v49 = vshll.u32 %v4998_v33, 16  ;;  %v5025_v50 = vrot.slane %v629_v27, 4  ;;  %v5030_v51 = vld [vmem:[%s4971_s11 + $0x1c] sm:$0x1]  ;;  %v1658_v53 = vshrl.u32 %v5011_v39, 16 }
  0x24   : > { %v1635_v52 = vrot.slane %v1633_v44, 5  ;;  %v1661_v54 = vshll.u32 %v5011_v39, 16  ;;  %v5035_v55 = vld [vmem:[%s4971_s11 + $0x20] sm:$0xf]  ;;  %v1641_v56 = vrot.slane %v1639_v46, 5  ;;  %v1646_v57 = vrot.slane %v1644_v47, 4 }
  0x25   : > { %v1649_v58 = vrot.slane %v1647_v48, 5  ;;  %v1667_v59 = vshll.u32 %v5017_v42, 16  ;;  %v1655_v61 = vrot.slane %v1653_v49, 5  ;;  %v1660_v62 = vrot.slane %v1658_v53, 4  ;;  %v5042_v5 = vld [vmem:[%s4971_s11 + $0x24] sm:$0x1] }
  0x26   : > { %4193 = vmatmul.mubr.msk.bf16.gmra.mrb[4].mxu1 %vm493_vm1, %v4991_v30  ;;  %v1636_v60 = vor.u32 %v1635_v52, %v1632_v43  ;;  %v1663_v63 = vrot.slane %v1661_v54, 5  ;;  %v1672_v1 = vshrl.u32 %v5020_v45, 16  ;;  %v1675_v2 = vshll.u32 %v5020_v45, 16  ;;  %v3948_v27 = vld [vmem:[%s6077_s3 + $0x1e] sm:$0x3]  ;;  %s3796_s16 = sshll.u32 %s382_s15, 2 }
  0x27   : > { %v1650_v0 = vor.u32 %v1649_v58, %v1646_v57  ;;  %v1681_v3 = vshll.u32 %v5030_v51, 16  ;;  %v1686_v14 = vshrl.u32 %v5035_v55, 16  ;;  %v1689_v17 = vshll.u32 %v5035_v55, 16  ;;  %v5222_v34 = vld [vmem:[%s4971_s11 + $0x34] sm:$0x1]  ;;  %s5510_s18 = scalar_lea.vmem %s6076_s2, %s3796_s16  ;;  %s6158_s21 = smov (!%p388_p9, %s4803_s21), 3 }
  0x28   : > { %v1637_v9 = vrot.slane %v1636_v60, 4  ;;  %v1664_v12 = vor.u32 %v1663_v63, %v1660_v62  ;;  %v1669_v20 = vrot.slane %v1667_v59, 5  ;;  %v1674_v23 = vrot.slane %v1672_v1, 4 }
  0x29   : > { %v1651_v19 = vrot.slane %v1650_v0, 4  ;;  %v1677_v25 = vrot.slane %v1675_v2, 5  ;;  %v1688_v43 = vrot.slane %v1686_v14, 4  ;;  %v1691_v44 = vrot.slane %v1689_v17, 5 }
  0x2a   : > { %v1642_v28 = vsel %vm5048_vm6, %v1637_v9, %v1641_v56  ;;  %v1665_v31 = vrot.slane %v1664_v12, 4  ;;  %v634_v46 = vrot.slane %v632_v41, 5  ;;  %v1683_v48 = vrot.slane %v1681_v3, 5 }
  0x2b   : > { %v1678_v47 = vor.u32 %v1677_v25, %v1674_v23  ;;  %v1695_v49 = vshll.u32 %v5042_v5, 16  ;;  %v593_v52 = vor.u32 %v5002_v35, %v4981_v26  ;;  %v1656_v53 = vsel %vm5048_vm6, %v1651_v19, %v1655_v61  ;;  %v5078_v61 = vld [vmem:[%s4921_s28 + $0x4] sm:$0x1] }
  0x2c   : > { %v1692_v54 = vor.u32 %v1691_v44, %v1688_v43  ;;  %v5063_v56 = vsel %vm506_vm0, %v3948_v27, 0  ;;  %v5065_v59 = vcombine.low %v1642_v28, %v1656_v53  ;;  %v5069_v41 = vsel %vm506_vm0, %v4946_v13, 0 }
  0x2d   : > { %v1679_v57 = vrot.slane %v1678_v47, 4  ;;  %v1697_v58 = vrot.slane %v1695_v49, 5  ;;  %v621_v26 = vor.u32 %v5013_v40, %v5008_v38  ;;  %v5075_v35 = vsel %vm5048_vm6, %v1665_v31, %v1669_v20  ;;  %v5090_v38 = vld [vmem:[%s4921_s28 + $0xc] sm:$0x1]  ;;  %v5093_v40 = vld [vmem:[%s4921_s28 + $0x14] sm:$0x1] }
  0x2e   : > { %6103 = vst [vmem:[#allocation6_spill] sm:$0xff] %v5065_v59  ;;  %v1693_v60 = vrot.slane %v1692_v54, 4  ;;  %v607_v62 = vor.u32 %v5006_v37, %v5004_v36  ;;  %v635_v0 = vor.u32 %v634_v46, %v5025_v50  ;;  %v594_v2 = vrot.slane %v593_v52, 4  ;;  %v5102_v50 = vld [vmem:[%s4921_s28 + $0x1c] sm:$0x1] }
  0x2f   : > { %v5087_v1 = vsel %vm5048_vm6, %v1679_v57, %v1683_v48  ;;  %v1857_v37 = vrot.slane %v4998_v33, 5  ;;  %v1861_v9 = vrot.slane %v5017_v42, 5  ;;  %v3930_v12 = vcombine.low %v1656_v53, %v5075_v35  ;;  %v5146_v57 = vld [vmem:[%s4921_s28 + $0x24] sm:$0x1]  ;;  %v3803_v33 = vld [vmem:[%s6078_s4] ss:$0 sm:$0xff] }
  0x30   : > { %v5098_v36 = vsel %vm5048_vm6, %v1693_v60, %v1697_v58  ;;  %v596_v17 = vshll.u32 %v5078_v61, 16  ;;  %v608_v19 = vrot.slane %v607_v62, 4  ;;  %v610_v20 = vshll.u32 %v5090_v38, 16 }
  0x31   : > { %v3931_v14 = vcombine.low %v5087_v1, %v5098_v36  ;;  %v622_v23 = vrot.slane %v621_v26, 4  ;;  %v624_v25 = vshll.u32 %v5093_v40, 16  ;;  %4318 = vmatprep.mubr.msk.bf16.mxu0 %vm493_vm1, %v3930_v12  ;;  %v636_v28 = vrot.slane %v635_v0, 4  ;;  %v5157_v0 = vld [vmem:[%s4921_s28 + $0x2c] sm:$0x1] }
  0x32   : > { %v598_v42 = vrot.slane %v596_v17, 5  ;;  %v638_v31 = vshll.u32 %v5102_v50, 16  ;;  %v3904_v43 = vrot.slane %v4995_v32, 9  ;;  %v1865_v44 = vrot.slane %v5030_v51, 5  ;;  %v5172_v12 = vld [vmem:[%s6077_s3 + $0x6] sm:$0x3] }
  0x33   : > { %4319 = vmatmul.mubr.msk.bf16.vlgmr.msra.gmra.mrb[0].mxu0 %vm493_vm1, %v3931_v14  ;;  %v612_v46 = vrot.slane %v610_v20, 5  ;;  %v626_v47 = vrot.slane %v624_v25, 5  ;;  %v3905_v48 = vrot.slane %v5011_v39, 9  ;;  %v1869_v49 = vrot.slane %v5042_v5, 5 }
  0x34   : > { %4327 = vmatpush3.bf16.msra.mxu0 %v4985_v29  ;;  %v599_v52 = vsel %vm5048_vm6, %v594_v2, %v598_v42  ;;  %v640_v53 = vrot.slane %v638_v31, 5  ;;  %v5129_v32 = vsel %vm5113_vm7, %v3904_v43, %v1857_v37  ;;  %v3906_v29 = vrot.slane %v5020_v45, 9 }
  0x35   : > { %6106 = vst [vmem:[#allocation7_spill] sm:$0xff] %v5129_v32  ;;  %v5133_v51 = vsel %vm5048_vm6, %v608_v19, %v612_v46  ;;  %v5137_v54 = vsel %vm5048_vm6, %v622_v23, %v626_v47  ;;  %v5141_v5 = vsel %vm5113_vm7, %v3905_v48, %v1861_v9  ;;  %4690 = vmatprep.subr.msk.bf16.mxu0 %vm506_vm0, %v3948_v27  ;;  %v3907_v62 = vrot.slane %v5035_v55, 9  ;;  %v5184_v23 = vld [vmem:[%s4921_s28 + $0x34] sm:$0x1]  ;;  %v5192_v47 = vld [vmem:[%s4921_s28 + $0x3c] sm:$0x1] }
  0x36   : > { %v3813_v58 = vcombine.low %v599_v52, %v5133_v51  ;;  %v5151_v26 = vsel %vm5048_vm6, %v636_v28, %v640_v53  ;;  %v3940_v60 = vcombine.low %v5129_v32, %v5141_v5  ;;  %v5165_v2 = vsel %vm5113_vm7, %v3906_v29, %v1865_v44 }
  0x37   : > { %v5161_v27 = vcombine.low %v5137_v54, %v5151_v26  ;;  %v643_v37 = vshrl.u32 %v4951_v15, 16  ;;  %v646_v9 = vshll.u32 %v4951_v15, 16  ;;  %v5178_v14 = vsel %vm5113_vm7, %v3907_v62, %v1869_v49  ;;  %v5197_v49 = vld [vmem:[%s4971_s11 + $0x28] sm:$0xf] }
  0x38   : > { %4198 = vmatprep.mubr.msk.bf16.mxu1 %vm493_vm1, %v3813_v58  ;;  %4328 = vmatprep.mubr.msk.bf16.mxu0 %vm493_vm1, %v3940_v60  ;;  %v652_v17 = vshll.u32 %v5146_v57, 16  ;;  %v657_v19 = vshrl.u32 %v4954_v16, 16  ;;  %v660_v20 = vshll.u32 %v4954_v16, 16  ;;  %v3941_v25 = vcombine.low %v5165_v2, %v5178_v14  ;;  %v5204_v60 = vld [vmem:[%s4971_s11 + $0x2c] sm:$0x1] }
  0x39   : > { %6107 = vst [vmem:[#allocation8_spill] sm:$0xff] %v5161_v27  ;;  %4199 = vmatmul.mubr.msk.bf16.vlgmr.msra.gmra.mrb[0].mxu1 %vm493_vm1, %v5161_v27  ;;  %v645_v42 = vrot.slane %v643_v37, 4  ;;  %v648_v28 = vrot.slane %v646_v9, 5  ;;  %v666_v31 = vshll.u32 %v5157_v0, 16  ;;  %v671_v48 = vshrl.u32 %v4963_v21, 16 }
  0x3a   : > { %v654_v43 = vrot.slane %v652_v17, 5  ;;  %v659_v44 = vrot.slane %v657_v19, 4  ;;  %v662_v46 = vrot.slane %v660_v20, 5  ;;  %4207 = vmatpush3.bf16.msra.mxu1 %v5069_v41  ;;  %v674_v29 = vshll.u32 %v4963_v21, 16  ;;  %v5211_v17 = vld [vmem:[%s6077_s3 + $0x20] sm:$0x3] }
  0x3b   : > { %v649_v52 = vor.u32 %v648_v28, %v645_v42  ;;  %v668_v53 = vrot.slane %v666_v31, 5  ;;  %v680_v58 = vshll.u32 %v5184_v23, 16  ;;  %4677 = vmatprep.subr.msk.bf16.mxu1 %vm506_vm0, %v5172_v12  ;;  %v673_v37 = vrot.slane %v671_v48, 4  ;;  %v5215_v28 = vld [vmem:[%s4971_s11 + $0x30] sm:$0xf] }
  0x3c   : > { %v663_v62 = vor.u32 %v662_v46, %v659_v44  ;;  %v685_v9 = vshrl.u32 %v4966_v22, 16  ;;  %v688_v41 = vshll.u32 %v4966_v22, 16  ;;  %v676_v20 = vrot.slane %v674_v29, 5  ;;  %6108 = vst [vmem:[#allocation9_spill] sm:$0xff] %v5215_v28 }
  0x3d   : > { %v650_v19 = vrot.slane %v649_v52, 4  ;;  %v694_v42 = vshll.u32 %v5192_v47, 16  ;;  %v5219_v31 = vcombine.low %v5011_v39, %v5020_v45  ;;  %v3908_v3 = vrot.slane %v5197_v49, 9  ;;  %v5232_v45 = vld [vmem:[%s4971_s11 + $0x38] sm:$0xf] }
  0x3e   : > { %v664_v44 = vrot.slane %v663_v62, 4  ;;  %v687_v46 = vrot.slane %v685_v9, 4  ;;  %v690_v48 = vrot.slane %v688_v41, 5  ;;  %v677_v29 = vor.u32 %v676_v20, %v673_v37  ;;  %6110 = vst [vmem:[#allocation11_spill] sm:$0xff] %v5232_v45  ;;  %v5235_v62 = vld [vmem:[%s4971_s11 + $0x3c] sm:$0x1] }
  0x3f   : > { %6109 = vst [vmem:[#allocation10_spill] sm:$0xff] %v5219_v31  ;;  %4329 = vmatmul.mubr.msk.bf16.vlgmr.msra.gmra.mrb[0].mxu0 %vm493_vm1, %v3941_v25  ;;  %v5228_v52 = vsel %vm5048_vm6, %v650_v19, %v654_v43  ;;  %v682_v13 = vrot.slane %v680_v58, 5  ;;  %v1873_v39 = vrot.slane %v5204_v60, 5  ;;  %v696_v25 = vrot.slane %v694_v42, 5  ;;  %v5244_v43 = vld [vmem:[%s4971_s11 + $0x40] sm:$0xf] }
  0x40   : > { %4337 = vmatpush3.bf16.msra.mxu0 %v5063_v56  ;;  %v5240_v9 = vsel %vm5048_vm6, %v664_v44, %v668_v53  ;;  %v691_v41 = vor.u32 %v690_v48, %v687_v46  ;;  %v3909_v63 = vrot.slane %v5215_v28, 9  ;;  %v5247_v37 = vld [vmem:[%s4971_s11 + $0x44] sm:$0x1]  ;;  %v678_v19 = vrot.slane %v677_v29, 4 }
  0x41   : > { %v5251_v58 = vcombine.low %v5228_v52, %v5240_v9  ;;  %v5255_v56 = vsel %vm5113_vm7, %v3908_v3, %v1873_v39  ;;  %v1877_v53 = vrot.slane %v5222_v34, 5  ;;  %4691 = vmatprep.subr.msk.bf16.mxu0 %vm506_vm0, %v5211_v17  ;;  %v1700_v20 = vshrl.u32 %v5197_v49, 16 }
  0x42   : > { %v692_v42 = vrot.slane %v691_v41, 4  ;;  %v3910_v44 = vrot.slane %v5232_v45, 9  ;;  %v1881_v46 = vrot.slane %v5235_v62, 5  ;;  %v5267_v48 = vsel %vm5048_vm6, %v678_v19, %v682_v13 }
  0x43   : > { %6111 = vst [vmem:[#allocation12_spill] sm:$0xff] %v5251_v58  ;;  %4202 = vmatprep.mubr.msk.bf16.mxu1 %vm493_vm1, %v5251_v58  ;;  %v5271_v3 = vsel %vm5113_vm7, %v3909_v63, %v1877_v53  ;;  %v3938_v29 = vrot.slane %v5244_v43, 9  ;;  %v2193_v39 = vrot.slane %v5247_v37, 5  ;;  %v813_v13 = vrot.slane %v5078_v61, 5 }
  0x44   : > { %v5277_v41 = vsel %vm5048_vm6, %v692_v42, %v696_v25  ;;  %v3942_v4 = vcombine.low %v5255_v56, %v5271_v3  ;;  %v5283_v32 = vsel %vm5113_vm7, %v3910_v44, %v1881_v46  ;;  %v3822_v25 = vrot.slane %v4927_v7, 9 }
  0x45   : > { %v5288_v63 = vcombine.low %v5267_v48, %v5277_v41  ;;  %v5292_v19 = vsel %vm5113_vm7, %v3938_v29, %v2193_v39  ;;  %v817_v53 = vrot.slane %v5090_v38, 5  ;;  %v6113_v44 = vrot.slane %v4924_v6, 9 }
  0x46   : > { %4332 = vmatprep.mubr.msk.bf16.mxu0 %vm493_vm1, %v3942_v4  ;;  %v3943_v42 = vcombine.low %v5283_v32, %v5292_v19  ;;  %v821_v46 = vrot.slane %v5093_v40, 5  ;;  %v825_v59 = vrot.slane %v5102_v50, 5  ;;  %v1703_v29 = vshll.u32 %v5197_v49, 16 }
  0x47   : > { %6112 = vst [vmem:[#allocation13_spill] sm:$0xff] %v5288_v63  ;;  %v814_v61 = vsel %vm5113_vm7, %v6113_v44, %v813_v13  ;;  %4203 = vmatmul.mubr.msk.bf16.gmra.mrb[4].mxu1 %vm493_vm1, %v5288_v63  ;;  %v5310_v4 = vsel %vm5113_vm7, %v3822_v25, %v817_v53  ;;  %v3825_v38 = vrot.slane %v4951_v15, 9  ;;  %v829_v6 = vrot.slane %v5146_v57, 5 }
  0x48   : > { %4333 = vmatmul.mubr.msk.bf16.gmra.mrb[4].mxu0 %vm493_vm1, %v3943_v42  ;;  %v3830_v40 = vcombine.low %v814_v61, %v5310_v4  ;;  %v6114_v50 = vrot.slane %v4930_v8, 9  ;;  %v6115_v13 = vrot.slane %v4936_v10, 9  ;;  %v3826_v53 = vrot.slane %v4954_v16, 9 }
  0x49   : > { %4338 = vmatprep.mubr.msk.bf16.mxu0 %vm493_vm1, %v5219_v31  ;;  %v2396_v57 = vsel %vm506_vm0, %v5211_v17, 0  ;;  %v5335_v42 = vsel %vm5113_vm7, %v3825_v38, %v829_v6  ;;  %v833_v44 = vrot.slane %v5157_v0, 5  ;;  %v3827_v61 = vrot.slane %v4963_v21, 9  ;;  %v5346_v17 = vld [vmem:[%s4921_s28 + $0x40] sm:$0xf] }
  0x4a   : > { %v5320_v39 = vsel %vm5113_vm7, %v6114_v50, %v821_v46  ;;  %v5326_v25 = vsel %vm5113_vm7, %v6115_v13, %v825_v59  ;;  %4208 = vmatprep.mubr.msk.bf16.mxu1 %vm493_vm1, %v3830_v40  ;;  %v837_v59 = vrot.slane %v5184_v23, 5  ;;  %v3828_v46 = vrot.slane %v4966_v22, 9  ;;  %v5392_v40 = vld [vmem:[%s4971_s11 + $0x48] sm:$0xf] }
  0x4b   : > { %v841_v50 = vrot.slane %v5192_v47, 5  ;;  %v966_v13 = vsel %vm506_vm0, %v5172_v12, 0  ;;  %v1702_v31 = vrot.slane %v1700_v20, 4  ;;  %v1709_v38 = vshll.u32 %v5204_v60, 16 }
  0x4c   : > { %v5351_v0 = vcombine.low %v5320_v39, %v5326_v25  ;;  %v5355_v23 = vsel %vm5113_vm7, %v3826_v53, %v833_v44  ;;  %v1705_v6 = vrot.slane %v1703_v29, 5  ;;  %v5359_v47 = vcombine.low %v5035_v55, %v5197_v49  ;;  %v5384_v53 = vld [vmem:[%s6077_s3 + $0x22] sm:$0x3] }
  0x4d   : > { %v5363_v12 = vcombine.low %v5335_v42, %v5355_v23  ;;  %v5367_v60 = vcombine.low %v5215_v28, %v5232_v45  ;;  %v5371_v20 = vsel %vm5113_vm7, %v3827_v61, %v837_v59  ;;  %v1714_v29 = vshrl.u32 %v5215_v28, 16 }
  0x4e   : > { %6116 = vst [vmem:[#allocation14_spill] sm:$0xff] %v5351_v0  ;;  %6117 = vst [vmem:[#allocation15_spill] sm:$0xff] %v5359_v47  ;;  %v1717_v55 = vshll.u32 %v5215_v28, 16  ;;  %v5379_v49 = vsel %vm5113_vm7, %v3828_v46, %v841_v50  ;;  %v1728_v44 = vshrl.u32 %v5232_v45, 16  ;;  %v1731_v61 = vshll.u32 %v5232_v45, 16 }
  0x4f   : > { %6118 = vst [vmem:[#allocation16_spill] sm:$0xff] %v5363_v12  ;;  %6119 = vst [vmem:[#allocation17_spill] sm:$0xff] %v5367_v60  ;;  %v1737_v59 = vshll.u32 %v5235_v62, 16  ;;  %4209 = vmatmul.mubr.msk.bf16.vlgmr.msra.gmra.mrb[0].mxu1 %vm493_vm1, %v5351_v0  ;;  %v1716_v28 = vrot.slane %v1714_v29, 4  ;;  %v2082_v46 = vshrl.u32 %v5244_v43, 16  ;;  %v2085_v50 = vshll.u32 %v5244_v43, 16 }
  0x50   : > { %v1719_v63 = vrot.slane %v1717_v55, 5  ;;  %v1706_v58 = vor.u32 %v1705_v6, %v1702_v31  ;;  %4339 = vmatmul.mubr.msk.bf16.vlgmr.msra.gmra.mrb[0].mxu0 %vm493_vm1, %v5359_v47  ;;  %4212 = vmatprep.mubr.msk.bf16.mxu1 %vm493_vm1, %v5363_v12  ;;  %v2375_v62 = vshrl.u32 %v5392_v40, 16  ;;  %v3847_v45 = vld [vmem:[%s6077_s3 + $0x8] sm:$0x3]  ;;  %v1730_v0 = vrot.slane %v1728_v44, 4 }
  0x51   : > { %v1733_v29 = vrot.slane %v1731_v61, 5  ;;  %4347 = vmatpush3.bf16.msra.mxu0 %v2396_v57  ;;  %4217 = vmatpush3.bf16.msra.mxu1 %v966_v13  ;;  %v2378_v55 = vshll.u32 %v5392_v40, 16  ;;  %v2084_v27 = vrot.slane %v2082_v46, 4  ;;  %v2087_v31 = vrot.slane %v2085_v50, 5 }
  0x52   : > { %v2091_v6 = vshll.u32 %v5247_v37, 16  ;;  %v5408_v47 = vcombine.low %v5371_v20, %v5379_v49  ;;  %4342 = vmatprep.mubr.msk.bf16.mxu0 %vm493_vm1, %v5367_v60  ;;  %v3839_v12 = vcombine.low %v4927_v7, %v4930_v8  ;;  %4692 = vmatprep.subr.msk.bf16.mxu0 %vm506_vm0, %v5384_v53  ;;  %v1723_v57 = vshll.u32 %v5222_v34, 16 }
  0x53   : > { %v1734_v13 = vor.u32 %v1733_v29, %v1730_v0  ;;  %4678 = vmatprep.subr.msk.bf16.mxu1 %vm506_vm0, %v3847_v45  ;;  %v1720_v37 = vor.u32 %v1719_v63, %v1716_v28  ;;  %v1739_v44 = vrot.slane %v1737_v59, 5  ;;  %v2088_v61 = vor.u32 %v2087_v31, %v2084_v27  ;;  %v5426_v0 = vld [vmem:[%s4971_s11 + $0x4c] sm:$0x1] }
  0x54   : > { %v2093_v46 = vrot.slane %v2091_v6, 5  ;;  %v1711_v50 = vrot.slane %v1709_v38, 5  ;;  %v5420_v60 = vcombine.low %v5075_v35, %v5087_v1  ;;  %v3949_v7 = vcombine.low %v5244_v43, %v5392_v40 }
  0x55   : > { %v1735_v8 = vrot.slane %v1734_v13, 4  ;;  %v1707_v30 = vrot.slane %v1706_v58, 4  ;;  %v2089_v24 = vrot.slane %v2088_v61, 4  ;;  %v2377_v34 = vrot.slane %v2375_v62, 4 }
  0x56   : > { %v2380_v11 = vrot.slane %v2378_v55, 5  ;;  %v1721_v27 = vrot.slane %v1720_v37, 4  ;;  %v1725_v28 = vrot.slane %v1723_v57, 5  ;;  %v2384_v59 = vshll.u32 %v5426_v0, 16 }
  0x57   : > { %4213 = vmatmul.mubr.msk.bf16.gmra.mrb[4].mxu1 %vm493_vm1, %v5408_v47  ;;  %v5432_v35 = vsel %vm5048_vm6, %v1735_v8, %v1739_v44  ;;  %v5436_v1 = vsel %vm5048_vm6, %v2089_v24, %v2093_v46  ;;  %v5444_v63 = vsel %vm5048_vm6, %v1707_v30, %v1711_v50  ;;  %v3841_v62 = vcombine.low %v4954_v16, %v4963_v21  ;;  %v3967_v16 = vld [vmem:[%s6077_s3 + $0x24] sm:$0x3]  ;;  %v3857_v21 = vld [vmem:[%s6077_s3 + $0xa] sm:$0x3] }
  0x58   : > { %6120 = vst [vmem:[#allocation18_spill] sm:$0xff] %v5436_v1  ;;  %4343 = vmatmul.mubr.msk.bf16.gmra.mrb[4].mxu0 %vm493_vm1, %v3949_v7  ;;  %4218 = vmatprep.mubr.msk.bf16.mxu1 %vm493_vm1, %v3839_v12  ;;  %v2381_v38 = vor.u32 %v2380_v11, %v2377_v34  ;;  %v5451_v24 = vsel %vm5048_vm6, %v1721_v27, %v1725_v28  ;;  %v2386_v29 = vrot.slane %v2384_v59, 5  ;;  %v2484_v55 = vsel %vm506_vm0, %v5384_v53, 0  ;;  %v5496_v44 = vld [vmem:[%s4921_s28 + $0x44] sm:$0x1] }
  0x59   : > { %4348 = vmatprep.mubr.msk.bf16.mxu0 %vm493_vm1, %v5420_v60  ;;  %v5455_v12 = vcombine.low %v5098_v36, %v5444_v63  ;;  %v1075_v11 = vsel %vm506_vm0, %v3847_v45, 0  ;;  %v5464_v31 = vcombine.low %v5451_v24, %v5432_v35  ;;  %v6121_v6 = vcombine.low %v4936_v10, %v4951_v15  ;;  %v5524_v27 = vld [vmem:[%s5510_s18] sm:$0xf] }
  0x5a   : > { %v2382_v30 = vrot.slane %v2381_v38, 4  ;;  %v1042_v36 = vshrl.u32 %v5346_v17, 16  ;;  %v1045_v10 = vshll.u32 %v5346_v17, 16  ;;  %v3848_v53 = vcombine.low %v5133_v51, %v5137_v54 }
  0x5b   : > { %v5493_v37 = vcombine.low %v5141_v5, %v5165_v2  ;;  %v6122_v61 = vcombine.low %v4966_v22, %v5346_v17  ;;  %v1051_v54 = vshll.u32 %v5496_v44, 16  ;;  %v3849_v22 = vcombine.low %v5151_v26, %v5228_v52 }
  0x5c   : > { %v2387_v15 = vsel %vm5048_vm6, %v2382_v30, %v2386_v29  ;;  %v1044_v57 = vrot.slane %v1042_v36, 4  ;;  %v1047_v13 = vrot.slane %v1045_v10, 5  ;;  %v5516_v5 = vcombine.low %v5178_v14, %v5255_v56  ;;  %v3976_v56 = vld [vmem:[%s6077_s3 + $0x26] sm:$0x3]  ;;  %v5561_v30 = vld [vmem:[%s5510_s18 + $0x4] sm:$0x1] }
  0x5d   : > { %v3955_v45 = vcombine.low %v5436_v1, %v2387_v15  ;;  %v3850_v2 = vcombine.low %v5240_v9, %v5267_v48  ;;  %v1053_v50 = vrot.slane %v1051_v54, 5  ;;  %v2594_v7 = vsel %vm506_vm0, %v3967_v16, 0  ;;  %v5535_v9 = vld [vmem:[%s5510_s18 + $0x8] sm:$0xf]  ;;  %v3866_v48 = vld [vmem:[%s6077_s3 + $0xc] sm:$0x3] }
  0x5e   : > { %v1048_v51 = vor.u32 %v1047_v13, %v1044_v57  ;;  %v3960_v8 = vrot.slane %v5392_v40, 9  ;;  %v2474_v34 = vrot.slane %v5426_v0, 5  ;;  %v1175_v28 = vsel %vm506_vm0, %v3857_v21, 0  ;;  %v5564_v29 = vld [vmem:[%s5510_s18 + $0xc] sm:$0x1] }
  0x5f   : > { %4219 = vmatmul.mubr.msk.bf16.vlgmr.msra.gmra.mrb[0].mxu1 %vm493_vm1, %v6121_v6  ;;  %v5529_v26 = vcombine.low %v5271_v3, %v5283_v32  ;;  %v2670_v14 = vshrl.u32 %v5524_v27, 16  ;;  %v2673_v52 = vshll.u32 %v5524_v27, 16  ;;  %v2684_v3 = vshrl.u32 %v5535_v9, 16  ;;  %v5572_v36 = vld [vmem:[%s5510_s18 + $0x10] sm:$0xf] }
  0x60   : > { %4349 = vmatmul.mubr.msk.bf16.vlgmr.msra.gmra.mrb[0].mxu0 %vm493_vm1, %v5455_v12  ;;  %4222 = vmatprep.mubr.msk.bf16.mxu1 %vm493_vm1, %v3841_v62  ;;  %v1049_v46 = vrot.slane %v1048_v51, 4  ;;  %v2687_v40 = vshll.u32 %v5535_v9, 16  ;;  %v2475_v0 = vsel %vm5113_vm7, %v3960_v8, %v2474_v34  ;;  %v5575_v10 = vld [vmem:[%s5510_s18 + $0x18] sm:$0xf]  ;;  %v2679_v15 = vshll.u32 %v5561_v30, 16 }
  0x61   : > { %4357 = vmatpush3.bf16.msra.mxu0 %v2484_v55  ;;  %4227 = vmatpush3.bf16.msra.mxu1 %v1075_v11  ;;  %v2672_v38 = vrot.slane %v2670_v14, 4  ;;  %v2675_v59 = vrot.slane %v2673_v52, 5  ;;  %v3962_v55 = vcombine.low %v5292_v19, %v2475_v0  ;;  %v3858_v11 = vcombine.low %v5310_v4, %v5320_v39  ;;  %v5598_v54 = vld [vmem:[%s5510_s18 + $0x20] sm:$0xf]  ;;  %v5604_v8 = vld [vmem:[%s5510_s18 + $0x14] sm:$0x1] }
  0x62   : > { %4352 = vmatprep.mubr.msk.bf16.mxu0 %vm493_vm1, %v5464_v31  ;;  %4693 = vmatprep.subr.msk.bf16.mxu0 %vm506_vm0, %v3967_v16  ;;  %v5545_v32 = vsel %vm5048_vm6, %v1049_v46, %v1053_v50  ;;  %v2686_v6 = vrot.slane %v2684_v3, 4  ;;  %v2689_v16 = vrot.slane %v2687_v40, 5  ;;  %v2698_v19 = vshrl.u32 %v5572_v36, 16 }
  0x63   : > { %4679 = vmatprep.subr.msk.bf16.mxu1 %vm506_vm0, %v3857_v21  ;;  %v3851_v62 = vcombine.low %v5277_v41, %v5545_v32  ;;  %v3968_v21 = vcombine.low %v5524_v27, %v5535_v9  ;;  %v2676_v41 = vor.u32 %v2675_v59, %v2672_v38  ;;  %v3859_v4 = vcombine.low %v5326_v25, %v5335_v42  ;;  %v5613_v38 = vld [vmem:[%s5510_s18 + $0x30] sm:$0xf]  ;;  %v5616_v59 = vld [vmem:[%s5510_s18 + $0x1c] sm:$0x1] }
  0x64   : > { %v2690_v39 = vor.u32 %v2689_v16, %v2686_v6  ;;  %v2712_v57 = vshrl.u32 %v5575_v10, 16  ;;  %v2715_v13 = vshll.u32 %v5575_v10, 16  ;;  %v3860_v25 = vcombine.low %v5355_v23, %v5371_v20  ;;  %v3872_v16 = vld [vmem:[%s6077_s3 + $0xe] sm:$0x3] }
  0x65   : > { %v3856_v42 = vrot.slane %v5346_v17, 9  ;;  %v1153_v51 = vrot.slane %v5496_v44, 5  ;;  %v2681_v46 = vrot.slane %v2679_v15, 5  ;;  %v2726_v34 = vshrl.u32 %v5598_v54, 16 }
  0x66   : > { %v2729_v23 = vshll.u32 %v5598_v54, 16  ;;  %v2714_v52 = vrot.slane %v2712_v57, 4  ;;  %v2717_v3 = vrot.slane %v2715_v13, 5  ;;  %v2808_v40 = vsel %vm506_vm0, %v3976_v56, 0  ;;  %v5648_v57 = vld [vmem:[%s5510_s18 + $0x24] sm:$0x1] }
  0x67   : > { %4223 = vmatmul.mubr.msk.bf16.gmra.mrb[4].mxu1 %vm493_vm1, %v6122_v61  ;;  %v5591_v61 = vcombine.low %v5572_v36, %v5575_v10  ;;  %v1259_v0 = vsel %vm506_vm0, %v3866_v48, 0  ;;  %v2707_v6 = vshll.u32 %v5604_v8, 16  ;;  %v5651_v13 = vld [vmem:[%s5510_s18 + $0x2c] sm:$0x1] }
  0x68   : > { %4353 = vmatmul.mubr.msk.bf16.gmra.mrb[4].mxu0 %vm493_vm1, %v3955_v45  ;;  %4228 = vmatprep.mubr.msk.bf16.mxu1 %vm493_vm1, %v3848_v53  ;;  %v2693_v45 = vshll.u32 %v5564_v29, 16  ;;  %v2701_v53 = vshll.u32 %v5572_v36, 16 }
  0x69   : > { %4358 = vmatprep.mubr.msk.bf16.mxu0 %vm493_vm1, %v5493_v37 }
  0x6a   : > { %v2695_v50 = vrot.slane %v2693_v45, 5  ;;  %v2703_v14 = vrot.slane %v2701_v53, 5  ;;  %v2718_v53 = vor.u32 %v2717_v3, %v2714_v52  ;;  %v5671_v3 = vld [vmem:[%s5510_s18 + $0x34] sm:$0x1] }
  0x6f   : > { %4229 = vmatmul.mubr.msk.bf16.vlgmr.msra.gmra.mrb[0].mxu1 %vm493_vm1, %v3849_v22  ;;  %v5601_v22 = vld [vmem:[%s5510_s18 + $0x28] sm:$0xf] }
  0x70   : > { %4359 = vmatmul.mubr.msk.bf16.vlgmr.msra.gmra.mrb[0].mxu0 %vm493_vm1, %v5516_v5  ;;  %4232 = vmatprep.mubr.msk.bf16.mxu1 %vm493_vm1, %v3850_v2  ;;  %v2677_v2 = vrot.slane %v2676_v41, 4  ;;  %v2740_v20 = vshrl.u32 %v5601_v22, 16  ;;  %v2743_v44 = vshll.u32 %v5601_v22, 16  ;;  %v2731_v41 = vrot.slane %v2729_v23, 5 }
  0x71   : > { %4367 = vmatpush3.bf16.msra.mxu0 %v2594_v7  ;;  %4237 = vmatpush3.bf16.msra.mxu1 %v1175_v28  ;;  %v2700_v7 = vrot.slane %v2698_v19, 4  ;;  %v2691_v28 = vrot.slane %v2690_v39, 4  ;;  %v2735_v23 = vshll.u32 %v5648_v57, 16 }
  0x72   : > { %4362 = vmatprep.mubr.msk.bf16.mxu0 %vm493_vm1, %v5529_v26  ;;  %4694 = vmatprep.subr.msk.bf16.mxu0 %vm506_vm0, %v3976_v56  ;;  %v2682_v56 = vsel %vm5048_vm6, %v2677_v2, %v2681_v46  ;;  %v2742_v15 = vrot.slane %v2740_v20, 4  ;;  %v2745_v45 = vrot.slane %v2743_v44, 5  ;;  %v2749_v44 = vshll.u32 %v5651_v13, 16 }
  0x73   : > { %4680 = vmatprep.subr.msk.bf16.mxu1 %vm506_vm0, %v3866_v48  ;;  %v3993_v48 = vld [vmem:[%s6077_s3 + $0x28] sm:$0x3]  ;;  %v5644_v19 = vsel %vm5048_vm6, %v2691_v28, %v2695_v50  ;;  %v2704_v39 = vor.u32 %v2703_v14, %v2700_v7  ;;  %v2709_v7 = vrot.slane %v2707_v6, 5  ;;  %v2719_v14 = vrot.slane %v2718_v53, 4  ;;  %v5674_v6 = vld [vmem:[%s5510_s18 + $0x3c] sm:$0x1] }
  0x74   : > { %v2746_v20 = vor.u32 %v2745_v45, %v2742_v15  ;;  %v2751_v45 = vrot.slane %v2749_v44, 5  ;;  %v2763_v53 = vshll.u32 %v5671_v3, 16 }
  0x75   : > { %v2705_v28 = vrot.slane %v2704_v39, 4 }
  0x76   : > { %v2747_v15 = vrot.slane %v2746_v20, 4 }
  0x77   : > { %4233 = vmatmul.mubr.msk.bf16.gmra.mrb[4].mxu1 %vm493_vm1, %v3851_v62  ;;  %v5620_v62 = vsel %vm5113_vm7, %v3856_v42, %v1153_v51  ;;  %v2754_v42 = vshrl.u32 %v5613_v38, 16  ;;  %v2757_v51 = vshll.u32 %v5613_v38, 16  ;;  %v5683_v39 = vsel %vm5048_vm6, %v2705_v28, %v2709_v7 }
  0x78   : > { %4363 = vmatmul.mubr.msk.bf16.gmra.mrb[4].mxu0 %vm493_vm1, %v3962_v55  ;;  %4238 = vmatprep.mubr.msk.bf16.mxu1 %vm493_vm1, %v3858_v11  ;;  %v5624_v55 = vcombine.low %v5598_v54, %v5601_v22  ;;  %v5627_v11 = vld [vmem:[%s5510_s18 + $0x38] sm:$0xf]  ;;  %v3861_v46 = vcombine.low %v5379_v49, %v5620_v62  ;;  %v3977_v49 = vcombine.low %v2682_v56, %v5644_v19  ;;  %v6123_v56 = vld [vmem:[#allocation3_spill] sm:$0xff] }
  0x79   : > { %4368 = vmatprep.mubr.msk.bf16.mxu0 %vm493_vm1, %v3968_v21  ;;  %v2728_v21 = vrot.slane %v2726_v34, 4  ;;  %v2771_v2 = vshll.u32 %v5627_v11, 16  ;;  %v5663_v50 = vcombine.low %v5613_v38, %v5627_v11 }
  0x7b   : > { %v2732_v34 = vor.u32 %v2731_v41, %v2728_v21  ;;  %v2773_v1 = vrot.slane %v2771_v2, 5  ;;  %v2737_v41 = vrot.slane %v2735_v23, 5  ;;  %v1356_v23 = vsel %vm506_vm0, %v3872_v16, 0 }
  0x7d   : > { %v2733_v21 = vrot.slane %v2732_v34, 4  ;;  %v2950_v34 = vsel %vm506_vm0, %v3993_v48, 0 }
  0x7f   : > { %4239 = vmatmul.mubr.msk.bf16.vlgmr.msra.gmra.mrb[0].mxu1 %vm493_vm1, %v3859_v4  ;;  %v2721_v4 = vshll.u32 %v5616_v59, 16  ;;  %v5694_v2 = vsel %vm5048_vm6, %v2733_v21, %v2737_v41 }
  0x80   : > { %4369 = vmatmul.mubr.msk.bf16.vlgmr.msra.gmra.mrb[0].mxu0 %vm493_vm1, %v5591_v61  ;;  %4242 = vmatprep.mubr.msk.bf16.mxu1 %vm493_vm1, %v3860_v25  ;;  %v2768_v25 = vshrl.u32 %v5627_v11, 16 }
  0x81   : > { %4377 = vmatpush3.bf16.msra.mxu0 %v2808_v40  ;;  %4247 = vmatpush3.bf16.msra.mxu1 %v1259_v0  ;;  %v2723_v52 = vrot.slane %v2721_v4, 5  ;;  %v2756_v40 = vrot.slane %v2754_v42, 4  ;;  %v2759_v0 = vrot.slane %v2757_v51, 5 }
  0x82   : > { %4372 = vmatprep.mubr.msk.bf16.mxu0 %vm493_vm1, %v5624_v55  ;;  %4695 = vmatprep.subr.msk.bf16.mxu0 %vm506_vm0, %v3993_v48  ;;  %v2770_v58 = vrot.slane %v2768_v25, 4  ;;  %v2777_v25 = vshll.u32 %v5674_v6, 16  ;;  %v5717_v48 = vld [vmem:[%s4921_s28 + $0x48] sm:$0xf] }
  0x83   : > { %4681 = vmatprep.subr.msk.bf16.mxu1 %vm506_vm0, %v3872_v16  ;;  %v5689_v4 = vsel %vm5048_vm6, %v2719_v14, %v2723_v52  ;;  %v2760_v42 = vor.u32 %v2759_v0, %v2756_v40  ;;  %v2893_v14 = vrot.slane %v5561_v30, 5  ;;  %v3986_v52 = vrot.slane %v5535_v9, 9  ;;  %v6124_v0 = vld [vmem:[#allocation4_spill] sm:$0xff]  ;;  %v4002_v16 = vld [vmem:[%s6077_s3 + $0x2a] sm:$0x3] }
  0x84   : > { %v2774_v51 = vor.u32 %v2773_v1, %v2770_v58  ;;  %v5702_v7 = vcombine.low %v5683_v39, %v5689_v4  ;;  %v2765_v1 = vrot.slane %v2763_v53, 5  ;;  %v2779_v44 = vrot.slane %v2777_v25, 5 }
  0x85   : > { %v2761_v58 = vrot.slane %v2760_v42, 4  ;;  %v2897_v40 = vrot.slane %v5564_v29, 5  ;;  %v1335_v30 = vshrl.u32 %v5717_v48, 16  ;;  %v1338_v21 = vshll.u32 %v5717_v48, 16  ;;  %v3879_v29 = vld [vmem:[%s6077_s3 + $0x10] sm:$0x3] }
  0x86   : > { %v2775_v20 = vrot.slane %v2774_v51, 4  ;;  %v3867_v53 = vcombine.low %v5346_v17, %v5717_v48  ;;  %v3987_v51 = vrot.slane %v5572_v36, 9  ;;  %v3989_v17 = vrot.slane %v5598_v54, 9 }
  0x87   : > { %4243 = vmatmul.mubr.msk.bf16.gmra.mrb[4].mxu1 %vm493_vm1, %v3861_v46  ;;  %v5698_v46 = vsel %vm5048_vm6, %v2747_v15, %v2751_v45  ;;  %v5733_v41 = vsel %vm5048_vm6, %v2761_v58, %v2765_v1  ;;  %v1337_v25 = vrot.slane %v1335_v30, 4  ;;  %v2901_v1 = vrot.slane %v5604_v8, 5 }
  0x88   : > { %4373 = vmatmul.mubr.msk.bf16.gmra.mrb[4].mxu0 %vm493_vm1, %v5663_v50  ;;  %4248 = vmatprep.mubr.msk.bf16.mxu1 %vm493_vm1, %v6123_v56  ;;  %v5709_v28 = vcombine.low %v5694_v2, %v5698_v46  ;;  %v5737_v15 = vsel %vm5048_vm6, %v2775_v20, %v2779_v44  ;;  %v5745_v56 = vsel %vm5113_vm7, %v3986_v52, %v2897_v40  ;;  %v3988_v58 = vrot.slane %v5575_v10, 9  ;;  %v431_v44 = vld [vmem:[%s4921_s28 + $0x4c] sm:$0x1]  ;;  %v6126_v40 = vld [vmem:[#allocation8_spill] sm:$0xff] }
  0x89   : > { %4378 = vmatprep.mubr.msk.bf16.mxu0 %vm493_vm1, %v3977_v49  ;;  %v3985_v49 = vrot.slane %v5524_v27, 9  ;;  %v6125_v27 = vld [vmem:[#allocation5_spill] sm:$0xff]  ;;  %v5753_v42 = vcombine.low %v5733_v41, %v5737_v15  ;;  %v2905_v20 = vrot.slane %v5616_v59, 5  ;;  %v2913_v52 = vrot.slane %v5651_v13, 5 }
  0x8a   : > { %v5773_v59 = vsel %vm5113_vm7, %v3987_v51, %v2901_v1  ;;  %v2917_v51 = vrot.slane %v5671_v3, 5  ;;  %v1444_v1 = vsel %vm506_vm0, %v3879_v29, 0  ;;  %v6128_v3 = vld [vmem:[#allocation13_spill] sm:$0xff] }
  0x8b   : > { %v2894_v45 = vsel %vm5113_vm7, %v3985_v49, %v2893_v14  ;;  %v2909_v49 = vrot.slane %v5648_v57, 5  ;;  %v3990_v14 = vrot.slane %v5601_v22, 9  ;;  %v5777_v57 = vsel %vm5113_vm7, %v3988_v58, %v2905_v20  ;;  %v6127_v20 = vld [vmem:[#allocation12_spill] sm:$0xff] }
  0x8c   : > { %v5789_v30 = vcombine.low %v5773_v59, %v5777_v57 }
  0x8d   : > { %v5781_v13 = vsel %vm5113_vm7, %v3989_v17, %v2909_v49  ;;  %v4011_v17 = vld [vmem:[%s6077_s3 + $0x2c] sm:$0x3] }
  0x8f   : > { %4249 = vmatmul.mubr.msk.bf16.vlgmr.msra.gmra.mrb[0].mxu1 %vm493_vm1, %v6124_v0  ;;  %v1344_v0 = vshll.u32 %v431_v44, 16 }
  0x90   : > { %4379 = vmatmul.mubr.msk.bf16.vlgmr.msra.gmra.mrb[0].mxu0 %vm493_vm1, %v5702_v7  ;;  %4252 = vmatprep.mubr.msk.bf16.mxu1 %vm493_vm1, %v6125_v27  ;;  %v5785_v27 = vsel %vm5113_vm7, %v3990_v14, %v2913_v52 }
  0x91   : > { %4387 = vmatpush3.bf16.msra.mxu0 %v2950_v34  ;;  %4257 = vmatpush3.bf16.msra.mxu1 %v1356_v23  ;;  %v1340_v34 = vrot.slane %v1338_v21, 5  ;;  %v3994_v23 = vcombine.low %v2894_v45, %v5745_v56  ;;  %v1346_v45 = vrot.slane %v1344_v0, 5  ;;  %v5799_v58 = vcombine.low %v5781_v13, %v5785_v27 }
  0x92   : > { %4382 = vmatprep.mubr.msk.bf16.mxu0 %vm493_vm1, %v5709_v28  ;;  %4696 = vmatprep.subr.msk.bf16.mxu0 %vm506_vm0, %v4002_v16  ;;  %v3878_v0 = vrot.slane %v5717_v48, 9 }
  0x93   : > { %4682 = vmatprep.subr.msk.bf16.mxu1 %vm506_vm0, %v3879_v29  ;;  %v1341_v8 = vor.u32 %v1340_v34, %v1337_v25  ;;  %v3992_v25 = vrot.slane %v5627_v11, 9  ;;  %v2921_v34 = vrot.slane %v5674_v6, 5 }
  0x95   : > { %v1342_v21 = vrot.slane %v1341_v8, 4  ;;  %v5821_v49 = vsel %vm5113_vm7, %v3992_v25, %v2921_v34  ;;  %v6129_v8 = vld [vmem:[#allocation14_spill] sm:$0xff]  ;;  %v5873_v34 = vld [vmem:[%s4971_s11 + $0x8] sm:$0xf] }
  0x96   : > { %v4773_v25 = vld [vmem:[%s4971_s11] sm:$0xf] }
  0x97   : > { %4253 = vmatmul.mubr.msk.bf16.gmra.mrb[4].mxu1 %vm493_vm1, %v3867_v53  ;;  %v3991_v53 = vrot.slane %v5613_v38, 9  ;;  %v1347_v6 = vsel %vm5048_vm6, %v1342_v21, %v1346_v45  ;;  %v1434_v21 = vrot.slane %v431_v44, 5  ;;  %v3155_v45 = vsel %vm506_vm0, %v4011_v17, 0 }
  0x98   : > { %4383 = vmatmul.mubr.msk.bf16.gmra.mrb[4].mxu0 %vm493_vm1, %v5753_v42  ;;  %4258 = vmatprep.mubr.msk.bf16.mxu1 %vm493_vm1, %v6126_v40  ;;  %v3873_v14 = vcombine.low %v5545_v32, %v1347_v6  ;;  %v4003_v40 = vcombine.low %v5535_v9, %v5572_v36  ;;  %v4004_v32 = vcombine.low %v5575_v10, %v5598_v54  ;;  %v5858_v54 = vld [vmem:[%s5510_s18 + $0x40] sm:$0xf] }
  0x99   : > { %4388 = vmatprep.mubr.msk.bf16.mxu0 %vm493_vm1, %v3994_v23  ;;  %v3046_v23 = vsel %vm506_vm0, %v4002_v16, 0  ;;  %v3885_v16 = vld [vmem:[%s6077_s3 + $0x12] sm:$0x3]  ;;  %v5817_v29 = vsel %vm5113_vm7, %v3991_v53, %v2917_v51  ;;  %v4005_v36 = vcombine.low %v5601_v22, %v5613_v38  ;;  %v4021_v51 = vld [vmem:[%s6077_s3 + $0x2e] sm:$0x3]  ;;  %v1435_v10 = vsel %vm5113_vm7, %v3878_v0, %v1434_v21  ;;  %v6133_v21 = vld [vmem:[#allocation17_spill] sm:$0xff] }
  0x9a   : > { %v5830_v52 = vcombine.low %v5817_v29, %v5821_v49  ;;  %v1554_v9 = vsel %vm506_vm0, %v3885_v16, 0  ;;  %v6130_v53 = vld [vmem:[#allocation16_spill] sm:$0xff]  ;;  %v3122_v38 = vshrl.u32 %v5858_v54, 16  ;;  %v3125_v48 = vshll.u32 %v5858_v54, 16  ;;  %v6132_v0 = vld [vmem:[#allocation15_spill] sm:$0xff] }
  0x9b   : > { %v3894_v22 = vld [vmem:[%s6077_s3 + $0x14] sm:$0x3]  ;;  %v4006_v44 = vcombine.low %v5627_v11, %v5858_v54  ;;  %v4013_v6 = vcombine.low %v5689_v4, %v5694_v2  ;;  %v3911_v4 = vld [vmem:[%s6077_s3 + $0x16] sm:$0x3] }
  0x9f   : > { %4259 = vmatmul.mubr.msk.bf16.vlgmr.msra.gmra.mrb[0].mxu1 %vm493_vm1, %v6127_v20  ;;  %v3124_v20 = vrot.slane %v3122_v38, 4 }
  0xa0   : > { %4389 = vmatmul.mubr.msk.bf16.vlgmr.msra.gmra.mrb[0].mxu0 %vm493_vm1, %v5789_v30  ;;  %4262 = vmatprep.mubr.msk.bf16.mxu1 %vm493_vm1, %v6128_v3  ;;  %v469_v3 = vld [vmem:[%s5510_s18 + $0x44] sm:$0x1] }
  0xa1   : > { %4397 = vmatpush3.bf16.msra.mxu0 %v3046_v23  ;;  %4267 = vmatpush3.bf16.msra.mxu1 %v1444_v1  ;;  %v3886_v23 = vcombine.low %v4773_v25, %v5873_v34  ;;  %v4012_v1 = vcombine.low %v5644_v19, %v5683_v39  ;;  %v3131_v11 = vshll.u32 %v469_v3, 16  ;;  %v3255_v19 = vsel %vm506_vm0, %v4021_v51, 0 }
  0xa2   : > { %4392 = vmatprep.mubr.msk.bf16.mxu0 %vm493_vm1, %v5799_v58  ;;  %4697 = vmatprep.subr.msk.bf16.mxu0 %vm506_vm0, %v4011_v17  ;;  %v3127_v17 = vrot.slane %v3125_v48, 5  ;;  %v1768_v39 = vsel %vm506_vm0, %v3894_v22, 0 }
  0xa3   : > { %4683 = vmatprep.subr.msk.bf16.mxu1 %vm506_vm0, %v3885_v16 }
  0xa7   : > { %4263 = vmatmul.mubr.msk.bf16.gmra.mrb[4].mxu1 %vm493_vm1, %v3873_v14  ;;  %v3133_v14 = vrot.slane %v3131_v11, 5  ;;  %v4780_v11 = vld [vmem:[%s4971_s11 + $0x28] sm:$0xf] }
  0xa8   : > { %4393 = vmatmul.mubr.msk.bf16.gmra.mrb[4].mxu0 %vm493_vm1, %v5830_v52  ;;  %4268 = vmatprep.mubr.msk.bf16.mxu1 %vm493_vm1, %v6129_v8  ;;  %v6131_v8 = vld [vmem:[#allocation10_spill] sm:$0xff] }
  0xa9   : > { %4398 = vmatprep.mubr.msk.bf16.mxu0 %vm493_vm1, %v4003_v40  ;;  %v4014_v40 = vcombine.low %v5698_v46, %v5733_v41  ;;  %v4022_v41 = vcombine.low %v5745_v56, %v5773_v59  ;;  %v1910_v59 = vsel %vm506_vm0, %v3911_v4, 0 }
  0xaf   : > { %4269 = vmatmul.mubr.msk.bf16.vlgmr.msra.gmra.mrb[0].mxu1 %vm493_vm1, %v6130_v53 }
  0xb0   : > { %4399 = vmatmul.mubr.msk.bf16.vlgmr.msra.gmra.mrb[0].mxu0 %vm493_vm1, %v4004_v32  ;;  %4272 = vmatprep.mubr.msk.bf16.mxu1 %vm493_vm1, %v5408_v47  ;;  %v3880_v47 = vcombine.low %v5620_v62, %v1435_v10  ;;  %v3128_v62 = vor.u32 %v3127_v17, %v3124_v20  ;;  %v4030_v32 = vld [vmem:[%s6077_s3 + $0x30] sm:$0x3]  ;;  %v3903_v10 = vrot.slane %v4773_v25, 9  ;;  %v471_v20 = vld [vmem:[%s5510_s18 + $0x4c] sm:$0x1] }
  0xb1   : > { %4407 = vmatpush3.bf16.msra.mxu0 %v3155_v45  ;;  %4277 = vmatpush3.bf16.msra.mxu1 %v1554_v9  ;;  %v6134_v45 = vld [vmem:[#allocation6_spill] sm:$0xff]  ;;  %v4023_v9 = vcombine.low %v5777_v57, %v5781_v13  ;;  %v3339_v56 = vsel %vm506_vm0, %v4030_v32, 0  ;;  %v4036_v57 = vld [vmem:[%s6077_s3 + $0x32] sm:$0x3]  ;;  %v3920_v13 = vld [vmem:[%s6077_s3 + $0x18] sm:$0x3] }
  0xb2   : > { %4402 = vmatprep.mubr.msk.bf16.mxu0 %vm493_vm1, %v4005_v36  ;;  %4698 = vmatprep.subr.msk.bf16.mxu0 %vm506_vm0, %v4021_v51  ;;  %v3129_v16 = vrot.slane %v3128_v62, 4  ;;  %v4775_v36 = vld [vmem:[%s4971_s11 + $0x4] sm:$0x1]  ;;  %v3233_v51 = vrot.slane %v469_v3, 5  ;;  %v3436_v48 = vsel %vm506_vm0, %v4036_v57, 0  ;;  %v3424_v17 = vshll.u32 %v471_v20, 16 }
  0xb3   : > { %4684 = vmatprep.subr.msk.bf16.mxu1 %vm506_vm0, %v3894_v22  ;;  %v1853_v53 = vrot.slane %v4775_v36, 5  ;;  %v4024_v22 = vcombine.low %v5785_v27, %v5817_v29  ;;  %v6135_v29 = vld [vmem:[#allocation7_spill] sm:$0xff]  ;;  %v4778_v3 = vld [vmem:[%s4971_s11 + $0x18] sm:$0xf] }
  0xb4   : > { %v5902_v2 = vsel %vm5048_vm6, %v3129_v16, %v3133_v14  ;;  %v3426_v14 = vrot.slane %v3424_v17, 5 }
  0xb5   : > { %v4015_v46 = vcombine.low %v5737_v15, %v5902_v2  ;;  %v4020_v15 = vrot.slane %v5858_v54, 9 }
  0xb7   : > { %4273 = vmatmul.mubr.msk.bf16.gmra.mrb[4].mxu1 %vm493_vm1, %v3880_v47  ;;  %v5938_v27 = vsel %vm5113_vm7, %v4020_v15, %v3233_v51  ;;  %v2006_v47 = vsel %vm506_vm0, %v3920_v13, 0 }
  0xb8   : > { %4403 = vmatmul.mubr.msk.bf16.gmra.mrb[4].mxu0 %vm493_vm1, %v4006_v44  ;;  %4278 = vmatprep.mubr.msk.bf16.mxu1 %vm493_vm1, %v3886_v23 }
  0xb9   : > { %4408 = vmatprep.mubr.msk.bf16.mxu0 %vm493_vm1, %v4012_v1 }
  0xbf   : > { %4279 = vmatmul.mubr.msk.bf16.vlgmr.msra.gmra.mrb[0].mxu1 %vm493_vm1, %v6131_v8 }
  0xc0   : > { %4409 = vmatmul.mubr.msk.bf16.vlgmr.msra.gmra.mrb[0].mxu0 %vm493_vm1, %v4013_v6  ;;  %4282 = vmatprep.mubr.msk.bf16.mxu1 %vm493_vm1, %v6132_v0 }
  0xc1   : > { %4417 = vmatpush3.bf16.msra.mxu0 %v3255_v19  ;;  %4287 = vmatpush3.bf16.msra.mxu1 %v1768_v39  ;;  %v6138_v39 = vld [vmem:[#allocation11_spill] sm:$0xff] }
  0xc2   : > { %4412 = vmatprep.mubr.msk.bf16.mxu0 %vm493_vm1, %v4014_v40  ;;  %4699 = vmatprep.subr.msk.bf16.mxu0 %vm506_vm0, %v4030_v32  ;;  %v3924_v40 = vcombine.low %v6138_v39, %v5244_v43 }
  0xc3   : > { %4685 = vmatprep.subr.msk.bf16.mxu1 %vm506_vm0, %v3911_v4 }
  0xc7   : > { %4283 = vmatmul.mubr.msk.bf16.gmra.mrb[4].mxu1 %vm493_vm1, %v6133_v21 }
  0xc8   : > { %4413 = vmatmul.mubr.msk.bf16.gmra.mrb[4].mxu0 %vm493_vm1, %v4015_v46  ;;  %4288 = vmatprep.mubr.msk.bf16.mxu1 %vm493_vm1, %v6134_v45 }
  0xc9   : > { %4418 = vmatprep.mubr.msk.bf16.mxu0 %vm493_vm1, %v4022_v41 }
  0xcf   : > { %4289 = vmatmul.mubr.msk.bf16.vlgmr.msra.gmra.mrb[0].mxu1 %vm493_vm1, %v5420_v60  ;;  %v1854_v60 = vsel %vm5113_vm7, %v3903_v10, %v1853_v53 }
  0xd0   : > { %4419 = vmatmul.mubr.msk.bf16.vlgmr.msra.gmra.mrb[0].mxu0 %vm493_vm1, %v4023_v9  ;;  %4292 = vmatprep.mubr.msk.bf16.mxu1 %vm493_vm1, %v5455_v12  ;;  %v4025_v12 = vcombine.low %v5821_v49, %v5938_v27  ;;  %v3912_v38 = vcombine.low %v1854_v60, %v6135_v29  ;;  %v4043_v49 = vld [vmem:[%s6077_s3 + $0x34] sm:$0x3] }
  0xd1   : > { %4427 = vmatpush3.bf16.msra.mxu0 %v3339_v56  ;;  %4297 = vmatpush3.bf16.msra.mxu1 %v1910_v59  ;;  %v3524_v19 = vsel %vm506_vm0, %v4043_v49, 0 }
  0xd2   : > { %4422 = vmatprep.mubr.msk.bf16.mxu0 %vm493_vm1, %v4024_v22  ;;  %4700 = vmatprep.subr.msk.bf16.mxu0 %vm506_vm0, %v4036_v57 }
  0xd3   : > { %4686 = vmatprep.subr.msk.bf16.mxu1 %vm506_vm0, %v3920_v13 }
  0xd7   : > { %4293 = vmatmul.mubr.msk.bf16.gmra.mrb[4].mxu1 %vm493_vm1, %v5464_v31  ;;  %v470_v31 = vld [vmem:[%s5510_s18 + $0x48] sm:$0xf]  ;;  %s3798_s18 = sshll.u32 %s6152_s22, 5 }
  0xd8   : > { %4423 = vmatmul.mubr.msk.bf16.gmra.mrb[4].mxu0 %vm493_vm1, %v4025_v12  ;;  %4298 = vmatprep.mubr.msk.bf16.mxu1 %vm493_vm1, %v3912_v38  ;;  %v3418_v44 = vshll.u32 %v470_v31, 16  ;;  %v4042_v18 = vrot.slane %v470_v31, 9 }
  0xd9   : > { %4428 = vmatprep.mubr.msk.bf16.mxu0 %vm493_vm1, %v5591_v61  ;;  %v3415_v61 = vshrl.u32 %v470_v31, 16 }
  0xda   : > { %v3420_v1 = vrot.slane %v3418_v44, 5 }
  0xdb   : > { %v3417_v23 = vrot.slane %v3415_v61, 4 }
  0xdf   : > { %4299 = vmatmul.mubr.msk.bf16.vlgmr.msra.gmra.mrb[0].mxu1 %vm493_vm1, %v5493_v37  ;;  %v4776_v37 = vld [vmem:[%s6077_s3 + $0x1a] sm:$0x3] }
  0xe0   : > { %4429 = vmatmul.mubr.msk.bf16.vlgmr.msra.gmra.mrb[0].mxu0 %vm493_vm1, %v5624_v55  ;;  %4302 = vmatprep.mubr.msk.bf16.mxu1 %vm493_vm1, %v5516_v5  ;;  %v4031_v5 = vcombine.low %v5858_v54, %v470_v31  ;;  %v4777_v55 = vld [vmem:[%s4971_s11 + $0x10] sm:$0xf]  ;;  %v4779_v54 = vld [vmem:[%s4971_s11 + $0x20] sm:$0xf]  ;;  %s3797_s11 = sshll.u32 %s6158_s21, 3 }
  0xe1   : > { %4437 = vmatpush3.bf16.msra.mxu0 %v3436_v48  ;;  %4307 = vmatpush3.bf16.msra.mxu1 %v2006_v47  ;;  %v3921_v25 = vcombine.low %v5873_v34, %v4777_v55  ;;  %v3922_v62 = vcombine.low %v4778_v3, %v4779_v54  ;;  %v6136_v34 = vld [vmem:[#allocation9_spill] sm:$0xff]  ;;  %s392_s29 = sadd.s32 %s3798_s18, %s3797_s11 }
  0xe2   : > { %4432 = vmatprep.mubr.msk.bf16.mxu0 %vm493_vm1, %v5663_v50  ;;  %4701 = vmatprep.subr.msk.bf16.mxu0 %vm506_vm0, %v4043_v49  ;;  %v3421_v50 = vor.u32 %v3420_v1, %v3417_v23  ;;  %v3923_v6 = vcombine.low %v4780_v11, %v6136_v34  ;;  %s3799_s30 = sshll.u32 %s392_s29, 3 }
  0xe3   : > { %4688 = vmatprep.subr.msk.bf16.mxu1 %vm506_vm0, %v4776_v37  ;;  %s6028_s12 = scalar_lea.vmem %s6079_s5, %s3799_s30  ;;  %s6037_s13 = scalar_lea.vmem %s6080_s6, %s3799_s30 }
  0xe4   : > { %v3422_v16 = vrot.slane %v3421_v50, 4  ;;  %v3601_v46 = vld [vmem:[%s6028_s12 + $0x10] sm:$0xff]  ;;  %v3599_v9 = vld [vmem:[%s6028_s12] sm:$0xff]  ;;  %v3602_v51 = vld [vmem:[%s6028_s12 + $0x18] sm:$0xff] }
  0xe5   : > { %v3600_v57 = vld [vmem:[%s6028_s12 + $0x8] sm:$0xff]  ;;  %v3605_v55 = vld [vmem:[%s6028_s12 + $0x30] sm:$0xff]  ;;  %v3606_v54 = vld [vmem:[%s6028_s12 + $0x38] sm:$0xff] }
  0xe7   : > { %4303 = vmatmul.mubr.msk.bf16.gmra.mrb[4].mxu1 %vm493_vm1, %v5529_v26  ;;  %v6137_v26 = vld [vmem:[#allocation2_spill] sm:$0xff] }
  0xe8   : > { %4433 = vmatmul.mubr.msk.bf16.gmra.mrb[4].mxu0 %vm493_vm1, %v4031_v5  ;;  %4308 = vmatprep.mubr.msk.bf16.mxu1 %vm493_vm1, %v3921_v25 }
  0xe9   : > { %4438 = vmatprep.mubr.msk.bf16.mxu0 %vm493_vm1, %v5702_v7  ;;  %v3427_v7 = vsel %vm5048_vm6, %v3422_v16, %v3426_v14 }
  0xea   : > { %v4037_v8 = vcombine.low %v5902_v2, %v3427_v7 }
  0xef   : > { %4309 = vmatmul.mubr.msk.bf16.vlgmr.msra.gmra.mrb[0].mxu1 %vm493_vm1, %v3922_v62 }
  0xf0   : > { %4439 = vmatmul.mubr.msk.bf16.vlgmr.msra.gmra.mrb[0].mxu0 %vm493_vm1, %v5709_v28  ;;  %4312 = vmatprep.mubr.msk.bf16.mxu1 %vm493_vm1, %v3923_v6  ;;  %v3932_v28 = vcombine.low %v5444_v63, %v5451_v24  ;;  %v6139_v63 = vld [vmem:[#allocation18_spill] sm:$0xff]  ;;  %v3604_v6 = vld [vmem:[%s6028_s12 + $0x28] sm:$0xff] }
  0xf1   : > { %4447 = vmatpush3.bf16.msra.mxu0 %v3524_v19  ;;  %4457 = vmatpush3.bf16.msra.mxu1 %v6137_v26  ;;  %v6140_v24 = vcombine.low %v5432_v35, %v6139_v63 }
  0xf2   : > { %4442 = vmatprep.mubr.msk.bf16.mxu0 %vm493_vm1, %v5753_v42  ;;  %v3514_v42 = vrot.slane %v471_v20, 5  ;;  %v3603_v20 = vld [vmem:[%s6028_s12 + $0x20] sm:$0xff] }
  0xf4   : > { %v3515_v43 = vsel %vm5113_vm7, %v4042_v18, %v3514_v42 }
  0xf5   : > { %v4044_v32 = vcombine.low %v5938_v27, %v3515_v43 }
  0xf7   : > { %4313 = vmatmul.mubr.msk.bf16.gmra.mrb[4].mxu1 %vm493_vm1, %v3924_v40 }
  0xf8   : > { %4443 = vmatmul.mubr.msk.bf16.gmra.mrb[4].mxu0 %vm493_vm1, %v4037_v8  ;;  %4322 = vmatprep.mubr.msk.bf16.mxu1 %vm493_vm1, %v3932_v28 }
  0xf9   : > { %4448 = vmatprep.mubr.msk.bf16.mxu0 %vm493_vm1, %v5789_v30 }
 0x100   : > { %4449 = vmatmul.mubr.msk.bf16.vlgmr.msra.gmra.mrb[0].mxu0 %vm493_vm1, %v5799_v58 }
 0x101   : > { %4452 = vmatprep.mubr.msk.bf16.mxu0 %vm493_vm1, %v5830_v52 }
 0x103   : > { %4323 = vmatmul.mubr.msk.bf16.vlgmr.msra.gmra.mrb[4].mxu1 %vm493_vm1, %v6140_v24 }
 0x108   : > { %4453 = vmatmul.mubr.msk.bf16.gmra.mrb[4].mxu0 %vm493_vm1, %v4044_v32 }
 0x1c2   : > { %v4310_v30 = vpop.f32.mrb[0].mxu1 }
 0x1c3   : > { %v2042_v0 = vpop.f32.mrb[1].mxu1  ;;  %v4458_v35 = vadd.f32 %v4310_v30, %v3803_v33 }
 0x1c4   : > { %v4311_v58 = vpop.f32.mrb[2].mxu1  ;;  %v4460_v52 = vadd.f32 %v3803_v33, %v2042_v0 }
 0x1c5   : > { %v2045_v4 = vpop.f32.mrb[3].mxu1  ;;  %v4462_v41 = vadd.f32 %v4311_v58, %v3803_v33 }
 0x1c6   : > { %v4464_v36 = vadd.f32 %v3803_v33, %v2045_v4 }
 0x1d3   : > { %v4450_v2 = vpop.f32.mrb[0].mxu0 }
 0x1d4   : > { %v4459_v21 = vadd.f32 %v4458_v35, %v4450_v2  ;;  %v3560_v45 = vpop.f32.mrb[1].mxu0 }
 0x1d5   : > { %v4461_v53 = vadd.f32 %v4460_v52, %v3560_v45  ;;  %v4451_v15 = vpop.f32.mrb[2].mxu0 }
 0x1d6   : > { %v4324_v10 = vpop.f32.mrb[4].mxu1  ;;  %v3609_v56 = vadd.f32 %v4459_v21, %v3601_v46  ;;  %v4463_v59 = vadd.f32 %v4462_v41, %v4451_v15  ;;  %v3563_v22 = vpop.f32.mrb[3].mxu0 }
 0x1d7   : > { %v2167_v13 = vpop.f32.mrb[5].mxu1  ;;  %v3607_v27 = vadd.f32 %v4461_v53, %v3599_v9  ;;  %v4465_v60 = vadd.f32 %v4464_v36, %v3563_v22  ;;  %v4466_v31 = vadd.f32 %v4324_v10, %v3803_v33 }
 0x1d8   : > { %v4325_v12 = vpop.f32.mrb[6].mxu1  ;;  %v3617_v29 = vmax.f32 %v3609_v56, 0.0  ;;  %v3610_v38 = vadd.f32 %v4463_v59, %v3602_v51  ;;  %v4468_v44 = vadd.f32 %v3803_v33, %v2167_v13 }
 0x1d9   : > { %v2170_v48 = vpop.f32.mrb[7].mxu1  ;;  %v3615_v47 = vmax.f32 %v3607_v27, 0.0  ;;  %v3608_v49 = vadd.f32 %v4465_v60, %v3600_v57  ;;  %v4470_v25 = vadd.f32 %v4325_v12, %v3803_v33 }
 0x1da   : > { %3625 = vst.msk [vmem:[%s6037_s13 + $0x10] sm:$0xff] %vm493_vm1, %v3617_v29  ;;  %v3618_v61 = vmax.f32 %v3610_v38, 0.0  ;;  %v4472_v50 = vadd.f32 %v3803_v33, %v2170_v48 }
 0x1db   : > { %3623 = vst.msk [vmem:[%s6037_s13] sm:$0xff] %vm493_vm1, %v3615_v47  ;;  %v3616_v37 = vmax.f32 %v3608_v49, 0.0  ;;  %v4454_v5 = vpop.f32.mrb[4].mxu0 }
 0x1dc   : > { %3626 = vst.msk [vmem:[%s6037_s13 + $0x18] sm:$0xff] %vm493_vm1, %v3618_v61  ;;  %v4467_v23 = vadd.f32 %v4466_v31, %v4454_v5  ;;  %v3576_v1 = vpop.f32.mrb[5].mxu0 }
 0x1dd   : > { %3624 = vst.msk [vmem:[%s6037_s13 + $0x8] sm:$0xff] %vm493_vm1, %v3616_v37  ;;  %v4469_v17 = vadd.f32 %v4468_v44, %v3576_v1  ;;  %v4455_v3 = vpop.f32.mrb[6].mxu0 }
 0x1de   : > { %v3613_v62 = vadd.f32 %v4467_v23, %v3605_v55  ;;  %v4471_v11 = vadd.f32 %v4470_v25, %v4455_v3  ;;  %v3579_v34 = vpop.f32.mrb[7].mxu0 }
 0x1df   : > { %v3611_v16 = vadd.f32 %v4469_v17, %v3603_v20  ;;  %v4473_v14 = vadd.f32 %v4472_v50, %v3579_v34 }
 0x1e0   : > { %v3621_v19 = vmax.f32 %v3613_v62, 0.0  ;;  %v3614_v26 = vadd.f32 %v4471_v11, %v3606_v54 }
 0x1e1   : > { %v3619_v7 = vmax.f32 %v3611_v16, 0.0  ;;  %v3612_v39 = vadd.f32 %v4473_v14, %v3604_v6 }
 0x1e2   : > { %3629 = vst.msk [vmem:[%s6037_s13 + $0x30] sm:$0xff] %vm493_vm1, %v3621_v19  ;;  %v3622_v40 = vmax.f32 %v3614_v26, 0.0 }
 0x1e3   : > { %3627 = vst.msk [vmem:[%s6037_s13 + $0x20] sm:$0xff] %vm493_vm1, %v3619_v7  ;;  %v3620_v8 = vmax.f32 %v3612_v39, 0.0 }
 0x1e4   : > { %3630 = vst.msk [vmem:[%s6037_s13 + $0x38] sm:$0xff] %vm493_vm1, %v3622_v40 }
 0x1e5   : > { %3628 = vst.msk [vmem:[%s6037_s13 + $0x28] sm:$0xff] %vm493_vm1, %v3620_v8 }
 0x1e6 PF: > { %s16_s25 = sadd.s32 1, %s4819_s25   ;;  %s6141_s21 = smov %s4811_s23 }
 0x1e7   : > { %p13_p10 = scmp.ge.s32.totalorder %s16_s25, 10   ;;  %s6142_s22 = smov %s4815_s24 }
 0x1e8   : > { %s6143_s23 = smov %s6146_s26  ;;  %s6144_s24 = smov %s6150_s27 }
 0x1e9   :  { %15 = sbr.rel (!%p13_p10) target bundleno = 3 (0x3), region = 109 }

</bundles_post_ra>
